<compile_context>
chip_gen: v6e
topology: v6e:2x2x1
jax: 0.10.0
libtpu: 0.0.40
codegen_flags: <defaults>
</compile_context>

<pallas_src>
from functools import partial

import jax
import jax.numpy as jnp
from jax.experimental import pallas as pl
from jax.experimental.pallas import tpu as pltpu

BN_EPS = 1e-5


# ----------------------------- in-kernel helpers ------------------------------

def _pad_hw(a3, pad):
    """Zero-pad the two trailing (spatial) dims of a (C, H, W) value."""
    if pad == 0:
        return a3
    c, h, w = a3.shape
    zc = jnp.zeros((c, h, pad), a3.dtype)
    a = jnp.concatenate([zc, a3, zc], axis=2)
    zr = jnp.zeros((c, pad, w + 2 * pad), a3.dtype)
    return jnp.concatenate([zr, a, zr], axis=1)


def _conv3x3_im2col(a3, w_ref, b_ref, pad):
    """3x3 conv (stride 1), channel-major, as ONE im2col MXU matmul.

    a3:    (C_in, H, W) f32 value
    w_ref: (C_out, 9*C_in) folded weights, contraction ordered (dy, dx, ci)
    b_ref: (C_out, 1) bias
    returns (C_out, H_out*W_out) with H_out = H + 2*pad - 2.
    """
    c_in, h, w = a3.shape
    h_out = h + 2 * pad - 2
    w_out = w + 2 * pad - 2
    ap = _pad_hw(a3, pad)
    cols = [ap[:, dy:dy + h_out, dx:dx + w_out].reshape(c_in, h_out * w_out)
            for dy in range(3) for dx in range(3)]
    patch = jnp.concatenate(cols, axis=0)                    # (9*C_in, H_out*W_out)
    acc = jnp.dot(w_ref[...], patch, preferred_element_type=jnp.float32)
    return acc + b_ref[...]


# --------------------------------- kernel --------------------------------------

def down_kernel(x_ref, w1_ref, b1_ref, g1_ref, bt1_ref,
                w2_ref, b2_ref, g2_ref, bt2_ref, o_ref, *, cin, pad):
    """Fully fused `down` forward for the whole (small) batch in one invocation.

    x_ref : (N, cin*Hh, 2, W)   raw NCHW input, H pre-split (free reshape) for pooling
    w*_ref: (Cout, 9*Cin)       folded conv weights       b*_ref: (Cout, 1) bias
    g*_ref/bt*_ref: (Cout, 1)   BatchNorm gamma / beta
    o_ref : (N, Cout, H2*W2)    final output (NCHW-compatible row-major)
    """
    n = x_ref.shape[0]
    chh = x_ref.shape[1]
    w_full = x_ref.shape[3]
    hh = chh // cin
    wh = w_full // 2
    cout = w1_ref.shape[0]
    h1 = hh + 2 * pad - 2
    w1 = wh + 2 * pad - 2
    h2 = h1 + 2 * pad - 2
    w2 = w1 + 2 * pad - 2

    # 0/1 selection matrices picking even / odd columns (column pool via MXU,
    # keeps the lane axis = W, no strided loads).
    r = jax.lax.broadcasted_iota(jnp.int32, (w_full, wh), 0)
    c = jax.lax.broadcasted_iota(jnp.int32, (w_full, wh), 1)
    sel_even = (r == 2 * c).astype(jnp.float32)
    sel_odd = (r == 2 * c + 1).astype(jnp.float32)

    # ---- phase 1: 2x2 max-pool + conv1(+bias); accumulate BN1 batch stats ----
    y1 = []
    s1 = jnp.zeros((cout, 1), jnp.float32)
    ss1 = jnp.zeros((cout, 1), jnp.float32)
    for b in range(n):
        xa = x_ref[b]                                        # (cin*hh, 2, W)
        hp = jnp.maximum(xa[:, 0, :], xa[:, 1, :])           # row pool
        pe = jnp.dot(hp, sel_even, preferred_element_type=jnp.float32)
        po = jnp.dot(hp, sel_odd, preferred_element_type=jnp.float32)
        pooled = jnp.maximum(pe, po).reshape(cin, hh, wh)    # column pool
        acc = _conv3x3_im2col(pooled, w1_ref, b1_ref, pad)   # (cout, h1*w1)
        y1.append(acc)
        s1 = s1 + jnp.sum(acc, axis=1, keepdims=True)
        ss1 = ss1 + jnp.sum(acc * acc, axis=1, keepdims=True)

    cnt1 = float(n * h1 * w1)
    mean1 = s1 * (1.0 / cnt1)
    var1 = jnp.maximum(ss1 * (1.0 / cnt1) - mean1 * mean1, 0.0)
    sc1 = g1_ref[...] * jax.lax.rsqrt(var1 + BN_EPS)
    sh1 = bt1_ref[...] - mean1 * sc1

    # ---- phase 2: BN1 affine + ReLU + conv2(+bias); accumulate BN2 stats ----
    y2 = []
    s2 = jnp.zeros((cout, 1), jnp.float32)
    ss2 = jnp.zeros((cout, 1), jnp.float32)
    for b in range(n):
        a = jnp.maximum(y1[b] * sc1 + sh1, 0.0).reshape(cout, h1, w1)
        acc = _conv3x3_im2col(a, w2_ref, b2_ref, pad)        # (cout, h2*w2)
        y2.append(acc)
        s2 = s2 + jnp.sum(acc, axis=1, keepdims=True)
        ss2 = ss2 + jnp.sum(acc * acc, axis=1, keepdims=True)

    cnt2 = float(n * h2 * w2)
    mean2 = s2 * (1.0 / cnt2)
    var2 = jnp.maximum(ss2 * (1.0 / cnt2) - mean2 * mean2, 0.0)
    sc2 = g2_ref[...] * jax.lax.rsqrt(var2 + BN_EPS)
    sh2 = bt2_ref[...] - mean2 * sc2

    # ---- phase 3: BN2 affine + ReLU, write output -----------------------------
    for b in range(n):
        o_ref[b] = jnp.maximum(y2[b] * sc2 + sh2, 0.0).astype(o_ref.dtype)


# ------------------------------- JAX wrapper ------------------------------------

@partial(jax.jit, static_argnums=(2,))
def down_forward(x, params, padding):
    """PyTorch `down` forward.  x: NCHW f32.  Returns NCHW f32."""
    n, cin, h, w = x.shape
    hh, wh = h // 2, w // 2
    cout = params["w1"].shape[0]                             # OIHW
    h1 = hh + 2 * padding - 2
    w1 = wh + 2 * padding - 2
    h2 = h1 + 2 * padding - 2
    w2 = w1 + 2 * padding - 2

    # Fold conv weights for im2col: (Cout, Cin, 3, 3) -> (Cout, 9*Cin),
    # contraction ordered (dy, dx, ci) to match the in-kernel patch layout.
    w1f = jnp.transpose(params["w1"], (0, 2, 3, 1)).reshape(cout, 9 * cin)
    w2f = jnp.transpose(params["w2"], (0, 2, 3, 1)).reshape(cout, 9 * cout)
    b1 = params["b1"].reshape(cout, 1)
    b2 = params["b2"].reshape(cout, 1)
    g1 = params["gamma1"].reshape(cout, 1)
    bt1 = params["beta1"].reshape(cout, 1)
    g2 = params["gamma2"].reshape(cout, 1)
    bt2 = params["beta2"].reshape(cout, 1)

    # Free reshape: split H into (H/2, 2) so the pool's row-max needs no strided
    # access; merged with C so the input stays a plain 4-D tile.
    x_r = x.reshape(n, cin * hh, 2, w)

    out = pl.pallas_call(
        partial(down_kernel, cin=cin, pad=padding),
        out_shape=jax.ShapeDtypeStruct((n, cout, h2 * w2), jnp.float32),
        compiler_params=pltpu.CompilerParams(vmem_limit_bytes=32 * 1024 * 1024),
    )(x_r, w1f, b1, g1, bt1, w2f, b2, g2, bt2)

    # Free reshape back to NCHW (row-major compatible, no transpose pass).
    return out.reshape(n, cout, h2, w2)


# ------------------------------ params / reference -------------------------------

def _round_bf16(a):
    # Round test data to the bf16 grid so MXU default-precision passes are
    # exact on the first layer -> tight comparison against the XLA reference.
    return a.astype(jnp.bfloat16).astype(jnp.float32)


def init_params(key, in_ch, out_ch):
    k1, k2, k3, k4 = jax.random.split(key, 4)
    w1 = _round_bf16(jax.random.normal(k1, (out_ch, in_ch, 3, 3), jnp.float32) * 0.1)
    b1 = _round_bf16(jax.random.normal(k2, (out_ch,), jnp.float32) * 0.1)
    w2 = _round_bf16(jax.random.normal(k3, (out_ch, out_ch, 3, 3), jnp.float32) * 0.1)
    b2 = _round_bf16(jax.random.normal(k4, (out_ch,), jnp.float32) * 0.1)
    # BatchNorm affine params at PyTorch defaults (gamma=1, beta=0).
    return dict(
        w1=w1, b1=b1,
        gamma1=jnp.ones((out_ch,), jnp.float32),
        beta1=jnp.zeros((out_ch,), jnp.float32),
        w2=w2, b2=b2,
        gamma2=jnp.ones((out_ch,), jnp.float32),
        beta2=jnp.zeros((out_ch,), jnp.float32),
    )


def reference_forward(x, params, padding):
    """Pure-JAX/XLA reference of the PyTorch `down` forward (training-mode BN)."""
    p = jax.lax.reduce_window(x, -jnp.inf, jax.lax.max,
                              (1, 1, 2, 2), (1, 1, 2, 2), "VALID")

    def conv_bn_relu(h, wgt, bias, gamma, beta):
        y = jax.lax.conv_general_dilated(
            h, wgt, window_strides=(1, 1),
            padding=[(padding, padding), (padding, padding)],
            dimension_numbers=("NCHW", "OIHW", "NCHW"))
        y = y + bias.reshape(1, -1, 1, 1)
        mean = jnp.mean(y, axis=(0, 2, 3), keepdims=True)
        var = jnp.var(y, axis=(0, 2, 3), keepdims=True)      # biased (training mode)
        y = (y - mean) * jax.lax.rsqrt(var + BN_EPS)
        y = y * gamma.reshape(1, -1, 1, 1) + beta.reshape(1, -1, 1, 1)
        return jnp.maximum(y, 0.0)

    a = conv_bn_relu(p, params["w1"], params["b1"], params["gamma1"], params["beta1"])
    a = conv_bn_relu(a, params["w2"], params["b2"], params["gamma2"], params["beta2"])
    return a


if __name__ == "__main__":
    key = jax.random.PRNGKey(0)
    k_x, k_p = jax.random.split(key)

    N, in_ch, out_ch, H, W = 2, 4, 8, 16, 16
    padding = 1

    x = _round_bf16(jax.random.normal(k_x, (N, in_ch, H, W), jnp.float32))   # NCHW
    params = init_params(k_p, in_ch, out_ch)

    out = jax.block_until_ready(down_forward(x, params, padding))

    Hh, Wh = H // 2, W // 2
    H1, W1 = Hh + 2 * padding - 2, Wh + 2 * padding - 2
    H2, W2 = H1 + 2 * padding - 2, W1 + 2 * padding - 2

    assert out.shape == (N, out_ch, H2, W2), out.shape
    assert bool(jnp.all(jnp.isfinite(out)))

    ref = reference_forward(x, params, padding)
    max_err = float(jnp.max(jnp.abs(out - ref)))
    # Tolerance covers MXU default-precision (bf16-pass) matmuls vs XLA conv.
    assert max_err < 5e-2, f"mismatch vs reference: {max_err}"

    print("KERNEL_OK")
</pallas_src>

<mosaic_0001>
module attributes {stable_mosaic.version = 11 : i64} {
  func.func @down_kernel(%arg0: memref<2x32x2x16xf32, #tpu.memory_space<vmem>>, %arg1: memref<8x36xf32, #tpu.memory_space<vmem>>, %arg2: memref<8x1xf32, #tpu.memory_space<vmem>>, %arg3: memref<8x1xf32, #tpu.memory_space<vmem>>, %arg4: memref<8x1xf32, #tpu.memory_space<vmem>>, %arg5: memref<8x72xf32, #tpu.memory_space<vmem>>, %arg6: memref<8x1xf32, #tpu.memory_space<vmem>>, %arg7: memref<8x1xf32, #tpu.memory_space<vmem>>, %arg8: memref<8x1xf32, #tpu.memory_space<vmem>>, %arg9: memref<2x8x64xf32, #tpu.memory_space<vmem>>) attributes {dimension_semantics = [], scalar_prefetch = 0 : i64, scratch_operands = 0 : i64, tpu.core_type = #tpu.core_type<tc>} {
    %0 = tpu.iota {dimensions = array<i32: 0>} : vector<16x8xi32>
    %1 = tpu.iota {dimensions = array<i32: 1>} : vector<16x8xi32>
    %c2_i32 = arith.constant 2 : i32
    %2 = vector.broadcast %c2_i32 : i32 to vector<16x8xi32>
    %3 = arith.muli %2, %1 : vector<16x8xi32>
    %4 = arith.cmpi eq, %0, %3 : vector<16x8xi32>
    %5 = arith.extui %4 : vector<16x8xi1> to vector<16x8xi32>
    %6 = arith.sitofp %5 : vector<16x8xi32> to vector<16x8xf32>
    %c2_i32_0 = arith.constant 2 : i32
    %7 = vector.broadcast %c2_i32_0 : i32 to vector<16x8xi32>
    %8 = arith.muli %7, %1 : vector<16x8xi32>
    %c1_i32 = arith.constant 1 : i32
    %9 = vector.broadcast %c1_i32 : i32 to vector<16x8xi32>
    %10 = arith.addi %8, %9 : vector<16x8xi32>
    %11 = arith.cmpi eq, %0, %10 : vector<16x8xi32>
    %12 = arith.extui %11 : vector<16x8xi1> to vector<16x8xi32>
    %13 = arith.sitofp %12 : vector<16x8xi32> to vector<16x8xf32>
    %cst = arith.constant 0.000000e+00 : f32
    %14 = vector.broadcast %cst : f32 to vector<8x1xf32>
    %cst_1 = arith.constant 0.000000e+00 : f32
    %15 = vector.broadcast %cst_1 : f32 to vector<8x1xf32>
    %c0 = arith.constant 0 : index
    %c0_2 = arith.constant 0 : index
    %c0_3 = arith.constant 0 : index
    %c0_4 = arith.constant 0 : index
    %16 = vector.load %arg0[%c0, %c0_2, %c0_3, %c0_4] : memref<2x32x2x16xf32, #tpu.memory_space<vmem>>, vector<1x32x2x16xf32>
    %17 = vector.shape_cast %16 : vector<1x32x2x16xf32> to vector<32x2x16xf32>
    %18 = vector.extract_strided_slice %17 {offsets = [0, 0, 0], sizes = [32, 1, 16], strides = [1, 1, 1]} : vector<32x2x16xf32> to vector<32x1x16xf32>
    %19 = vector.shape_cast %18 : vector<32x1x16xf32> to vector<32x16xf32>
    %20 = vector.extract_strided_slice %17 {offsets = [0, 1, 0], sizes = [32, 1, 16], strides = [1, 1, 1]} : vector<32x2x16xf32> to vector<32x1x16xf32>
    %21 = vector.shape_cast %20 : vector<32x1x16xf32> to vector<32x16xf32>
    %22 = arith.maximumf %19, %21 : vector<32x16xf32>
    %cst_5 = arith.constant dense<0.000000e+00> : vector<32x8xf32>
    %23 = tpu.matmul %22, %6, %cst_5 {dimension_numbers = #tpu.dot_dimension_numbers<[1], [0], [0], [1], [0, 0, 1, 1], [], []>} : vector<32x16xf32>, vector<16x8xf32>, vector<32x8xf32> -> vector<32x8xf32>
    %cst_6 = arith.constant dense<0.000000e+00> : vector<32x8xf32>
    %24 = tpu.matmul %22, %13, %cst_6 {dimension_numbers = #tpu.dot_dimension_numbers<[1], [0], [0], [1], [0, 0, 1, 1], [], []>} : vector<32x16xf32>, vector<16x8xf32>, vector<32x8xf32> -> vector<32x8xf32>
    %25 = arith.maximumf %23, %24 : vector<32x8xf32>
    %26 = vector.shape_cast %25 : vector<32x8xf32> to vector<4x8x8xf32>
    %cst_7 = arith.constant 0.000000e+00 : f32
    %27 = vector.broadcast %cst_7 : f32 to vector<4x8x1xf32>
    %28 = tpu.concatenate %27, %26, %27 in 2 : vector<4x8x1xf32>, vector<4x8x8xf32>, vector<4x8x1xf32> -> vector<4x8x10xf32>
    %cst_8 = arith.constant 0.000000e+00 : f32
    %29 = vector.broadcast %cst_8 : f32 to vector<4x1x10xf32>
    %30 = tpu.concatenate %29, %28, %29 in 1 : vector<4x1x10xf32>, vector<4x8x10xf32>, vector<4x1x10xf32> -> vector<4x10x10xf32>
    %31 = vector.extract_strided_slice %30 {offsets = [0, 0, 0], sizes = [4, 8, 8], strides = [1, 1, 1]} : vector<4x10x10xf32> to vector<4x8x8xf32>
    %32 = vector.shape_cast %31 : vector<4x8x8xf32> to vector<4x64xf32>
    %33 = vector.extract_strided_slice %30 {offsets = [0, 0, 1], sizes = [4, 8, 8], strides = [1, 1, 1]} : vector<4x10x10xf32> to vector<4x8x8xf32>
    %34 = vector.shape_cast %33 : vector<4x8x8xf32> to vector<4x64xf32>
    %35 = vector.extract_strided_slice %30 {offsets = [0, 0, 2], sizes = [4, 8, 8], strides = [1, 1, 1]} : vector<4x10x10xf32> to vector<4x8x8xf32>
    %36 = vector.shape_cast %35 : vector<4x8x8xf32> to vector<4x64xf32>
    %37 = vector.extract_strided_slice %30 {offsets = [0, 1, 0], sizes = [4, 8, 8], strides = [1, 1, 1]} : vector<4x10x10xf32> to vector<4x8x8xf32>
    %38 = vector.shape_cast %37 : vector<4x8x8xf32> to vector<4x64xf32>
    %39 = vector.extract_strided_slice %30 {offsets = [0, 1, 1], sizes = [4, 8, 8], strides = [1, 1, 1]} : vector<4x10x10xf32> to vector<4x8x8xf32>
    %40 = vector.shape_cast %39 : vector<4x8x8xf32> to vector<4x64xf32>
    %41 = vector.extract_strided_slice %30 {offsets = [0, 1, 2], sizes = [4, 8, 8], strides = [1, 1, 1]} : vector<4x10x10xf32> to vector<4x8x8xf32>
    %42 = vector.shape_cast %41 : vector<4x8x8xf32> to vector<4x64xf32>
    %43 = vector.extract_strided_slice %30 {offsets = [0, 2, 0], sizes = [4, 8, 8], strides = [1, 1, 1]} : vector<4x10x10xf32> to vector<4x8x8xf32>
    %44 = vector.shape_cast %43 : vector<4x8x8xf32> to vector<4x64xf32>
    %45 = vector.extract_strided_slice %30 {offsets = [0, 2, 1], sizes = [4, 8, 8], strides = [1, 1, 1]} : vector<4x10x10xf32> to vector<4x8x8xf32>
    %46 = vector.shape_cast %45 : vector<4x8x8xf32> to vector<4x64xf32>
    %47 = vector.extract_strided_slice %30 {offsets = [0, 2, 2], sizes = [4, 8, 8], strides = [1, 1, 1]} : vector<4x10x10xf32> to vector<4x8x8xf32>
    %48 = vector.shape_cast %47 : vector<4x8x8xf32> to vector<4x64xf32>
    %49 = tpu.concatenate %32, %34, %36, %38, %40, %42, %44, %46, %48 in 0 : vector<4x64xf32>, vector<4x64xf32>, vector<4x64xf32>, vector<4x64xf32>, vector<4x64xf32>, vector<4x64xf32>, vector<4x64xf32>, vector<4x64xf32>, vector<4x64xf32> -> vector<36x64xf32>
    %c0_9 = arith.constant 0 : index
    %c0_10 = arith.constant 0 : index
    %50 = vector.load %arg1[%c0_9, %c0_10] : memref<8x36xf32, #tpu.memory_space<vmem>>, vector<8x36xf32>
    %cst_11 = arith.constant dense<0.000000e+00> : vector<8x64xf32>
    %51 = tpu.matmul %50, %49, %cst_11 {dimension_numbers = #tpu.dot_dimension_numbers<[1], [0], [0], [1], [0, 0, 1, 1], [], []>} : vector<8x36xf32>, vector<36x64xf32>, vector<8x64xf32> -> vector<8x64xf32>
    %c0_12 = arith.constant 0 : index
    %c0_13 = arith.constant 0 : index
    %52 = vector.load %arg2[%c0_12, %c0_13] : memref<8x1xf32, #tpu.memory_space<vmem>>, vector<8x1xf32>
    %53 = vector.broadcast %52 : vector<8x1xf32> to vector<8x64xf32>
    %54 = arith.addf %51, %53 : vector<8x64xf32>
    %cst_14 = arith.constant dense<0.000000e+00> : vector<8xf32>
    %55 = vector.multi_reduction <add>, %54, %cst_14 [1] : vector<8x64xf32> to vector<8xf32>
    %56 = vector.shape_cast %55 : vector<8xf32> to vector<8x1xf32>
    %57 = arith.addf %14, %56 : vector<8x1xf32>
    %58 = arith.mulf %54, %54 : vector<8x64xf32>
    %cst_15 = arith.constant dense<0.000000e+00> : vector<8xf32>
    %59 = vector.multi_reduction <add>, %58, %cst_15 [1] : vector<8x64xf32> to vector<8xf32>
    %60 = vector.shape_cast %59 : vector<8xf32> to vector<8x1xf32>
    %61 = arith.addf %15, %60 : vector<8x1xf32>
    %c1 = arith.constant 1 : index
    %c0_16 = arith.constant 0 : index
    %c0_17 = arith.constant 0 : index
    %c0_18 = arith.constant 0 : index
    %62 = vector.load %arg0[%c1, %c0_16, %c0_17, %c0_18] : memref<2x32x2x16xf32, #tpu.memory_space<vmem>>, vector<1x32x2x16xf32>
    %63 = vector.shape_cast %62 : vector<1x32x2x16xf32> to vector<32x2x16xf32>
    %64 = vector.extract_strided_slice %63 {offsets = [0, 0, 0], sizes = [32, 1, 16], strides = [1, 1, 1]} : vector<32x2x16xf32> to vector<32x1x16xf32>
    %65 = vector.shape_cast %64 : vector<32x1x16xf32> to vector<32x16xf32>
    %66 = vector.extract_strided_slice %63 {offsets = [0, 1, 0], sizes = [32, 1, 16], strides = [1, 1, 1]} : vector<32x2x16xf32> to vector<32x1x16xf32>
    %67 = vector.shape_cast %66 : vector<32x1x16xf32> to vector<32x16xf32>
    %68 = arith.maximumf %65, %67 : vector<32x16xf32>
    %cst_19 = arith.constant dense<0.000000e+00> : vector<32x8xf32>
    %69 = tpu.matmul %68, %6, %cst_19 {dimension_numbers = #tpu.dot_dimension_numbers<[1], [0], [0], [1], [0, 0, 1, 1], [], []>} : vector<32x16xf32>, vector<16x8xf32>, vector<32x8xf32> -> vector<32x8xf32>
    %cst_20 = arith.constant dense<0.000000e+00> : vector<32x8xf32>
    %70 = tpu.matmul %68, %13, %cst_20 {dimension_numbers = #tpu.dot_dimension_numbers<[1], [0], [0], [1], [0, 0, 1, 1], [], []>} : vector<32x16xf32>, vector<16x8xf32>, vector<32x8xf32> -> vector<32x8xf32>
    %71 = arith.maximumf %69, %70 : vector<32x8xf32>
    %72 = vector.shape_cast %71 : vector<32x8xf32> to vector<4x8x8xf32>
    %cst_21 = arith.constant 0.000000e+00 : f32
    %73 = vector.broadcast %cst_21 : f32 to vector<4x8x1xf32>
    %74 = tpu.concatenate %73, %72, %73 in 2 : vector<4x8x1xf32>, vector<4x8x8xf32>, vector<4x8x1xf32> -> vector<4x8x10xf32>
    %cst_22 = arith.constant 0.000000e+00 : f32
    %75 = vector.broadcast %cst_22 : f32 to vector<4x1x10xf32>
    %76 = tpu.concatenate %75, %74, %75 in 1 : vector<4x1x10xf32>, vector<4x8x10xf32>, vector<4x1x10xf32> -> vector<4x10x10xf32>
    %77 = vector.extract_strided_slice %76 {offsets = [0, 0, 0], sizes = [4, 8, 8], strides = [1, 1, 1]} : vector<4x10x10xf32> to vector<4x8x8xf32>
    %78 = vector.shape_cast %77 : vector<4x8x8xf32> to vector<4x64xf32>
    %79 = vector.extract_strided_slice %76 {offsets = [0, 0, 1], sizes = [4, 8, 8], strides = [1, 1, 1]} : vector<4x10x10xf32> to vector<4x8x8xf32>
    %80 = vector.shape_cast %79 : vector<4x8x8xf32> to vector<4x64xf32>
    %81 = vector.extract_strided_slice %76 {offsets = [0, 0, 2], sizes = [4, 8, 8], strides = [1, 1, 1]} : vector<4x10x10xf32> to vector<4x8x8xf32>
    %82 = vector.shape_cast %81 : vector<4x8x8xf32> to vector<4x64xf32>
    %83 = vector.extract_strided_slice %76 {offsets = [0, 1, 0], sizes = [4, 8, 8], strides = [1, 1, 1]} : vector<4x10x10xf32> to vector<4x8x8xf32>
    %84 = vector.shape_cast %83 : vector<4x8x8xf32> to vector<4x64xf32>
    %85 = vector.extract_strided_slice %76 {offsets = [0, 1, 1], sizes = [4, 8, 8], strides = [1, 1, 1]} : vector<4x10x10xf32> to vector<4x8x8xf32>
    %86 = vector.shape_cast %85 : vector<4x8x8xf32> to vector<4x64xf32>
    %87 = vector.extract_strided_slice %76 {offsets = [0, 1, 2], sizes = [4, 8, 8], strides = [1, 1, 1]} : vector<4x10x10xf32> to vector<4x8x8xf32>
    %88 = vector.shape_cast %87 : vector<4x8x8xf32> to vector<4x64xf32>
    %89 = vector.extract_strided_slice %76 {offsets = [0, 2, 0], sizes = [4, 8, 8], strides = [1, 1, 1]} : vector<4x10x10xf32> to vector<4x8x8xf32>
    %90 = vector.shape_cast %89 : vector<4x8x8xf32> to vector<4x64xf32>
    %91 = vector.extract_strided_slice %76 {offsets = [0, 2, 1], sizes = [4, 8, 8], strides = [1, 1, 1]} : vector<4x10x10xf32> to vector<4x8x8xf32>
    %92 = vector.shape_cast %91 : vector<4x8x8xf32> to vector<4x64xf32>
    %93 = vector.extract_strided_slice %76 {offsets = [0, 2, 2], sizes = [4, 8, 8], strides = [1, 1, 1]} : vector<4x10x10xf32> to vector<4x8x8xf32>
    %94 = vector.shape_cast %93 : vector<4x8x8xf32> to vector<4x64xf32>
    %95 = tpu.concatenate %78, %80, %82, %84, %86, %88, %90, %92, %94 in 0 : vector<4x64xf32>, vector<4x64xf32>, vector<4x64xf32>, vector<4x64xf32>, vector<4x64xf32>, vector<4x64xf32>, vector<4x64xf32>, vector<4x64xf32>, vector<4x64xf32> -> vector<36x64xf32>
    %c0_23 = arith.constant 0 : index
    %c0_24 = arith.constant 0 : index
    %96 = vector.load %arg1[%c0_23, %c0_24] : memref<8x36xf32, #tpu.memory_space<vmem>>, vector<8x36xf32>
    %cst_25 = arith.constant dense<0.000000e+00> : vector<8x64xf32>
    %97 = tpu.matmul %96, %95, %cst_25 {dimension_numbers = #tpu.dot_dimension_numbers<[1], [0], [0], [1], [0, 0, 1, 1], [], []>} : vector<8x36xf32>, vector<36x64xf32>, vector<8x64xf32> -> vector<8x64xf32>
    %c0_26 = arith.constant 0 : index
    %c0_27 = arith.constant 0 : index
    %98 = vector.load %arg2[%c0_26, %c0_27] : memref<8x1xf32, #tpu.memory_space<vmem>>, vector<8x1xf32>
    %99 = vector.broadcast %98 : vector<8x1xf32> to vector<8x64xf32>
    %100 = arith.addf %97, %99 : vector<8x64xf32>
    %cst_28 = arith.constant dense<0.000000e+00> : vector<8xf32>
    %101 = vector.multi_reduction <add>, %100, %cst_28 [1] : vector<8x64xf32> to vector<8xf32>
    %102 = vector.shape_cast %101 : vector<8xf32> to vector<8x1xf32>
    %103 = arith.addf %57, %102 : vector<8x1xf32>
    %104 = arith.mulf %100, %100 : vector<8x64xf32>
    %cst_29 = arith.constant dense<0.000000e+00> : vector<8xf32>
    %105 = vector.multi_reduction <add>, %104, %cst_29 [1] : vector<8x64xf32> to vector<8xf32>
    %106 = vector.shape_cast %105 : vector<8xf32> to vector<8x1xf32>
    %107 = arith.addf %61, %106 : vector<8x1xf32>
    %cst_30 = arith.constant 7.812500e-03 : f32
    %108 = vector.broadcast %cst_30 : f32 to vector<8x1xf32>
    %109 = arith.mulf %103, %108 : vector<8x1xf32>
    %cst_31 = arith.constant 7.812500e-03 : f32
    %110 = vector.broadcast %cst_31 : f32 to vector<8x1xf32>
    %111 = arith.mulf %107, %110 : vector<8x1xf32>
    %112 = arith.mulf %109, %109 : vector<8x1xf32>
    %113 = arith.subf %111, %112 : vector<8x1xf32>
    %cst_32 = arith.constant 0.000000e+00 : f32
    %114 = vector.broadcast %cst_32 : f32 to vector<8x1xf32>
    %115 = arith.maximumf %113, %114 : vector<8x1xf32>
    %c0_33 = arith.constant 0 : index
    %c0_34 = arith.constant 0 : index
    %116 = vector.load %arg3[%c0_33, %c0_34] : memref<8x1xf32, #tpu.memory_space<vmem>>, vector<8x1xf32>
    %cst_35 = arith.constant 9.99999974E-6 : f32
    %117 = vector.broadcast %cst_35 : f32 to vector<8x1xf32>
    %118 = arith.addf %115, %117 : vector<8x1xf32>
    %119 = math.rsqrt %118 : vector<8x1xf32>
    %120 = arith.mulf %116, %119 : vector<8x1xf32>
    %c0_36 = arith.constant 0 : index
    %c0_37 = arith.constant 0 : index
    %121 = vector.load %arg4[%c0_36, %c0_37] : memref<8x1xf32, #tpu.memory_space<vmem>>, vector<8x1xf32>
    %122 = arith.mulf %109, %120 : vector<8x1xf32>
    %123 = arith.subf %121, %122 : vector<8x1xf32>
    %cst_38 = arith.constant 0.000000e+00 : f32
    %124 = vector.broadcast %cst_38 : f32 to vector<8x1xf32>
    %cst_39 = arith.constant 0.000000e+00 : f32
    %125 = vector.broadcast %cst_39 : f32 to vector<8x1xf32>
    %126 = vector.broadcast %120 : vector<8x1xf32> to vector<8x64xf32>
    %127 = arith.mulf %54, %126 : vector<8x64xf32>
    %128 = vector.broadcast %123 : vector<8x1xf32> to vector<8x64xf32>
    %129 = arith.addf %127, %128 : vector<8x64xf32>
    %cst_40 = arith.constant 0.000000e+00 : f32
    %130 = vector.broadcast %cst_40 : f32 to vector<8x64xf32>
    %131 = arith.maximumf %129, %130 : vector<8x64xf32>
    %132 = vector.shape_cast %131 : vector<8x64xf32> to vector<8x8x8xf32>
    %cst_41 = arith.constant 0.000000e+00 : f32
    %133 = vector.broadcast %cst_41 : f32 to vector<8x8x1xf32>
    %134 = tpu.concatenate %133, %132, %133 in 2 : vector<8x8x1xf32>, vector<8x8x8xf32>, vector<8x8x1xf32> -> vector<8x8x10xf32>
    %cst_42 = arith.constant 0.000000e+00 : f32
    %135 = vector.broadcast %cst_42 : f32 to vector<8x1x10xf32>
    %136 = tpu.concatenate %135, %134, %135 in 1 : vector<8x1x10xf32>, vector<8x8x10xf32>, vector<8x1x10xf32> -> vector<8x10x10xf32>
    %137 = vector.extract_strided_slice %136 {offsets = [0, 0, 0], sizes = [8, 8, 8], strides = [1, 1, 1]} : vector<8x10x10xf32> to vector<8x8x8xf32>
    %138 = vector.shape_cast %137 : vector<8x8x8xf32> to vector<8x64xf32>
    %139 = vector.extract_strided_slice %136 {offsets = [0, 0, 1], sizes = [8, 8, 8], strides = [1, 1, 1]} : vector<8x10x10xf32> to vector<8x8x8xf32>
    %140 = vector.shape_cast %139 : vector<8x8x8xf32> to vector<8x64xf32>
    %141 = vector.extract_strided_slice %136 {offsets = [0, 0, 2], sizes = [8, 8, 8], strides = [1, 1, 1]} : vector<8x10x10xf32> to vector<8x8x8xf32>
    %142 = vector.shape_cast %141 : vector<8x8x8xf32> to vector<8x64xf32>
    %143 = vector.extract_strided_slice %136 {offsets = [0, 1, 0], sizes = [8, 8, 8], strides = [1, 1, 1]} : vector<8x10x10xf32> to vector<8x8x8xf32>
    %144 = vector.shape_cast %143 : vector<8x8x8xf32> to vector<8x64xf32>
    %145 = vector.extract_strided_slice %136 {offsets = [0, 1, 1], sizes = [8, 8, 8], strides = [1, 1, 1]} : vector<8x10x10xf32> to vector<8x8x8xf32>
    %146 = vector.shape_cast %145 : vector<8x8x8xf32> to vector<8x64xf32>
    %147 = vector.extract_strided_slice %136 {offsets = [0, 1, 2], sizes = [8, 8, 8], strides = [1, 1, 1]} : vector<8x10x10xf32> to vector<8x8x8xf32>
    %148 = vector.shape_cast %147 : vector<8x8x8xf32> to vector<8x64xf32>
    %149 = vector.extract_strided_slice %136 {offsets = [0, 2, 0], sizes = [8, 8, 8], strides = [1, 1, 1]} : vector<8x10x10xf32> to vector<8x8x8xf32>
    %150 = vector.shape_cast %149 : vector<8x8x8xf32> to vector<8x64xf32>
    %151 = vector.extract_strided_slice %136 {offsets = [0, 2, 1], sizes = [8, 8, 8], strides = [1, 1, 1]} : vector<8x10x10xf32> to vector<8x8x8xf32>
    %152 = vector.shape_cast %151 : vector<8x8x8xf32> to vector<8x64xf32>
    %153 = vector.extract_strided_slice %136 {offsets = [0, 2, 2], sizes = [8, 8, 8], strides = [1, 1, 1]} : vector<8x10x10xf32> to vector<8x8x8xf32>
    %154 = vector.shape_cast %153 : vector<8x8x8xf32> to vector<8x64xf32>
    %155 = tpu.concatenate %138, %140, %142, %144, %146, %148, %150, %152, %154 in 0 : vector<8x64xf32>, vector<8x64xf32>, vector<8x64xf32>, vector<8x64xf32>, vector<8x64xf32>, vector<8x64xf32>, vector<8x64xf32>, vector<8x64xf32>, vector<8x64xf32> -> vector<72x64xf32>
    %c0_43 = arith.constant 0 : index
    %c0_44 = arith.constant 0 : index
    %156 = vector.load %arg5[%c0_43, %c0_44] : memref<8x72xf32, #tpu.memory_space<vmem>>, vector<8x72xf32>
    %cst_45 = arith.constant dense<0.000000e+00> : vector<8x64xf32>
    %157 = tpu.matmul %156, %155, %cst_45 {dimension_numbers = #tpu.dot_dimension_numbers<[1], [0], [0], [1], [0, 0, 1, 1], [], []>} : vector<8x72xf32>, vector<72x64xf32>, vector<8x64xf32> -> vector<8x64xf32>
    %c0_46 = arith.constant 0 : index
    %c0_47 = arith.constant 0 : index
    %158 = vector.load %arg6[%c0_46, %c0_47] : memref<8x1xf32, #tpu.memory_space<vmem>>, vector<8x1xf32>
    %159 = vector.broadcast %158 : vector<8x1xf32> to vector<8x64xf32>
    %160 = arith.addf %157, %159 : vector<8x64xf32>
    %cst_48 = arith.constant dense<0.000000e+00> : vector<8xf32>
    %161 = vector.multi_reduction <add>, %160, %cst_48 [1] : vector<8x64xf32> to vector<8xf32>
    %162 = vector.shape_cast %161 : vector<8xf32> to vector<8x1xf32>
    %163 = arith.addf %124, %162 : vector<8x1xf32>
    %164 = arith.mulf %160, %160 : vector<8x64xf32>
    %cst_49 = arith.constant dense<0.000000e+00> : vector<8xf32>
    %165 = vector.multi_reduction <add>, %164, %cst_49 [1] : vector<8x64xf32> to vector<8xf32>
    %166 = vector.shape_cast %165 : vector<8xf32> to vector<8x1xf32>
    %167 = arith.addf %125, %166 : vector<8x1xf32>
    %168 = vector.broadcast %120 : vector<8x1xf32> to vector<8x64xf32>
    %169 = arith.mulf %100, %168 : vector<8x64xf32>
    %170 = vector.broadcast %123 : vector<8x1xf32> to vector<8x64xf32>
    %171 = arith.addf %169, %170 : vector<8x64xf32>
    %cst_50 = arith.constant 0.000000e+00 : f32
    %172 = vector.broadcast %cst_50 : f32 to vector<8x64xf32>
    %173 = arith.maximumf %171, %172 : vector<8x64xf32>
    %174 = vector.shape_cast %173 : vector<8x64xf32> to vector<8x8x8xf32>
    %cst_51 = arith.constant 0.000000e+00 : f32
    %175 = vector.broadcast %cst_51 : f32 to vector<8x8x1xf32>
    %176 = tpu.concatenate %175, %174, %175 in 2 : vector<8x8x1xf32>, vector<8x8x8xf32>, vector<8x8x1xf32> -> vector<8x8x10xf32>
    %cst_52 = arith.constant 0.000000e+00 : f32
    %177 = vector.broadcast %cst_52 : f32 to vector<8x1x10xf32>
    %178 = tpu.concatenate %177, %176, %177 in 1 : vector<8x1x10xf32>, vector<8x8x10xf32>, vector<8x1x10xf32> -> vector<8x10x10xf32>
    %179 = vector.extract_strided_slice %178 {offsets = [0, 0, 0], sizes = [8, 8, 8], strides = [1, 1, 1]} : vector<8x10x10xf32> to vector<8x8x8xf32>
    %180 = vector.shape_cast %179 : vector<8x8x8xf32> to vector<8x64xf32>
    %181 = vector.extract_strided_slice %178 {offsets = [0, 0, 1], sizes = [8, 8, 8], strides = [1, 1, 1]} : vector<8x10x10xf32> to vector<8x8x8xf32>
    %182 = vector.shape_cast %181 : vector<8x8x8xf32> to vector<8x64xf32>
    %183 = vector.extract_strided_slice %178 {offsets = [0, 0, 2], sizes = [8, 8, 8], strides = [1, 1, 1]} : vector<8x10x10xf32> to vector<8x8x8xf32>
    %184 = vector.shape_cast %183 : vector<8x8x8xf32> to vector<8x64xf32>
    %185 = vector.extract_strided_slice %178 {offsets = [0, 1, 0], sizes = [8, 8, 8], strides = [1, 1, 1]} : vector<8x10x10xf32> to vector<8x8x8xf32>
    %186 = vector.shape_cast %185 : vector<8x8x8xf32> to vector<8x64xf32>
    %187 = vector.extract_strided_slice %178 {offsets = [0, 1, 1], sizes = [8, 8, 8], strides = [1, 1, 1]} : vector<8x10x10xf32> to vector<8x8x8xf32>
    %188 = vector.shape_cast %187 : vector<8x8x8xf32> to vector<8x64xf32>
    %189 = vector.extract_strided_slice %178 {offsets = [0, 1, 2], sizes = [8, 8, 8], strides = [1, 1, 1]} : vector<8x10x10xf32> to vector<8x8x8xf32>
    %190 = vector.shape_cast %189 : vector<8x8x8xf32> to vector<8x64xf32>
    %191 = vector.extract_strided_slice %178 {offsets = [0, 2, 0], sizes = [8, 8, 8], strides = [1, 1, 1]} : vector<8x10x10xf32> to vector<8x8x8xf32>
    %192 = vector.shape_cast %191 : vector<8x8x8xf32> to vector<8x64xf32>
    %193 = vector.extract_strided_slice %178 {offsets = [0, 2, 1], sizes = [8, 8, 8], strides = [1, 1, 1]} : vector<8x10x10xf32> to vector<8x8x8xf32>
    %194 = vector.shape_cast %193 : vector<8x8x8xf32> to vector<8x64xf32>
    %195 = vector.extract_strided_slice %178 {offsets = [0, 2, 2], sizes = [8, 8, 8], strides = [1, 1, 1]} : vector<8x10x10xf32> to vector<8x8x8xf32>
    %196 = vector.shape_cast %195 : vector<8x8x8xf32> to vector<8x64xf32>
    %197 = tpu.concatenate %180, %182, %184, %186, %188, %190, %192, %194, %196 in 0 : vector<8x64xf32>, vector<8x64xf32>, vector<8x64xf32>, vector<8x64xf32>, vector<8x64xf32>, vector<8x64xf32>, vector<8x64xf32>, vector<8x64xf32>, vector<8x64xf32> -> vector<72x64xf32>
    %c0_53 = arith.constant 0 : index
    %c0_54 = arith.constant 0 : index
    %198 = vector.load %arg5[%c0_53, %c0_54] : memref<8x72xf32, #tpu.memory_space<vmem>>, vector<8x72xf32>
    %cst_55 = arith.constant dense<0.000000e+00> : vector<8x64xf32>
    %199 = tpu.matmul %198, %197, %cst_55 {dimension_numbers = #tpu.dot_dimension_numbers<[1], [0], [0], [1], [0, 0, 1, 1], [], []>} : vector<8x72xf32>, vector<72x64xf32>, vector<8x64xf32> -> vector<8x64xf32>
    %c0_56 = arith.constant 0 : index
    %c0_57 = arith.constant 0 : index
    %200 = vector.load %arg6[%c0_56, %c0_57] : memref<8x1xf32, #tpu.memory_space<vmem>>, vector<8x1xf32>
    %201 = vector.broadcast %200 : vector<8x1xf32> to vector<8x64xf32>
    %202 = arith.addf %199, %201 : vector<8x64xf32>
    %cst_58 = arith.constant dense<0.000000e+00> : vector<8xf32>
    %203 = vector.multi_reduction <add>, %202, %cst_58 [1] : vector<8x64xf32> to vector<8xf32>
    %204 = vector.shape_cast %203 : vector<8xf32> to vector<8x1xf32>
    %205 = arith.addf %163, %204 : vector<8x1xf32>
    %206 = arith.mulf %202, %202 : vector<8x64xf32>
    %cst_59 = arith.constant dense<0.000000e+00> : vector<8xf32>
    %207 = vector.multi_reduction <add>, %206, %cst_59 [1] : vector<8x64xf32> to vector<8xf32>
    %208 = vector.shape_cast %207 : vector<8xf32> to vector<8x1xf32>
    %209 = arith.addf %167, %208 : vector<8x1xf32>
    %cst_60 = arith.constant 7.812500e-03 : f32
    %210 = vector.broadcast %cst_60 : f32 to vector<8x1xf32>
    %211 = arith.mulf %205, %210 : vector<8x1xf32>
    %cst_61 = arith.constant 7.812500e-03 : f32
    %212 = vector.broadcast %cst_61 : f32 to vector<8x1xf32>
    %213 = arith.mulf %209, %212 : vector<8x1xf32>
    %214 = arith.mulf %211, %211 : vector<8x1xf32>
    %215 = arith.subf %213, %214 : vector<8x1xf32>
    %cst_62 = arith.constant 0.000000e+00 : f32
    %216 = vector.broadcast %cst_62 : f32 to vector<8x1xf32>
    %217 = arith.maximumf %215, %216 : vector<8x1xf32>
    %c0_63 = arith.constant 0 : index
    %c0_64 = arith.constant 0 : index
    %218 = vector.load %arg7[%c0_63, %c0_64] : memref<8x1xf32, #tpu.memory_space<vmem>>, vector<8x1xf32>
    %cst_65 = arith.constant 9.99999974E-6 : f32
    %219 = vector.broadcast %cst_65 : f32 to vector<8x1xf32>
    %220 = arith.addf %217, %219 : vector<8x1xf32>
    %221 = math.rsqrt %220 : vector<8x1xf32>
    %222 = arith.mulf %218, %221 : vector<8x1xf32>
    %c0_66 = arith.constant 0 : index
    %c0_67 = arith.constant 0 : index
    %223 = vector.load %arg8[%c0_66, %c0_67] : memref<8x1xf32, #tpu.memory_space<vmem>>, vector<8x1xf32>
    %224 = arith.mulf %211, %222 : vector<8x1xf32>
    %225 = arith.subf %223, %224 : vector<8x1xf32>
    %226 = vector.broadcast %222 : vector<8x1xf32> to vector<8x64xf32>
    %227 = arith.mulf %160, %226 : vector<8x64xf32>
    %228 = vector.broadcast %225 : vector<8x1xf32> to vector<8x64xf32>
    %229 = arith.addf %227, %228 : vector<8x64xf32>
    %cst_68 = arith.constant 0.000000e+00 : f32
    %230 = vector.broadcast %cst_68 : f32 to vector<8x64xf32>
    %231 = arith.maximumf %229, %230 : vector<8x64xf32>
    %c0_69 = arith.constant 0 : index
    %c0_70 = arith.constant 0 : index
    %c0_71 = arith.constant 0 : index
    %232 = vector.load %arg9[%c0_69, %c0_70, %c0_71] : memref<2x8x64xf32, #tpu.memory_space<vmem>>, vector<1x8x64xf32>
    %233 = vector.shape_cast %232 : vector<1x8x64xf32> to vector<8x64xf32>
    %234 = vector.shape_cast %231 : vector<8x64xf32> to vector<1x8x64xf32>
    tpu.vector_store %arg9[%c0_69, %c0_70, %c0_71], %234 {strides = array<i32>} : memref<2x8x64xf32, #tpu.memory_space<vmem>>, vector<1x8x64xf32>,
    %235 = vector.broadcast %222 : vector<8x1xf32> to vector<8x64xf32>
    %236 = arith.mulf %202, %235 : vector<8x64xf32>
    %237 = vector.broadcast %225 : vector<8x1xf32> to vector<8x64xf32>
    %238 = arith.addf %236, %237 : vector<8x64xf32>
    %cst_72 = arith.constant 0.000000e+00 : f32
    %239 = vector.broadcast %cst_72 : f32 to vector<8x64xf32>
    %240 = arith.maximumf %238, %239 : vector<8x64xf32>
    %c1_73 = arith.constant 1 : index
    %c0_74 = arith.constant 0 : index
    %c0_75 = arith.constant 0 : index
    %241 = vector.load %arg9[%c1_73, %c0_74, %c0_75] : memref<2x8x64xf32, #tpu.memory_space<vmem>>, vector<1x8x64xf32>
    %242 = vector.shape_cast %241 : vector<1x8x64xf32> to vector<8x64xf32>
    %243 = vector.shape_cast %240 : vector<8x64xf32> to vector<1x8x64xf32>
    tpu.vector_store %arg9[%c1_73, %c0_74, %c0_75], %243 {strides = array<i32>} : memref<2x8x64xf32, #tpu.memory_space<vmem>>, vector<1x8x64xf32>,
    return
  }
}

</mosaic_0001>

<bundles_post_ra>
// kernel: down_forward.1
= control target key start
LH: loop header
LB: loop body
LE: loop exit
PB: predicated region body
PF: predicated region fallthrough
CT: control target
= control target key end

     0   :  { %v32_v0 = vlaneseq  ;;  %v11994_v19 = vmov 1.0   ;;  %vm244_vm4 = vcmask 1041409   ;;  %vm247_vm5 = vcmask 1042434   ;;  %s7818_s10 = smov 1   ;;  %s7820_s11 = smov 127   ;;  %s11984_s0 = inlined_call_operand.vmem [shape: f32[2,32,2,16], index: 0, kind: input, shape index: {}]   ;;  %s11985_s1 = inlined_call_operand.vmem [shape: f32[8,36], index: 1, kind: input, shape index: {}]   ;;  %s11986_s2 = inlined_call_operand.vmem [shape: f32[8,1], index: 2, kind: input, shape index: {}]   ;;  %s11987_s3 = inlined_call_operand.vmem [shape: f32[8,1], index: 3, kind: input, shape index: {}]   ;;  %s11988_s4 = inlined_call_operand.vmem [shape: f32[8,1], index: 4, kind: input, shape index: {}]   ;;  %s11989_s6 = inlined_call_operand.vmem [shape: f32[8,1], index: 6, kind: input, shape index: {}]   ;;  %s11990_s5 = inlined_call_operand.vmem [shape: f32[8,72], index: 5, kind: input, shape index: {}]   ;;  %s11991_s7 = inlined_call_operand.vmem [shape: f32[8,1], index: 7, kind: input, shape index: {}]   ;;  %s11992_s8 = inlined_call_operand.vmem [shape: f32[8,1], index: 8, kind: input, shape index: {}]   ;;  %s11993_s9 = inlined_call_operand.vmem [shape: f32[2,8,64], index: 9, kind: output, shape index: {}]  }
   0x1   :  { %v51_v1 = vld [vmem:[%s11984_s0] sm:$0x3]  ;;  %v52_v2 = vld [vmem:[%s11984_s0 + $0x2] sm:$0x3]  ;;  %v53_v5 = vld [vmem:[%s11984_s0 + $0x4] sm:$0x3] }
   0x2   :  { %v7896_v3 = vshrl.u32 %v32_v0, 7  ;;  %v36_v4 = vand.u32 127, %v32_v0  ;;  %v54_v6 = vld [vmem:[%s11984_s0 + $0x6] sm:$0x3]  ;;  %v55_v7 = vld [vmem:[%s11984_s0 + $0x8] sm:$0x3] }
   0x3   :  { %v56_v8 = vld [vmem:[%s11984_s0 + $0xa] sm:$0x3]  ;;  %v57_v9 = vld [vmem:[%s11984_s0 + $0xc] sm:$0x3]  ;;  %v58_v12 = vld [vmem:[%s11984_s0 + $0xe] sm:$0x3] }
   0x4   :  { %12218 = vst [vmem:[#allocation2_spill] sm:$0xff] %v7896_v3  ;;  %v7914_v10 = vadd.s32 8, %v7896_v3  ;;  %v7916_v11 = vmul.u32 2, %v36_v4  ;;  %v115_v13 = vrot.slane %v51_v1, 1  ;;  %v116_v14 = vrot.slane %v52_v2, 1  ;;  %s7821_s12 = smov 126  }
   0x5   :  { %v117_v15 = vrot.slane %v53_v5, 1  ;;  %v118_v16 = vrot.slane %v54_v6, 1  ;;  %v119_v18 = vrot.slane %v55_v7, 1  ;;  %v120_v20 = vrot.slane %v56_v8, 1  ;;  %v59_v29 = vld [vmem:[%s11984_s0 + $0x10] sm:$0x3] }
   0x6   :  { %12219 = vst [vmem:[#allocation3_spill] sm:$0xff] %v7914_v10  ;;  %vm39_vm0 = vcmp.eq.s32.totalorder %v7914_v10, %v7916_v11  ;;  %v7924_v17 = vadd.s32 1, %v7916_v11  ;;  %vm38_vm1 = vcmp.eq.s32.totalorder %v7896_v3, %v7916_v11  ;;  %v121_v21 = vrot.slane %v57_v9, 1  ;;  %v60_v34 = vld [vmem:[%s11984_s0 + $0x12] sm:$0x3]  ;;  %s7824_s13 = smov 16  }
   0x7   :  { %7679 = vmatprep.subr.msk.mxu0 %vm39_vm0, %v11994_v19  ;;  %v122_v22 = vrot.slane %v58_v12, 1  ;;  %v179_v23 = vmax.f32 %v51_v1, %v115_v13  ;;  %v180_v24 = vmax.f32 %v52_v2, %v116_v14  ;;  %v181_v25 = vmax.f32 %v53_v5, %v117_v15  ;;  %v61_v35 = vld [vmem:[%s11984_s0 + $0x14] sm:$0x3]  ;;  %v62_v36 = vld [vmem:[%s11984_s0 + $0x16] sm:$0x3]  ;;  %s7825_s14 = smov 32  }
   0x8   :  { %12220 = vst [vmem:[#allocation4_spill] sm:$0xff] %v7924_v17  ;;  %vm46_vm2 = vcmp.eq.s32.totalorder %v7914_v10, %v7924_v17  ;;  %7680 = vmatpush3.msk.msra.mxu0 %vm39_vm0, %v11994_v19  ;;  %vm45_vm3 = vcmp.eq.s32.totalorder %v7896_v3, %v7924_v17  ;;  %v182_v26 = vmax.f32 %v54_v6, %v118_v16  ;;  %vm250_vm6 = vcmask 1043459   ;;  %v63_v39 = vld [vmem:[%s11984_s0 + $0x18] sm:$0x3]  ;;  %v64_v42 = vld [vmem:[%s11984_s0 + $0x1a] sm:$0x3] }
   0x9   :  { %7689 = vmatprep.subr.msk.mxu1 %vm46_vm2, %v11994_v19  ;;  %7681 = vmatprep.subr.msk.mxu0 %vm38_vm1, %v11994_v19  ;;  %v183_v27 = vmax.f32 %v55_v7, %v119_v18  ;;  %v184_v28 = vmax.f32 %v56_v8, %v120_v20  ;;  %v185_v30 = vmax.f32 %v57_v9, %v121_v21  ;;  %v243_v32 = vrot.slane %v180_v24, 7  ;;  %v65_v46 = vld [vmem:[%s11984_s0 + $0x1c] sm:$0x3]  ;;  %v66_v48 = vld [vmem:[%s11984_s0 + $0x1e] sm:$0x3]  ;;  %s7826_s15 = smov 8  }
   0xa   :  { %7690 = vmatpush3.msk.msra.mxu1 %vm46_vm2, %v11994_v19  ;;  %7682 = vmatpush3.msk.msra.mxu0 %vm38_vm1, %v11994_v19  ;;  %v186_v31 = vmax.f32 %v58_v12, %v122_v22  ;;  %v246_v33 = vrot.slane %v181_v25, 6  ;;  %v249_v37 = vrot.slane %v182_v26, 5  ;;  %vm253_vm7 = vcmask 1044484   ;;  %v67_v62 = vld [vmem:[%s11984_s0 + $0x20] sm:$0x3]  ;;  %s7827_s16 = smov 24  }
   0xb   :  { %7691 = vmatprep.subr.msk.mxu1 %vm45_vm3, %v11994_v19  ;;  %v252_v38 = vrot.slane %v183_v27, 4  ;;  %v245_v40 = vsel %vm244_vm4, %v243_v32, %v179_v23  ;;  %v255_v41 = vrot.slane %v184_v28, 3  ;;  %vm256_vm8 = vcmask 1045509   ;;  %v68_v4 = vld [vmem:[%s11984_s0 + $0x22] sm:$0x3]  ;;  %s7828_s17 = smov 40  }
   0xc   :  { %7692 = vmatpush3.msk.msra.mxu1 %vm45_vm3, %v11994_v19  ;;  %v248_v43 = vsel %vm247_vm5, %v246_v33, %v245_v40  ;;  %v258_v44 = vrot.slane %v185_v30, 2  ;;  %vm259_vm9 = vcmask 1046534   ;;  %v261_v45 = vrot.slane %v186_v31, 1  ;;  %v69_v5 = vld [vmem:[%s11984_s0 + $0x24] sm:$0x3]  ;;  %s7829_s18 = smov 48  }
   0xd   :  { %7712 = vmatprep.subr.msk.mxu1 %vm39_vm0, %v11994_v19  ;;  %v251_v47 = vsel %vm250_vm6, %v249_v37, %v248_v43  ;;  %vm262_vm10 = vcmask 1047559   ;;  %vm306_vm11 = vcmask 130048   ;;  %v123_v49 = vrot.slane %v59_v29, 1  ;;  %v70_v6 = vld [vmem:[%s11984_s0 + $0x26] sm:$0x3]  ;;  %s7830_s19 = smov 56  }
   0xe   :  { %v254_v50 = vsel %vm253_vm7, %v252_v38, %v251_v47  ;;  %v124_v51 = vrot.slane %v60_v34, 1  ;;  %v125_v52 = vrot.slane %v61_v35, 1  ;;  %v126_v53 = vrot.slane %v62_v36, 1  ;;  %v71_v13 = vld [vmem:[%s11984_s0 + $0x28] sm:$0x3]  ;;  %s7833_s25 = smov 104  }
   0xf   :  { %v257_v54 = vsel %vm256_vm8, %v255_v41, %v254_v50  ;;  %v127_v55 = vrot.slane %v63_v39, 1  ;;  %v128_v56 = vrot.slane %v64_v42, 1  ;;  %v129_v57 = vrot.slane %v65_v46, 1  ;;  %v72_v14 = vld [vmem:[%s11984_s0 + $0x2a] sm:$0x3]  ;;  %s7834_s26 = smov 120  }
  0x10   :  { %v260_v58 = vsel %vm259_vm9, %v258_v44, %v257_v54  ;;  %v130_v59 = vrot.slane %v66_v48, 1  ;;  %v187_v60 = vmax.f32 %v59_v29, %v123_v49  ;;  %v188_v61 = vmax.f32 %v60_v34, %v124_v51  ;;  %v73_v20 = vld [vmem:[%s11984_s0 + $0x2c] sm:$0x3]  ;;  %v74_v26 = vld [vmem:[%s11984_s0 + $0x2e] sm:$0x3]  ;;  %s7836_s27 = smov 112  }
  0x11   :  { %v263_v63 = vsel %vm262_vm10, %v261_v45, %v260_v58  ;;  %v189_v0 = vmax.f32 %v61_v35, %v125_v52  ;;  %v190_v1 = vmax.f32 %v62_v36, %v126_v53  ;;  %v191_v2 = vmax.f32 %v63_v39, %v127_v55  ;;  %v75_v43 = vld [vmem:[%s11984_s0 + $0x30] sm:$0x3]  ;;  %v76_v44 = vld [vmem:[%s11984_s0 + $0x32] sm:$0x3]  ;;  %v77_v45 = vld [vmem:[%s11984_s0 + $0x34] sm:$0x3] }
  0x12   :  { %7683 = vmatprep.mubr.msk.f32.mxu0 %vm306_vm11, %v263_v63  ;;  %7693 = vmatprep.mubr.msk.f32.mxu1 %vm306_vm11, %v263_v63  ;;  %v192_v7 = vmax.f32 %v64_v42, %v128_v56  ;;  %v193_v8 = vmax.f32 %v65_v46, %v129_v57  ;;  %v194_v9 = vmax.f32 %v66_v48, %v130_v59  ;;  %v264_v12 = vrot.slane %v188_v61, 7  ;;  %v78_v50 = vld [vmem:[%s11984_s0 + $0x36] sm:$0x3]  ;;  %v79_v51 = vld [vmem:[%s11984_s0 + $0x38] sm:$0x3]  ;;  %s7838_s28 = smov 96  }
  0x13   :  { %v266_v15 = vrot.slane %v189_v0, 6  ;;  %v268_v16 = vrot.slane %v190_v1, 5  ;;  %v270_v18 = vrot.slane %v191_v2, 4  ;;  %v131_v21 = vrot.slane %v67_v62, 1  ;;  %v80_v52 = vld [vmem:[%s11984_s0 + $0x3a] sm:$0x3] }
  0x14   :  { %v265_v22 = vsel %vm244_vm4, %v264_v12, %v187_v60  ;;  %v272_v23 = vrot.slane %v192_v7, 3  ;;  %v274_v24 = vrot.slane %v193_v8, 2  ;;  %v276_v25 = vrot.slane %v194_v9, 1  ;;  %v81_v57 = vld [vmem:[%s11984_s0 + $0x3c] sm:$0x3] }
  0x15   :  { %v267_v27 = vsel %vm247_vm5, %v266_v15, %v265_v22  ;;  %v132_v28 = vrot.slane %v68_v4, 1  ;;  %v133_v29 = vrot.slane %v69_v5, 1  ;;  %v134_v30 = vrot.slane %v70_v6, 1 }
  0x16   :  { %v269_v31 = vsel %vm250_vm6, %v268_v16, %v267_v27  ;;  %v135_v32 = vrot.slane %v71_v13, 1  ;;  %v136_v33 = vrot.slane %v72_v14, 1  ;;  %v137_v34 = vrot.slane %v73_v20, 1 }
  0x17   :  { %v271_v35 = vsel %vm253_vm7, %v270_v18, %v269_v31  ;;  %v138_v36 = vrot.slane %v74_v26, 1  ;;  %v195_v37 = vmax.f32 %v67_v62, %v131_v21  ;;  %v196_v38 = vmax.f32 %v68_v4, %v132_v28  ;;  %v82_v62 = vld [vmem:[%s11984_s0 + $0x3e] sm:$0x3] }
  0x18   :  { %v273_v39 = vsel %vm256_vm8, %v272_v23, %v271_v35  ;;  %v197_v40 = vmax.f32 %v69_v5, %v133_v29  ;;  %v198_v41 = vmax.f32 %v70_v6, %v134_v30  ;;  %v199_v42 = vmax.f32 %v71_v13, %v135_v32 }
  0x19   :  { %v275_v46 = vsel %vm259_vm9, %v274_v24, %v273_v39  ;;  %v200_v47 = vmax.f32 %v72_v14, %v136_v33  ;;  %v201_v48 = vmax.f32 %v73_v20, %v137_v34  ;;  %v202_v49 = vmax.f32 %v74_v26, %v138_v36 }
  0x1a   :  { %v277_v53 = vsel %vm262_vm10, %v276_v25, %v275_v46  ;;  %v278_v54 = vrot.slane %v196_v38, 7  ;;  %v280_v55 = vrot.slane %v197_v40, 6  ;;  %v282_v56 = vrot.slane %v198_v41, 5 }
  0x1b   :  { %7684 = vmatmul.mubr.msk.f32.vlgmr.msra.gmra.mxu0 %vm306_vm11, %v277_v53  ;;  %7694 = vmatmul.mubr.msk.f32.vlgmr.msra.gmra.mxu1 %vm306_vm11, %v277_v53  ;;  %v284_v58 = vrot.slane %v199_v42, 4  ;;  %v286_v59 = vrot.slane %v200_v47, 3  ;;  %v288_v60 = vrot.slane %v201_v48, 2  ;;  %v290_v61 = vrot.slane %v202_v49, 1 }
  0x1c   :  { %v279_v63 = vsel %vm244_vm4, %v278_v54, %v195_v37  ;;  %v139_v0 = vrot.slane %v75_v43, 1  ;;  %v140_v1 = vrot.slane %v76_v44, 1  ;;  %v141_v2 = vrot.slane %v77_v45, 1  ;;  %7713 = vmatpush3.msk.msra.mxu1 %vm39_vm0, %v11994_v19 }
  0x1d   :  { %v281_v4 = vsel %vm247_vm5, %v280_v55, %v279_v63  ;;  %v142_v5 = vrot.slane %v78_v50, 1  ;;  %v143_v6 = vrot.slane %v79_v51, 1  ;;  %v144_v7 = vrot.slane %v80_v52, 1  ;;  %7714 = vmatprep.subr.msk.mxu1 %vm38_vm1, %v11994_v19 }
  0x1e   :  { %v283_v8 = vsel %vm250_vm6, %v282_v56, %v281_v4  ;;  %v145_v9 = vrot.slane %v81_v57, 1  ;;  %v146_v12 = vrot.slane %v82_v62, 1  ;;  %v203_v13 = vmax.f32 %v75_v43, %v139_v0  ;;  %7715 = vmatpush3.msk.msra.mxu1 %vm38_vm1, %v11994_v19 }
  0x1f   :  { %v285_v14 = vsel %vm253_vm7, %v284_v58, %v283_v8  ;;  %v204_v15 = vmax.f32 %v76_v44, %v140_v1  ;;  %v205_v16 = vmax.f32 %v77_v45, %v141_v2  ;;  %v206_v18 = vmax.f32 %v78_v50, %v142_v5 }
  0x20   :  { %v287_v20 = vsel %vm256_vm8, %v286_v59, %v285_v14  ;;  %v207_v21 = vmax.f32 %v79_v51, %v143_v6  ;;  %v208_v22 = vmax.f32 %v80_v52, %v144_v7  ;;  %v209_v23 = vmax.f32 %v81_v57, %v145_v9 }
  0x21   :  { %v289_v24 = vsel %vm259_vm9, %v288_v60, %v287_v20  ;;  %v210_v25 = vmax.f32 %v82_v62, %v146_v12  ;;  %v292_v26 = vrot.slane %v204_v15, 7  ;;  %v294_v27 = vrot.slane %v205_v16, 6 }
  0x22   :  { %v291_v28 = vsel %vm262_vm10, %v290_v61, %v289_v24  ;;  %v296_v29 = vrot.slane %v206_v18, 5  ;;  %v298_v11 = vrot.slane %v207_v21, 4  ;;  %v300_v31 = vrot.slane %v208_v22, 3 }
  0x23   :  { %7686 = vmatprep.mubr.msk.f32.mxu0 %vm306_vm11, %v291_v28  ;;  %7696 = vmatprep.mubr.msk.f32.mxu1 %vm306_vm11, %v291_v28  ;;  %v293_v30 = vsel %vm244_vm4, %v292_v26, %v203_v13  ;;  %v302_v33 = vrot.slane %v209_v23, 2  ;;  %v304_v35 = vrot.slane %v210_v25, 1  ;;  %v11996_v52 = vmov 0.0  }
  0x24   :  { %v295_v32 = vsel %vm247_vm5, %v294_v27, %v293_v30  ;;  %7699 = vmatprep.subr.mxu0 %v11996_v52  ;;  %7732 = vmatprep.subr.mxu1 %v11996_v52  ;;  %vm505_vm12 = vcmask 7168   ;;  %vm510_vm13 = vcmask 72704   ;;  %vm527_vm14 = vcmask 1040384  }
  0x25   :  { %v297_v34 = vsel %vm250_vm6, %v296_v29, %v295_v32  ;;  %vm1233_vm15 = vcmask 1045504   ;;  %vm12015_vm0 = vcmask 1046528   ;;  %v7822_v24 = vmov 1983009808  }
  0x26   :  { %v299_v36 = vsel %vm253_vm7, %v298_v11, %v297_v34  ;;  %v539_v25 = vunpack.c.l.s4 %v7822_v24  ;;  %vm7831_vm1 = vmmov 0  }
  0x27   :  { %v301_v37 = vsel %vm256_vm8, %v300_v31, %v299_v36 }
  0x28   :  { %v303_v38 = vsel %vm259_vm9, %v302_v33, %v301_v37  ;;  %v540_v29 = vunpack.c.0.s8 %v539_v25 }
  0x29   :  { %v305_v39 = vsel %vm262_vm10, %v304_v35, %v303_v38 }
  0x2a   :  { %7687 = vmatmul.mubr.msk.f32.gmra.mxu0 %vm306_vm11, %v305_v39  ;;  %7697 = vmatmul.mubr.msk.f32.gmra.mxu1 %vm306_vm11, %v305_v39  ;;  %v8156_v32 = vsub.s32 %v540_v29, %v7896_v3 }
  0x2b   :  { %7709 = vmatprep.mubr.msk.f32.mxu0 %vm7831_vm1, %v11996_v52 }
  0x2c   :  { %12221 = vst [vmem:[#allocation5_spill] sm:$0xff] %v8156_v32 }
  0xdb   :  { %v7685_v40 = vpop.f32.mrf.mxu0  ;;  %v7695_v41 = vpop.f32.mrf.mxu1 }
  0xdc   :  { %v486_v42 = vmax.f32 %v7685_v40, %v7695_v41 }
  0xdd   :  { %v381_v43 = vpop.f32.mrf.mxu0  ;;  %v466_v44 = vpop.f32.mrf.mxu1 }
  0xde   :  { %495 = vrot.lane.b32.xlu0 %v486_v42, %s7818_s10  ;;  %v485_v45 = vmax.f32 %v381_v43, %v466_v44  ;;  %v7823_v43 = vmov 1934713408  }
  0xdf   :  { %v571_v44 = vunpack.c.l.s4 %v7823_v43 }
  0xe2   :  { %493 = vrot.lane.b32.xlu0 %v485_v45, %s7818_s10 }
  0xea   :  { %v7688_v46 = vpop.f32.mrf.mxu0  ;;  %v7698_v47 = vpop.f32.mrf.mxu1 }
  0xeb   :  { %v488_v48 = vmax.f32 %v7688_v46, %v7698_v47 }
  0xec   :  { %v391_v49 = vpop.f32.mrf.mxu0  ;;  %v476_v50 = vpop.f32.mrf.mxu1 }
  0xed   :  { %499 = vrot.lane.b32.xlu1 %v488_v48, %s7818_s10  ;;  %v487_v51 = vmax.f32 %v391_v49, %v476_v50 }
  0xf1   :  { %497 = vrot.lane.b32.xlu1 %v487_v51, %s7818_s10 }
 0x150   :  { %v496_v53 = vpop.permute.xlu0 %495 }
 0x151   :  { %v507_v54 = vsel %vm505_vm12, 0.0, %v496_v53  ;;  %v572_v53 = vunpack.c.0.s8 %v571_v44 }
 0x152   :  { %v512_v55 = vsel %vm510_vm13, %v507_v54, 0.0 }
 0x153   :  { %v520_v56 = vrot.slane %v512_v55, 7 }
 0x154   :  { %v494_v57 = vpop.permute.xlu0 %493 }
 0x155   :  { %v8097_v58 = vsel %vm527_vm14, 0.0, %v520_v56  ;;  %v506_v59 = vsel %vm505_vm12, 0.0, %v494_v57  ;;  %v533_v60 = vsel %vm527_vm14, %v520_v56, 0.0 }
 0x156   :  { %v511_v61 = vsel %vm510_vm13, %v506_v59, 0.0  ;;  %651 = vrot.lane.b32.xlu1 %v8097_v58, %s7820_s11  ;;  %v1238_v63 = vrot.slane %v533_v60, 2  ;;  %v1237_v1 = vrot.slane %v8097_v58, 2  ;;  %v888_v8 = vrot.slane %v533_v60, 1 }
 0x157   :  { %v519_v62 = vrot.slane %v511_v61, 7  ;;  %v887_v9 = vrot.slane %v8097_v58, 1  ;;  %v8189_v59 = vsub.s32 %v572_v53, %v7896_v3 }
 0x158   :  { %v8114_v5 = vsel %vm1233_vm15, %v1237_v1, %v1238_v63 }
 0x159   :  { %v8105_v0 = vsel %vm527_vm14, 0.0, %v519_v62  ;;  %v532_v2 = vsel %vm527_vm14, %v519_v62, 0.0  ;;  %v8132_v16 = vsel %vm12015_vm0, %v887_v9, %v888_v8  ;;  %12222 = vst [vmem:[#allocation6_spill] sm:$0xff] %v8189_v59 }
 0x15a   :  { %649 = vrot.lane.b32.xlu0 %v8105_v0, %s7820_s11  ;;  %766 = vrot.lane.b32.xlu1 %v8097_v58, %s7821_s12  ;;  %v1235_v4 = vrot.slane %v532_v2, 2  ;;  %v1234_v6 = vrot.slane %v8105_v0, 2  ;;  %v885_v18 = vrot.slane %v532_v2, 1  ;;  %v884_v22 = vrot.slane %v8105_v0, 1 }
 0x15c   :  { %v8123_v12 = vsel %vm1233_vm15, %v1234_v6, %v1235_v4  ;;  %v8142_v27 = vsel %vm12015_vm0, %v884_v22, %v885_v18 }
 0x15e   :  { %764 = vrot.lane.b32.xlu0 %v8105_v0, %s7821_s12  ;;  %1355 = vrot.lane.b32.xlu1 %v8114_v5, %s7820_s11 }
 0x15f   :  { %v500_v7 = vpop.permute.xlu1 %499 }
 0x160   :  { %v509_v13 = vsel %vm505_vm12, 0.0, %v500_v7 }
 0x161   :  { %v514_v20 = vsel %vm510_vm13, %v509_v13, 0.0 }
 0x162   :  { %1353 = vrot.lane.b32.xlu0 %v8123_v12, %s7820_s11  ;;  %1470 = vrot.lane.b32.xlu1 %v8114_v5, %s7821_s12  ;;  %v522_v26 = vrot.slane %v514_v20, 7 }
 0x163   :  { %v498_v14 = vpop.permute.xlu1 %497 }
 0x164   :  { %v508_v15 = vsel %vm505_vm12, 0.0, %v498_v14  ;;  %v531_v11 = vsel %vm527_vm14, 0.0, %v522_v26  ;;  %v535_v31 = vsel %vm527_vm14, %v522_v26, 0.0 }
 0x165   :  { %v513_v21 = vsel %vm510_vm13, %v508_v15, 0.0  ;;  %v553_v33 = vcombine.high %v8097_v58, %v531_v11  ;;  %v1244_v34 = vrot.slane %v535_v31, 2  ;;  %v1243_v35 = vrot.slane %v531_v11, 2 }
 0x166   :  { %v521_v23 = vrot.slane %v513_v21, 7  ;;  %1468 = vrot.lane.b32.xlu0 %v8123_v12, %s7821_s12  ;;  %1120 = vrot.lane.b32.xlu1 %v8132_v16, %s7821_s12  ;;  %v894_v45 = vrot.slane %v535_v31, 1  ;;  %v893_v49 = vrot.slane %v531_v11, 1  ;;  %v552_v51 = vcombine.low %v8097_v58, %v531_v11 }
 0x167   :  { %v8166_v38 = vrot.slane %v553_v33, %v8156_v32  ;;  %v8169_v40 = vsel %vm1233_vm15, %v1243_v35, %v1244_v34 }
 0x168   :  { %v530_v28 = vsel %vm527_vm14, 0.0, %v521_v23  ;;  %v534_v37 = vsel %vm527_vm14, %v521_v23, 0.0  ;;  %v895_v55 = vsel %vm12015_vm0, %v893_v49, %v894_v45  ;;  %v560_v57 = vrot.slane %v552_v51, %v8156_v32 }
 0x169   :  { %v537_v30 = vcombine.high %v8105_v0, %v530_v28  ;;  %v1241_v39 = vrot.slane %v534_v37, 2  ;;  %v1240_v41 = vrot.slane %v530_v28, 2  ;;  %v536_v46 = vcombine.low %v8105_v0, %v530_v28 }
 0x16a   :  { %1118 = vrot.lane.b32.xlu0 %v8142_v27, %s7821_s12  ;;  %1005 = vrot.lane.b32.xlu1 %v8132_v16, %s7820_s11  ;;  %v891_v47 = vrot.slane %v534_v37, 1  ;;  %v890_v50 = vrot.slane %v530_v28, 1  ;;  %v916_v62 = vcombine.low %v8132_v16, %v895_v55  ;;  %v917_v6 = vcombine.high %v8132_v16, %v895_v55 }
 0x16b   :  { %v8160_v36 = vrot.slane %v537_v30, %v8156_v32  ;;  %v1242_v48 = vsel %vm1233_vm15, %v1240_v41, %v1241_v39  ;;  %v544_v54 = vrot.slane %v536_v46, %v8156_v32  ;;  %v1266_v16 = vcombine.low %v8114_v5, %v8169_v40 }
 0x16c   :  { %v892_v56 = vsel %vm12015_vm0, %v890_v50, %v891_v47  ;;  %v924_v7 = vrot.slane %v916_v62, %v8156_v32  ;;  %v1250_v8 = vcombine.low %v8123_v12, %v1242_v48  ;;  %v931_v18 = vrot.slane %v917_v6, %v8156_v32 }
 0x16d   :  { %v585_v42 = vcombine.high %v8160_v36, %v8166_v38  ;;  %v900_v60 = vcombine.low %v8142_v27, %v892_v56  ;;  %v569_v61 = vcombine.high %v544_v54, %v560_v57  ;;  %v568_v58 = vcombine.low %v544_v54, %v560_v57 }
 0x16e   :  { %1003 = vrot.lane.b32.xlu0 %v8142_v27, %s7820_s11  ;;  %655 = vrot.lane.b32.xlu1 %v531_v11, %s7820_s11  ;;  %v901_v63 = vcombine.high %v8142_v27, %v892_v56  ;;  %v584_v1 = vcombine.low %v8160_v36, %v8166_v38  ;;  %v1251_v20 = vcombine.high %v8123_v12, %v1242_v48  ;;  %v7576_v36 = vld [vmem:[%s11984_s0 + $0x44] sm:$0x3]  ;;  %v7577_v38 = vld [vmem:[%s11984_s0 + $0x46] sm:$0x3] }
 0x16f   :  { %v583_v0 = vrot.slane %v569_v61, %v8189_v59  ;;  %v8200_v2 = vrot.slane %v568_v58, %v8189_v59  ;;  %v908_v4 = vrot.slane %v900_v60, %v8156_v32  ;;  %v1258_v21 = vrot.slane %v1250_v8, %v8156_v32 }
 0x170   :  { %v592_v9 = vrot.slane %v584_v1, %v8189_v59  ;;  %v915_v15 = vrot.slane %v901_v63, %v8156_v32  ;;  %v1267_v26 = vcombine.high %v8114_v5, %v8169_v40  ;;  %v1274_v27 = vrot.slane %v1266_v16, %v8156_v32 }
 0x171   :  { %v600_v13 = vcombine.high %v8200_v2, %v11996_v52  ;;  %v933_v14 = vcombine.high %v908_v4, %v924_v7  ;;  %v601_v23 = vcombine.high %v583_v0, %v11996_v52  ;;  %v932_v25 = vcombine.low %v908_v4, %v924_v7 }
 0x172   :  { %770 = vrot.lane.b32.xlu1 %v531_v11, %s7821_s12  ;;  %653 = vrot.lane.b32.xlu0 %v530_v28, %s7820_s11  ;;  %v948_v24 = vcombine.low %v915_v15, %v931_v18  ;;  %v1265_v12 = vrot.slane %v1251_v20, %v8156_v32  ;;  %v602_v29 = vcombine.high %v592_v9, %v11996_v52 }
 0x173   :  { %v947_v22 = vrot.slane %v933_v14, %v8189_v59  ;;  %v8230_v11 = vrot.slane %v932_v25, %v8189_v59  ;;  %v1283_v30 = vcombine.high %v1258_v21, %v1274_v27  ;;  %v1281_v5 = vrot.slane %v1267_v26, %v8156_v32 }
 0x174   :  { %v1282_v45 = vcombine.low %v1258_v21, %v1274_v27 }
 0x175   :  { %v964_v31 = vcombine.high %v8230_v11, %v11996_v52  ;;  %v1297_v33 = vrot.slane %v1283_v30, %v8189_v59  ;;  %v1298_v34 = vcombine.low %v1265_v12, %v1281_v5  ;;  %v965_v35 = vcombine.high %v947_v22, %v11996_v52 }
 0x176   :  { %1359 = vrot.lane.b32.xlu1 %v8169_v40, %s7820_s11  ;;  %768 = vrot.lane.b32.xlu0 %v530_v28, %s7821_s12  ;;  %v956_v28 = vrot.slane %v948_v24, %v8189_v59  ;;  %v1299_v39 = vcombine.high %v1265_v12, %v1281_v5  ;;  %v8251_v47 = vrot.slane %v1282_v45, %v8189_v59 }
 0x177   :  { %v1306_v37 = vrot.slane %v1298_v34, %v8189_v59  ;;  %v1315_v49 = vcombine.high %v1297_v33, %v11996_v52 }
 0x178   :  { %v966_v41 = vcombine.high %v956_v28, %v11996_v52  ;;  %v1313_v43 = vrot.slane %v1299_v39, %v8189_v59 }
 0x179   :  { %v1316_v50 = vcombine.high %v1306_v37, %v11996_v52 }
 0x17a   :  { %1474 = vrot.lane.b32.xlu1 %v8169_v40, %s7821_s12  ;;  %1357 = vrot.lane.b32.xlu0 %v1242_v48, %s7820_s11  ;;  %v949_v40 = vcombine.high %v915_v15, %v931_v18  ;;  %v1317_v51 = vcombine.high %v1313_v43, %v11996_v52 }
 0x17c   :  { %v963_v44 = vrot.slane %v949_v40, %v8189_v59 }
 0x17e   :  { %1124 = vrot.lane.b32.xlu1 %v895_v55, %s7821_s12  ;;  %1472 = vrot.lane.b32.xlu0 %v1242_v48, %s7821_s12  ;;  %v967_v46 = vcombine.high %v963_v44, %v11996_v52  ;;  %v1314_v48 = vcombine.high %v8251_v47, %v11996_v52 }
 0x182   :  { %1009 = vrot.lane.b32.xlu1 %v895_v55, %s7820_s11  ;;  %1122 = vrot.lane.b32.xlu0 %v892_v56, %s7821_s12 }
 0x186   :  { %1007 = vrot.lane.b32.xlu0 %v892_v56, %s7820_s11  ;;  %609 = vrot.lane.b32.xlu1 %v583_v0, %s7824_s13 }
 0x18a   :  { %617 = vrot.lane.b32.xlu1 %v592_v9, %s7825_s14  ;;  %605 = vrot.lane.b32.xlu0 %v600_v13, %s7826_s15 }
 0x18e   :  { %973 = vrot.lane.b32.xlu1 %v947_v22, %s7824_s13  ;;  %613 = vrot.lane.b32.xlu0 %v601_v23, %s7827_s16 }
 0x192   :  { %981 = vrot.lane.b32.xlu1 %v956_v28, %s7825_s14  ;;  %621 = vrot.lane.b32.xlu0 %v602_v29, %s7828_s17 }
 0x196   :  { %969 = vrot.lane.b32.xlu1 %v964_v31, %s7826_s15  ;;  %1323 = vrot.lane.b32.xlu0 %v1297_v33, %s7824_s13 }
 0x19a   :  { %977 = vrot.lane.b32.xlu1 %v965_v35, %s7827_s16  ;;  %1331 = vrot.lane.b32.xlu0 %v1306_v37, %s7825_s14 }
 0x19e   :  { %985 = vrot.lane.b32.xlu1 %v966_v41, %s7828_s17  ;;  %1339 = vrot.lane.b32.xlu0 %v1313_v43, %s7829_s18 }
 0x1a2   :  { %993 = vrot.lane.b32.xlu1 %v967_v46, %s7830_s19  ;;  %989 = vrot.lane.b32.xlu0 %v963_v44, %s7829_s18 }
 0x1a6   :  { %1319 = vrot.lane.b32.xlu0 %v1314_v48, %s7826_s15 }
 0x1aa   :  { %1327 = vrot.lane.b32.xlu0 %v1315_v49, %s7827_s16 }
 0x1ae   :  { %1335 = vrot.lane.b32.xlu0 %v1316_v50, %s7828_s17 }
 0x1b2   :  { %1343 = vrot.lane.b32.xlu0 %v1317_v51, %s7830_s19 }
 0x1c8   :  { %v652_v53 = vpop.permute.xlu1 %651 }
 0x1cc   :  { %v650_v54 = vpop.permute.xlu0 %649  ;;  %v767_v55 = vpop.permute.xlu1 %766 }
 0x1d0   :  { %v765_v56 = vpop.permute.xlu0 %764  ;;  %v8264_v57 = vpop.permute.xlu1 %1355 }
 0x1d4   :  { %v8266_v60 = vpop.permute.xlu0 %1353  ;;  %v8268_v61 = vpop.permute.xlu1 %1470 }
 0x1d8   :  { %v8270_v58 = vpop.permute.xlu0 %1468  ;;  %v8272_v62 = vpop.permute.xlu1 %1120 }
 0x1dc   :  { %v8274_v63 = vpop.permute.xlu0 %1118  ;;  %v8276_v0 = vpop.permute.xlu1 %1005 }
 0x1e0   :  { %v8278_v1 = vpop.permute.xlu0 %1003  ;;  %v656_v4 = vpop.permute.xlu1 %655 }
 0x1e1   :  { %v677_v6 = vcombine.low %v652_v53, %v656_v4  ;;  %v678_v23 = vcombine.high %v652_v53, %v656_v4 }
 0x1e3   :  { %v685_v14 = vrot.slane %v677_v6, %v8156_v32  ;;  %v692_v5 = vrot.slane %v678_v23, %v8156_v32 }
 0x1e4   :  { %v654_v7 = vpop.permute.xlu0 %653  ;;  %v771_v9 = vpop.permute.xlu1 %770 }
 0x1e5   :  { %v661_v8 = vcombine.low %v650_v54, %v654_v7  ;;  %v662_v15 = vcombine.high %v650_v54, %v654_v7  ;;  %v792_v16 = vcombine.low %v767_v55, %v771_v9  ;;  %v793_v18 = vcombine.high %v767_v55, %v771_v9 }
 0x1e7   :  { %v669_v13 = vrot.slane %v661_v8, %v8156_v32  ;;  %v676_v27 = vrot.slane %v662_v15, %v8156_v32  ;;  %v800_v12 = vrot.slane %v792_v16, %v8156_v32  ;;  %v807_v28 = vrot.slane %v793_v18, %v8156_v32 }
 0x1e8   :  { %v769_v20 = vpop.permute.xlu0 %768  ;;  %v1360_v35 = vpop.permute.xlu1 %1359 }
 0x1e9   :  { %v776_v21 = vcombine.low %v765_v56, %v769_v20  ;;  %v777_v22 = vcombine.high %v765_v56, %v769_v20  ;;  %v694_v24 = vcombine.high %v669_v13, %v685_v14  ;;  %v693_v34 = vcombine.low %v669_v13, %v685_v14 }
 0x1ea   :  { %v709_v41 = vcombine.low %v676_v27, %v692_v5  ;;  %v710_v44 = vcombine.high %v676_v27, %v692_v5  ;;  %v1381_v4 = vcombine.low %v8264_v57, %v1360_v35 }
 0x1eb   :  { %v784_v25 = vrot.slane %v776_v21, %v8156_v32  ;;  %v791_v26 = vrot.slane %v777_v22, %v8156_v32  ;;  %v708_v29 = vrot.slane %v694_v24, %v8189_v59  ;;  %v8299_v49 = vrot.slane %v693_v34, %v8189_v59 }
 0x1ec   :  { %v1358_v30 = vpop.permute.xlu0 %1357  ;;  %v717_v48 = vrot.slane %v709_v41, %v8189_v59  ;;  %v1475_v50 = vpop.permute.xlu1 %1474  ;;  %v8308_v54 = vrot.slane %v710_v44, %v8189_v59  ;;  %v8326_v15 = vrot.slane %v1381_v4, %v8156_v32 }
 0x1ed   :  { %734 = vrot.lane.b32.xlu1 %v708_v29, %s7824_s13  ;;  %v824_v31 = vcombine.low %v791_v26, %v807_v28  ;;  %v809_v33 = vcombine.high %v784_v25, %v800_v12  ;;  %v825_v40 = vcombine.high %v791_v26, %v807_v28  ;;  %v808_v45 = vcombine.low %v784_v25, %v800_v12 }
 0x1ee   :  { %v1365_v51 = vcombine.low %v8266_v60, %v1358_v30  ;;  %v725_v53 = vcombine.high %v8299_v49, %v11996_v52  ;;  %v726_v13 = vcombine.high %v708_v29, %v11996_v52  ;;  %v1496_v16 = vcombine.low %v8268_v61, %v1475_v50 }
 0x1ef   :  { %v832_v37 = vrot.slane %v824_v31, %v8189_v59  ;;  %v823_v39 = vrot.slane %v809_v33, %v8189_v59  ;;  %v8295_v46 = vrot.slane %v825_v40, %v8189_v59  ;;  %v8311_v55 = vrot.slane %v808_v45, %v8189_v59 }
 0x1f0   :  { %v1473_v43 = vpop.permute.xlu0 %1472  ;;  %v1125_v7 = vpop.permute.xlu1 %1124  ;;  %v8319_v8 = vrot.slane %v1365_v51, %v8156_v32  ;;  %v1366_v20 = vcombine.high %v8266_v60, %v1358_v30  ;;  %v727_v24 = vcombine.high %v717_v48, %v11996_v52  ;;  %v1497_v27 = vcombine.high %v8268_v61, %v1475_v50 }
 0x1f1   :  { %857 = vrot.lane.b32.xlu1 %v832_v37, %s7825_s14  ;;  %849 = vrot.lane.b32.xlu0 %v823_v39, %s7824_s13  ;;  %v1480_v6 = vcombine.low %v8270_v58, %v1473_v43  ;;  %v840_v14 = vcombine.high %v8311_v55, %v11996_v52  ;;  %v1146_v18 = vcombine.low %v8272_v62, %v1125_v7 }
 0x1f2   :  { %v1481_v21 = vcombine.high %v8270_v58, %v1473_v43  ;;  %v841_v25 = vcombine.high %v823_v39, %v11996_v52  ;;  %v1398_v26 = vcombine.high %v8319_v8, %v8326_v15  ;;  %v1382_v60 = vcombine.high %v8264_v57, %v1360_v35 }
 0x1f3   :  { %v8335_v22 = vrot.slane %v1480_v6, %v8156_v32  ;;  %v8347_v58 = vrot.slane %v1496_v16, %v8156_v32  ;;  %v1154_v28 = vrot.slane %v1146_v18, %v8156_v32  ;;  %v1380_v29 = vrot.slane %v1366_v20, %v8156_v32 }
 0x1f4   :  { %v1123_v56 = vpop.permute.xlu0 %1122  ;;  %v1495_v30 = vrot.slane %v1481_v21, %v8156_v32  ;;  %v1010_v31 = vpop.permute.xlu1 %1009  ;;  %v842_v61 = vcombine.high %v832_v37, %v11996_v52  ;;  %v1412_v33 = vrot.slane %v1398_v26, %v8189_v59  ;;  %v1511_v39 = vrot.slane %v1497_v27, %v8156_v32 }
 0x1f5   :  { %865 = vrot.lane.b32.xlu1 %v8295_v46, %s7829_s18  ;;  %742 = vrot.lane.b32.xlu0 %v717_v48, %s7825_s14  ;;  %v1130_v9 = vcombine.low %v8274_v63, %v1123_v56  ;;  %v1131_v5 = vcombine.high %v8274_v63, %v1123_v56  ;;  %v1513_v34 = vcombine.high %v8335_v22, %v8347_v58 }
 0x1f6   :  { %v1396_v40 = vrot.slane %v1382_v60, %v8156_v32  ;;  %v1147_v41 = vcombine.high %v8272_v62, %v1125_v7  ;;  %v1031_v63 = vcombine.low %v8276_v0, %v1010_v31  ;;  %v1528_v43 = vcombine.low %v1495_v30, %v1511_v39 }
 0x1f7   :  { %v8338_v23 = vrot.slane %v1130_v9, %v8156_v32  ;;  %v1145_v37 = vrot.slane %v1131_v5, %v8156_v32  ;;  %v1527_v45 = vrot.slane %v1513_v34, %v8189_v59  ;;  %v1032_v9 = vcombine.high %v8276_v0, %v1010_v31 }
 0x1f8   :  { %v1008_v12 = vpop.permute.xlu0 %1007  ;;  %v1413_v50 = vcombine.low %v1380_v29, %v1396_v40  ;;  %v1161_v51 = vrot.slane %v1147_v41, %v8156_v32  ;;  %v1039_v62 = vrot.slane %v1031_v63, %v8156_v32  ;;  %v1536_v56 = vrot.slane %v1528_v43, %v8189_v59 }
 0x1f9   :  { %730 = vrot.lane.b32.xlu1 %v725_v53, %s7826_s15  ;;  %750 = vrot.lane.b32.xlu0 %v8308_v54, %s7829_s18  ;;  %v1015_v57 = vcombine.low %v8278_v1, %v1008_v12  ;;  %v1163_v35 = vcombine.high %v8338_v23, %v1154_v28  ;;  %v1016_v53 = vcombine.high %v8278_v1, %v1008_v12 }
 0x1fa   :  { %v1421_v4 = vrot.slane %v1413_v50, %v8189_v59  ;;  %v1178_v6 = vcombine.low %v1145_v37, %v1161_v51  ;;  %v1414_v18 = vcombine.high %v1380_v29, %v1396_v40  ;;  %v1529_v1 = vcombine.high %v1495_v30, %v1511_v39 }
 0x1fb   :  { %v1023_v44 = vrot.slane %v1015_v57, %v8156_v32  ;;  %v1177_v48 = vrot.slane %v1163_v35, %v8189_v59  ;;  %v1046_v20 = vrot.slane %v1032_v9, %v8156_v32  ;;  %v1397_v0 = vcombine.low %v8319_v8, %v8326_v15 }
 0x1fc   :  { %v1428_v21 = vrot.slane %v1414_v18, %v8189_v59  ;;  %v1512_v27 = vcombine.low %v8335_v22, %v8347_v58  ;;  %v1162_v12 = vcombine.low %v8338_v23, %v1154_v28  ;;  %v1430_v57 = vcombine.high %v1412_v33, %v11996_v52 }
 0x1fd   :  { %738 = vrot.lane.b32.xlu1 %v726_v13, %s7827_s16  ;;  %845 = vrot.lane.b32.xlu0 %v840_v14, %s7826_s15  ;;  %v1048_v7 = vcombine.high %v1023_v44, %v1039_v62  ;;  %v1030_v13 = vrot.slane %v1016_v53, %v8156_v32  ;;  %v1186_v14 = vrot.slane %v1178_v6, %v8189_v59 }
 0x1fe   :  { %v8399_v15 = vrot.slane %v1397_v0, %v8189_v59  ;;  %v8407_v22 = vrot.slane %v1162_v12, %v8189_v59  ;;  %v8410_v23 = vrot.slane %v1512_v27, %v8189_v59  ;;  %v1047_v58 = vcombine.low %v1023_v44, %v1039_v62  ;;  %v7581_v0 = vld [vmem:[%s11984_s0 + $0x4e] sm:$0x3] }
 0x1ff   :  { %v1062_v16 = vrot.slane %v1048_v7, %v8189_v59  ;;  %v1063_v26 = vcombine.low %v1030_v13, %v1046_v20  ;;  %v1064_v8 = vcombine.high %v1030_v13, %v1046_v20  ;;  %v1545_v34 = vcombine.high %v1527_v45, %v11996_v52  ;;  %v7574_v13 = vld [vmem:[%s11984_s0 + $0x40] sm:$0x3]  ;;  %v7580_v20 = vld [vmem:[%s11984_s0 + $0x4c] sm:$0x3] }
 0x200   :  { %v1429_v5 = vcombine.high %v8399_v15, %v11996_v52  ;;  %v1194_v28 = vcombine.high %v8407_v22, %v11996_v52  ;;  %v1544_v31 = vcombine.high %v8410_v23, %v11996_v52  ;;  %v8425_v35 = vrot.slane %v1047_v58, %v8189_v59 }
 0x201   :  { %746 = vrot.lane.b32.xlu1 %v727_v24, %s7828_s17  ;;  %853 = vrot.lane.b32.xlu0 %v841_v25, %s7827_s16  ;;  %v1543_v24 = vrot.slane %v1529_v1, %v8189_v59  ;;  %v1179_v25 = vcombine.high %v1145_v37, %v1161_v51  ;;  %v1071_v29 = vrot.slane %v1063_v26, %v8189_v59  ;;  %v7579_v1 = vld [vmem:[%s11984_s0 + $0x4a] sm:$0x3]  ;;  %v1762_v26 = vrot.slane %v7577_v38, 1 }
 0x202   :  { %v1078_v30 = vrot.slane %v1064_v8, %v8189_v59  ;;  %v1195_v39 = vcombine.high %v1177_v48, %v11996_v52  ;;  %v1079_v40 = vcombine.high %v8425_v35, %v11996_v52  ;;  %v1546_v63 = vcombine.high %v1536_v56, %v11996_v52  ;;  %v7582_v8 = vld [vmem:[%s11984_s0 + $0x50] sm:$0x3] }
 0x203   :  { %v1193_v60 = vrot.slane %v1179_v25, %v8189_v59  ;;  %v1196_v43 = vcombine.high %v1186_v14, %v11996_v52  ;;  %v1080_v44 = vcombine.high %v1062_v16, %v11996_v52  ;;  %v1081_v50 = vcombine.high %v1071_v29, %v11996_v52 }
 0x204   :  { %v1547_v53 = vcombine.high %v1543_v24, %v11996_v52  ;;  %v1082_v7 = vcombine.high %v1078_v30, %v11996_v52  ;;  %v599_v9 = vrot.slane %v585_v42, %v8189_v59  ;;  %v7578_v42 = vld [vmem:[%s11984_s0 + $0x48] sm:$0x3]  ;;  %v1761_v25 = vrot.slane %v7576_v36, 1 }
 0x205   :  { %861 = vrot.lane.b32.xlu0 %v842_v61, %s7828_s17  ;;  %1438 = vrot.lane.b32.xlu1 %v1412_v33, %s7824_s13  ;;  %v8420_v61 = vpop.permute.xlu0 %605  ;;  %v1431_v33 = vcombine.high %v1421_v4, %v11996_v52  ;;  %v1197_v6 = vcombine.high %v1193_v60, %v11996_v52  ;;  %v1764_v12 = vrot.slane %v7579_v1, 1 }
 0x206   :  { %v603_v18 = vcombine.high %v599_v9, %v11996_v52  ;;  %v1825_v58 = vmax.f32 %v7576_v36, %v1761_v25 }
 0x209   :  { %1553 = vrot.lane.b32.xlu0 %v1527_v45, %s7824_s13  ;;  %1203 = vrot.lane.b32.xlu1 %v1177_v48, %s7824_s13  ;;  %v8432_v41 = vpop.permute.xlu0 %613  ;;  %v8444_v45 = vpop.permute.xlu1 %609  ;;  %v1432_v48 = vcombine.high %v1428_v21, %v11996_v52 }
 0x20a   :  { %12223 = vst [vmem:[#allocation7_spill] sm:$0xff] %v8432_v41 }
 0x20d   :  { %1561 = vrot.lane.b32.xlu0 %v1536_v56, %s7825_s14  ;;  %1446 = vrot.lane.b32.xlu1 %v1421_v4, %s7825_s14  ;;  %v8440_v37 = vpop.permute.xlu0 %621  ;;  %v8454_v62 = vpop.permute.xlu1 %617  ;;  %v843_v56 = vcombine.high %v8295_v46, %v11996_v52 }
 0x20e   :  { %12224 = vst [vmem:[#allocation8_spill] sm:$0xff] %v8440_v37  ;;  %12225 = vst [vmem:[#allocation9_spill] sm:$0xff] %v8454_v62 }
 0x211   :  { %1211 = vrot.lane.b32.xlu1 %v1186_v14, %s7825_s14  ;;  %1088 = vrot.lane.b32.xlu0 %v1062_v16, %s7824_s13  ;;  %v8450_v51 = vpop.permute.xlu0 %1323  ;;  %v8471_v46 = vpop.permute.xlu1 %973  ;;  %v7575_v14 = vld [vmem:[%s11984_s0 + $0x42] sm:$0x3]  ;;  %v728_v16 = vcombine.high %v8308_v54, %v11996_v52  ;;  %v1763_v54 = vrot.slane %v7578_v42, 1 }
 0x215   :  { %1454 = vrot.lane.b32.xlu1 %v1428_v21, %s7829_s18  ;;  %1569 = vrot.lane.b32.xlu0 %v1543_v24, %s7829_s18  ;;  %v8461_v4 = vpop.permute.xlu0 %1331  ;;  %v1759_v21 = vrot.slane %v7574_v13, 1  ;;  %v1760_v24 = vrot.slane %v7575_v14, 1 }
 0x219   :  { %1219 = vrot.lane.b32.xlu1 %v1193_v60, %s7829_s18  ;;  %1096 = vrot.lane.b32.xlu0 %v1071_v29, %s7825_s14  ;;  %v8502_v27 = vpop.permute.xlu0 %1339  ;;  %v1765_v60 = vrot.slane %v7580_v20, 1  ;;  %v1766_v29 = vrot.slane %v7581_v0, 1 }
 0x21d   :  { %1104 = vrot.lane.b32.xlu1 %v1078_v30, %s7829_s18  ;;  %1434 = vrot.lane.b32.xlu0 %v1429_v5, %s7826_s15  ;;  %v1823_v30 = vmax.f32 %v7574_v13, %v1759_v21  ;;  %v1824_v5 = vmax.f32 %v7575_v14, %v1760_v24 }
 0x221   :  { %1199 = vrot.lane.b32.xlu1 %v1194_v28, %s7826_s15  ;;  %1549 = vrot.lane.b32.xlu0 %v1544_v31, %s7826_s15  ;;  %v1826_v28 = vmax.f32 %v7577_v38, %v1762_v26  ;;  %v7583_v31 = vld [vmem:[%s11984_s0 + $0x52] sm:$0x3] }
 0x225   :  { %1442 = vrot.lane.b32.xlu1 %v1430_v57, %s7827_s16  ;;  %1557 = vrot.lane.b32.xlu0 %v1545_v34, %s7827_s16  ;;  %v7584_v57 = vld [vmem:[%s11984_s0 + $0x54] sm:$0x3]  ;;  %v8515_v34 = vpop.permute.xlu1 %981 }
 0x229   :  { %1207 = vrot.lane.b32.xlu1 %v1195_v39, %s7827_s16  ;;  %1084 = vrot.lane.b32.xlu0 %v1079_v40, %s7826_s15  ;;  %v1827_v39 = vmax.f32 %v7578_v42, %v1763_v54  ;;  %v1828_v40 = vmax.f32 %v7579_v1, %v1764_v12  ;;  %v7589_v42 = vld [vmem:[%s11984_s0 + $0x5e] sm:$0x3]  ;;  %v1769_v1 = vrot.slane %v7584_v57, 1 }
 0x22a   :  { %v1774_v54 = vrot.slane %v7589_v42, 1 }
 0x22b   :  { %v1893_v13 = vrot.slane %v1827_v39, 4  ;;  %v1895_v14 = vrot.slane %v1828_v40, 3  ;;  %v7590_v39 = vld [vmem:[%s11984_s0 + $0x60] sm:$0x3]  ;;  %v7591_v40 = vld [vmem:[%s11984_s0 + $0x62] sm:$0x3] }
 0x22d   :  { %1450 = vrot.lane.b32.xlu1 %v1431_v33, %s7828_s17  ;;  %1565 = vrot.lane.b32.xlu0 %v1546_v63, %s7828_s17  ;;  %v1829_v33 = vmax.f32 %v7580_v20, %v1765_v60  ;;  %v1830_v63 = vmax.f32 %v7581_v0, %v1766_v29  ;;  %v8534_v0 = vpop.permute.xlu0 %989  ;;  %v8538_v29 = vpop.permute.xlu1 %969 }
 0x22f   :  { %v1897_v36 = vrot.slane %v1829_v33, 2  ;;  %v1899_v38 = vrot.slane %v1830_v63, 1 }
 0x231   :  { %1215 = vrot.lane.b32.xlu1 %v1196_v43, %s7828_s17  ;;  %1092 = vrot.lane.b32.xlu0 %v1080_v44, %s7827_s16  ;;  %v7585_v43 = vld [vmem:[%s11984_s0 + $0x56] sm:$0x3]  ;;  %v7586_v44 = vld [vmem:[%s11984_s0 + $0x58] sm:$0x3] }
 0x232   :  { %v1770_v20 = vrot.slane %v7585_v43, 1  ;;  %v1771_v24 = vrot.slane %v7586_v44, 1 }
 0x235   :  { %1458 = vrot.lane.b32.xlu1 %v1432_v48, %s7830_s19  ;;  %1100 = vrot.lane.b32.xlu0 %v1081_v50, %s7828_s17  ;;  %v7587_v48 = vld [vmem:[%s11984_s0 + $0x5a] sm:$0x3]  ;;  %v1887_v50 = vrot.slane %v1824_v5, 7 }
 0x236   :  { %v1772_v25 = vrot.slane %v7587_v48, 1 }
 0x238   :  { %v1836_v33 = vmax.f32 %v7587_v48, %v1772_v25  ;;  %v7596_v48 = vld [vmem:[%s11984_s0 + $0x6c] sm:$0x3] }
 0x239   :  { %1573 = vrot.lane.b32.xlu1 %v1547_v53, %s7830_s19  ;;  %869 = vrot.lane.b32.xlu0 %v843_v56, %s7830_s19  ;;  %v1889_v53 = vrot.slane %v1825_v58, 6  ;;  %v1891_v56 = vrot.slane %v1826_v28, 5  ;;  %v1834_v58 = vmax.f32 %v7585_v43, %v1770_v20  ;;  %v1835_v28 = vmax.f32 %v7586_v44, %v1771_v24  ;;  %v7594_v43 = vld [vmem:[%s11984_s0 + $0x68] sm:$0x3]  ;;  %v7595_v44 = vld [vmem:[%s11984_s0 + $0x6a] sm:$0x3] }
 0x23a   :  { %v1776_v24 = vrot.slane %v7591_v40, 1 }
 0x23d   :  { %1223 = vrot.lane.b32.xlu1 %v1197_v6, %s7830_s19  ;;  %1108 = vrot.lane.b32.xlu0 %v1082_v7, %s7830_s19  ;;  %v7588_v6 = vld [vmem:[%s11984_s0 + $0x5c] sm:$0x3]  ;;  %v1767_v7 = vrot.slane %v7582_v8, 1 }
 0x23f   :  { %v1831_v12 = vmax.f32 %v7582_v8, %v1767_v7  ;;  %v7592_v8 = vld [vmem:[%s11984_s0 + $0x64] sm:$0x3] }
 0x240   :  { %v1777_v25 = vrot.slane %v7592_v8, 1 }
 0x241   :  { %754 = vrot.lane.b32.xlu1 %v728_v16, %s7830_s19  ;;  %629 = vrot.lane.b32.xlu0 %v603_v18, %s7830_s19  ;;  %v1888_v16 = vsel %vm244_vm4, %v1887_v50, %v1823_v30  ;;  %v1768_v18 = vrot.slane %v7583_v31, 1  ;;  %v1833_v30 = vmax.f32 %v7584_v57, %v1769_v1  ;;  %v1838_v50 = vmax.f32 %v7589_v42, %v1774_v54  ;;  %v7593_v57 = vld [vmem:[%s11984_s0 + $0x66] sm:$0x3]  ;;  %v8570_v1 = vpop.permute.xlu0 %1319  ;;  %v8576_v54 = vpop.permute.xlu1 %977 }
 0x242   :  { %v1890_v21 = vsel %vm247_vm5, %v1889_v53, %v1888_v16  ;;  %v1909_v42 = vrot.slane %v1836_v33, 3  ;;  %v1840_v33 = vmax.f32 %v7591_v40, %v1776_v24 }
 0x243   :  { %v1892_v26 = vsel %vm250_vm6, %v1891_v56, %v1890_v21  ;;  %v1832_v60 = vmax.f32 %v7583_v31, %v1768_v18  ;;  %v1903_v7 = vrot.slane %v1833_v30, 6  ;;  %v7597_v18 = vld [vmem:[%s11984_s0 + $0x6e] sm:$0x3]  ;;  %v1913_v20 = vrot.slane %v1838_v50, 1 }
 0x244   :  { %v1894_v5 = vsel %vm253_vm7, %v1893_v13, %v1892_v26  ;;  %v1905_v13 = vrot.slane %v1834_v58, 5  ;;  %v1775_v21 = vrot.slane %v7590_v39, 1  ;;  %v1779_v26 = vrot.slane %v7594_v43, 1 }
 0x245   :  { %625 = vrot.lane.b32.xlu1 %v599_v9, %s7829_s18  ;;  %v1773_v9 = vrot.slane %v7588_v6, 1  ;;  %v1896_v31 = vsel %vm256_vm8, %v1895_v14, %v1894_v5  ;;  %v1901_v56 = vrot.slane %v1832_v60, 7  ;;  %v1907_v14 = vrot.slane %v1835_v28, 4 }
 0x246   :  { %v1898_v53 = vsel %vm259_vm9, %v1897_v36, %v1896_v31  ;;  %v1780_v5 = vrot.slane %v7595_v44, 1  ;;  %v1781_v30 = vrot.slane %v7596_v48, 1  ;;  %v1782_v58 = vrot.slane %v7597_v18, 1 }
 0x247   :  { %v1837_v63 = vmax.f32 %v7588_v6, %v1773_v9  ;;  %v8565_v6 = vsel %vm262_vm10, %v1899_v38, %v1898_v53  ;;  %v1902_v36 = vsel %vm244_vm4, %v1901_v56, %v1831_v12  ;;  %v1778_v9 = vrot.slane %v7593_v57, 1 }
 0x248   :  { %12226 = vst [vmem:[#allocation10_spill] sm:$0xff] %v8565_v6  ;;  %7716 = vmatprep.mubr.msk.f32.mxu1 %vm306_vm11, %v8565_v6  ;;  %v1904_v38 = vsel %vm247_vm5, %v1903_v7, %v1902_v36  ;;  %v1839_v31 = vmax.f32 %v7590_v39, %v1775_v21  ;;  %v1841_v12 = vmax.f32 %v7592_v8, %v1777_v25  ;;  %v7601_v39 = vld [vmem:[%s11984_s0 + $0x76] sm:$0x3] }
 0x249   :  { %v1911_v16 = vrot.slane %v1837_v63, 2  ;;  %v1906_v60 = vsel %vm250_vm6, %v1905_v13, %v1904_v38  ;;  %v7598_v63 = vld [vmem:[%s11984_s0 + $0x70] sm:$0x3]  ;;  %v1842_v53 = vmax.f32 %v7593_v57, %v1778_v9  ;;  %v1843_v56 = vmax.f32 %v7594_v43, %v1779_v26  ;;  %v7599_v13 = vld [vmem:[%s11984_s0 + $0x72] sm:$0x3] }
 0x24a   :  { %v1908_v28 = vsel %vm253_vm7, %v1907_v14, %v1906_v60  ;;  %v1844_v7 = vmax.f32 %v7595_v44, %v1780_v5  ;;  %v7600_v14 = vld [vmem:[%s11984_s0 + $0x74] sm:$0x3]  ;;  %v1845_v8 = vmax.f32 %v7596_v48, %v1781_v30  ;;  %v1846_v36 = vmax.f32 %v7597_v18, %v1782_v58  ;;  %v7602_v57 = vld [vmem:[%s11984_s0 + $0x78] sm:$0x3]  ;;  %v7603_v43 = vld [vmem:[%s11984_s0 + $0x7a] sm:$0x3]  ;;  %v8600_v44 = vpop.permute.xlu0 %1327  ;;  %v8614_v60 = vpop.permute.xlu1 %985 }
 0x24b   :  { %v1910_v50 = vsel %vm256_vm8, %v1909_v42, %v1908_v28  ;;  %v1915_v42 = vrot.slane %v1840_v33, 7  ;;  %v1917_v24 = vrot.slane %v1841_v12, 6  ;;  %v1919_v38 = vrot.slane %v1842_v53, 5  ;;  %v7604_v48 = vld [vmem:[%s11984_s0 + $0x7c] sm:$0x3] }
 0x24c   :  { %v1912_v40 = vsel %vm259_vm9, %v1911_v16, %v1910_v50  ;;  %v1921_v25 = vrot.slane %v1843_v56, 4  ;;  %v1923_v18 = vrot.slane %v1844_v7, 3  ;;  %v1925_v9 = vrot.slane %v1845_v8, 2 }
 0x24d   :  { %v8603_v21 = vsel %vm262_vm10, %v1913_v20, %v1912_v40  ;;  %v1916_v16 = vsel %vm244_vm4, %v1915_v42, %v1839_v31  ;;  %v1927_v26 = vrot.slane %v1846_v36, 1  ;;  %v7605_v20 = vld [vmem:[%s11984_s0 + $0x7e] sm:$0x3]  ;;  %v1783_v30 = vrot.slane %v7598_v63, 1  ;;  %s7839_s0 = smov 80  }
 0x24e   :  { %12227 = vst [vmem:[#allocation11_spill] sm:$0xff] %v8603_v21  ;;  %7717 = vmatmul.mubr.msk.f32.vlgmr.msra.gmra.mxu1 %vm306_vm11, %v8603_v21  ;;  %v1918_v5 = vsel %vm247_vm5, %v1917_v24, %v1916_v16  ;;  %v1784_v58 = vrot.slane %v7599_v13, 1  ;;  %v1785_v28 = vrot.slane %v7600_v14, 1  ;;  %v1786_v12 = vrot.slane %v7601_v39, 1  ;;  %v8620_v52 = vpop.permute.xlu0 %1335  ;;  %v8626_v21 = vpop.permute.xlu1 %993 }
 0x24f   :  { %v1920_v33 = vsel %vm250_vm6, %v1919_v38, %v1918_v5  ;;  %v1787_v50 = vrot.slane %v7602_v57, 1  ;;  %v1788_v53 = vrot.slane %v7603_v43, 1  ;;  %v1789_v56 = vrot.slane %v7604_v48, 1 }
 0x250   :  { %v1922_v31 = vsel %vm253_vm7, %v1921_v25, %v1920_v33  ;;  %v1790_v7 = vrot.slane %v7605_v20, 1  ;;  %v1847_v40 = vmax.f32 %v7598_v63, %v1783_v30  ;;  %v1848_v36 = vmax.f32 %v7599_v13, %v1784_v58 }
 0x251   :  { %v1924_v8 = vsel %vm256_vm8, %v1923_v18, %v1922_v31  ;;  %v1849_v42 = vmax.f32 %v7600_v14, %v1785_v28  ;;  %v1850_v19 = vmax.f32 %v7601_v39, %v1786_v12  ;;  %v1851_v16 = vmax.f32 %v7602_v57, %v1787_v50 }
 0x252   :  { %v1926_v24 = vsel %vm259_vm9, %v1925_v9, %v1924_v8  ;;  %v1852_v59 = vmax.f32 %v7603_v43, %v1788_v53  ;;  %v1853_v38 = vmax.f32 %v7604_v48, %v1789_v56  ;;  %v1854_v32 = vmax.f32 %v7605_v20, %v1790_v7  ;;  %v8633_v9 = vpop.permute.xlu0 %1343 }
 0x253   :  { %v8624_v5 = vsel %vm262_vm10, %v1927_v26, %v1926_v24  ;;  %v1929_v25 = vrot.slane %v1848_v36, 7  ;;  %v1931_v33 = vrot.slane %v1849_v42, 6  ;;  %v1933_v63 = vrot.slane %v1850_v19, 5 }
 0x254   :  { %12228 = vst [vmem:[#allocation12_spill] sm:$0xff] %v8624_v5  ;;  %7719 = vmatprep.mubr.msk.f32.mxu1 %vm306_vm11, %v8624_v5  ;;  %v1935_v13 = vrot.slane %v1851_v16, 4  ;;  %v1937_v39 = vrot.slane %v1852_v59, 3  ;;  %v1939_v43 = vrot.slane %v1853_v38, 2  ;;  %v1941_v18 = vrot.slane %v1854_v32, 1 }
 0x255   :  { %v1930_v14 = vsel %vm244_vm4, %v1929_v25, %v1847_v40  ;;  %v12230_v32 = vmov 0.0   ;;  %vm632_vm4 = vcmask 64512  }
 0x256   :  { %v1932_v57 = vsel %vm247_vm5, %v1931_v33, %v1930_v14  ;;  %vm12012_vm5 = vcmask 195584   ;;  %v996_v6 = vsel %vm632_vm4, %v8230_v11, %v8538_v29  ;;  %v1346_v41 = vsel %vm632_vm4, %v8251_v47, %v8570_v1 }
 0x257   :  { %v1934_v48 = vsel %vm250_vm6, %v1933_v63, %v1932_v57  ;;  %vm637_vm6 = vcmask 261120  }
 0x258   :  { %v1936_v20 = vsel %vm253_vm7, %v1935_v13, %v1934_v48  ;;  %vm639_vm7 = vcmask 326656  }
 0x259   :  { %v1938_v30 = vsel %vm256_vm8, %v1937_v39, %v1936_v20  ;;  %vm641_vm8 = vcmask 392192  }
 0x25a   :  { %v1940_v19 = vsel %vm259_vm9, %v1939_v43, %v1938_v30  ;;  %vm643_vm9 = vcmask 457728  }
 0x25b   :  { %v8641_v58 = vsel %vm262_vm10, %v1941_v18, %v1940_v19  ;;  %vm1595_vm10 = vcmask 1043456  }
 0x25c   :  { %12229 = vst [vmem:[#allocation13_spill] sm:$0xff] %v8641_v58  ;;  %7720 = vmatmul.mubr.msk.f32.gmra.mxu1 %vm306_vm11, %v8641_v58 }
 0x25d   :  { %7742 = vmatprep.mubr.msk.f32.mxu1 %vm7831_vm1, %v12230_v32 }
 0x25f   :  { %v8635_v26 = vpop.permute.xlu1 %734 }
 0x263   :  { %v8643_v59 = vpop.permute.xlu0 %849  ;;  %v8645_v28 = vpop.permute.xlu1 %857 }
 0x267   :  { %v8651_v12 = vpop.permute.xlu0 %742  ;;  %v8653_v50 = vpop.permute.xlu1 %865 }
 0x26b   :  { %v8655_v53 = vpop.permute.xlu0 %750  ;;  %v8657_v31 = vpop.permute.xlu1 %730 }
 0x26c   :  { %12231 = vst [vmem:[#allocation14_spill] sm:$0xff] %v8655_v53 }
 0x26f   :  { %v846_v56 = vpop.permute.xlu0 %845  ;;  %v8659_v7 = vpop.permute.xlu1 %738 }
 0x273   :  { %v8661_v40 = vpop.permute.xlu0 %853  ;;  %v8663_v8 = vpop.permute.xlu1 %746 }
 0x277   :  { %v8665_v36 = vpop.permute.xlu0 %861  ;;  %v1439_v42 = vpop.permute.xlu1 %1438 }
 0x27b   :  { %v1554_v24 = vpop.permute.xlu0 %1553  ;;  %v1204_v16 = vpop.permute.xlu1 %1203 }
 0x27f   :  { %v1562_v38 = vpop.permute.xlu0 %1561  ;;  %v1447_v25 = vpop.permute.xlu1 %1446 }
 0x283   :  { %v1089_v33 = vpop.permute.xlu0 %1088  ;;  %v1212_v63 = vpop.permute.xlu1 %1211 }
 0x287   :  { %v1570_v13 = vpop.permute.xlu0 %1569  ;;  %v1455_v14 = vpop.permute.xlu1 %1454 }
 0x28b   :  { %v8667_v39 = vpop.permute.xlu0 %1096  ;;  %v8669_v57 = vpop.permute.xlu1 %1219 }
 0x28f   :  { %v1435_v43 = vpop.permute.xlu0 %1434  ;;  %v8671_v48 = vpop.permute.xlu1 %1104 }
 0x290   :  { %v1461_v3 = vsel %vm632_vm4, %v8399_v15, %v1435_v43  ;;  %v997_v15 = vsel %vm306_vm11, %v996_v6, %v8471_v46 }
 0x291   :  { %v1462_v17 = vsel %vm306_vm11, %v1461_v3, %v1439_v42  ;;  %v998_v11 = vsel %vm12012_vm5, %v997_v15, %v8576_v54 }
 0x293   :  { %v1550_v18 = vpop.permute.xlu0 %1549  ;;  %v1200_v20 = vpop.permute.xlu1 %1199 }
 0x294   :  { %v1576_v62 = vsel %vm632_vm4, %v8410_v23, %v1550_v18  ;;  %v1226_v47 = vsel %vm632_vm4, %v8407_v22, %v1200_v20 }
 0x295   :  { %v1577_v3 = vsel %vm306_vm11, %v1576_v62, %v1554_v24  ;;  %v872_v62 = vsel %vm632_vm4, %v8311_v55, %v846_v56  ;;  %v1227_v22 = vsel %vm306_vm11, %v1226_v47, %v1204_v16  ;;  %v12234_v47 = vld [vmem:[#allocation9_spill] sm:$0xff] }
 0x296   :  { %v873_v56 = vsel %vm306_vm11, %v872_v62, %v8643_v59 }
 0x297   :  { %v1558_v30 = vpop.permute.xlu0 %1557  ;;  %v1443_v19 = vpop.permute.xlu1 %1442 }
 0x298   :  { %v1463_v53 = vsel %vm12012_vm5, %v1462_v17, %v1443_v19  ;;  %v1347_v17 = vsel %vm306_vm11, %v1346_v41, %v8450_v51  ;;  %v1578_v1 = vsel %vm12012_vm5, %v1577_v3, %v1558_v30  ;;  %v999_v41 = vsel %vm637_vm6, %v998_v11, %v8515_v34  ;;  %v12232_v3 = vld [vmem:[#allocation7_spill] sm:$0xff] }
 0x299   :  { %v1464_v29 = vsel %vm637_vm6, %v1463_v53, %v1447_v25  ;;  %v1348_v6 = vsel %vm12012_vm5, %v1347_v17, %v8600_v44  ;;  %v1579_v51 = vsel %vm637_vm6, %v1578_v1, %v1562_v38  ;;  %v12233_v17 = vld [vmem:[#allocation14_spill] sm:$0xff] }
 0x29a   :  { %v1349_v44 = vsel %vm637_vm6, %v1348_v6, %v8461_v4  ;;  %v1000_v4 = vsel %vm639_vm7, %v999_v41, %v8614_v60 }
 0x29b   :  { %v1085_v58 = vpop.permute.xlu0 %1084  ;;  %v1208_v5 = vpop.permute.xlu1 %1207  ;;  %v1350_v34 = vsel %vm639_vm7, %v1349_v44, %v8620_v52  ;;  %v1001_v52 = vsel %vm641_vm8, %v1000_v4, %v8534_v0 }
 0x29c   :  { %v1111_v54 = vsel %vm632_vm4, %v8425_v35, %v1085_v58  ;;  %v1228_v25 = vsel %vm12012_vm5, %v1227_v22, %v1208_v5  ;;  %v757_v58 = vsel %vm632_vm4, %v8299_v49, %v8657_v31  ;;  %v1002_v30 = vsel %vm643_vm9, %v1001_v52, %v8626_v21 }
 0x29d   :  { %v1112_v16 = vsel %vm306_vm11, %v1111_v54, %v1089_v33  ;;  %v1351_v33 = vsel %vm641_vm8, %v1350_v34, %v8502_v27  ;;  %v758_v60 = vsel %vm306_vm11, %v757_v58, %v8635_v26  ;;  %v12241_v34 = vld [vmem:[#allocation11_spill] sm:$0xff]  ;;  %v12242_v58 = vld [vmem:[#allocation12_spill] sm:$0xff] }
 0x29e   :  { %v1352_v0 = vsel %vm643_vm9, %v1351_v33, %v8633_v9 }
 0x29f   :  { %v1566_v10 = vpop.permute.xlu0 %1565  ;;  %v1451_v37 = vpop.permute.xlu1 %1450 }
 0x2a0   :  { %v1465_v46 = vsel %vm639_vm7, %v1464_v29, %v1451_v37  ;;  %v1580_v55 = vsel %vm639_vm7, %v1579_v51, %v1566_v10  ;;  %v874_v10 = vsel %vm12012_vm5, %v873_v56, %v8661_v40  ;;  %v12243_v56 = vld [vmem:[#allocation13_spill] sm:$0xff] }
 0x2a1   :  { %v1466_v37 = vsel %vm641_vm8, %v1465_v46, %v1455_v14  ;;  %v1229_v14 = vsel %vm637_vm6, %v1228_v25, %v1212_v63  ;;  %v1581_v31 = vsel %vm641_vm8, %v1580_v55, %v1570_v13  ;;  %v759_v63 = vsel %vm12012_vm5, %v758_v60, %v8659_v7  ;;  %v12235_v46 = vld [vmem:[#allocation8_spill] sm:$0xff]  ;;  %v12239_v55 = vld [vmem:[#allocation10_spill] sm:$0xff] }
 0x2a2   :  { %v875_v13 = vsel %vm637_vm6, %v874_v10, %v8645_v28  ;;  %v633_v7 = vsel %vm632_vm4, %v8200_v2, %v8420_v61 }
 0x2a3   :  { %v1093_v42 = vpop.permute.xlu0 %1092  ;;  %v1216_v23 = vpop.permute.xlu1 %1215  ;;  %v876_v27 = vsel %vm639_vm7, %v875_v13, %v8665_v36  ;;  %v760_v36 = vsel %vm637_vm6, %v759_v63, %v8651_v12  ;;  %v634_v21 = vsel %vm306_vm11, %v633_v7, %v8444_v45 }
 0x2a4   :  { %v1113_v5 = vsel %vm12012_vm5, %v1112_v16, %v1093_v42  ;;  %v1230_v40 = vsel %vm639_vm7, %v1229_v14, %v1216_v23  ;;  %v761_v15 = vsel %vm639_vm7, %v760_v36, %v8663_v8  ;;  %v877_v2 = vsel %vm641_vm8, %v876_v27, %v8653_v50 }
 0x2a5   :  { %v1114_v18 = vsel %vm637_vm6, %v1113_v5, %v8667_v39  ;;  %v1231_v28 = vsel %vm641_vm8, %v1230_v40, %v8669_v57  ;;  %v636_v29 = vsel %vm12012_vm5, %v634_v21, %v12232_v3  ;;  %v1587_v42 = vrot.slane %v1002_v30, 4 }
 0x2a6   :  { %v762_v50 = vsel %vm641_vm8, %v761_v15, %v12233_v17  ;;  %v638_v1 = vsel %vm637_vm6, %v636_v29, %v12234_v47  ;;  %vm1607_vm5 = vcmask 293888  }
 0x2a7   :  { %v1101_v53 = vpop.permute.xlu0 %1100  ;;  %v1459_v24 = vpop.permute.xlu1 %1458  ;;  %v640_v6 = vsel %vm639_vm7, %v638_v1, %v12235_v46 }
 0x2a8   :  { %v1467_v35 = vsel %vm643_vm9, %v1466_v37, %v1459_v24  ;;  %v1115_v26 = vsel %vm639_vm7, %v1114_v18, %v1101_v53  ;;  %v1600_v53 = vld [vmem:[%s11985_s1] sm:$0xff]  ;;  %v12236_v24 = vmov 1.0  }
 0x2a9   :  { %v1593_v38 = vrot.slane %v1467_v35, 4  ;;  %v1116_v61 = vsel %vm641_vm8, %v1115_v26, %v8671_v48 }
 0x2ab   :  { %v870_v49 = vpop.permute.xlu0 %869  ;;  %v1574_v59 = vpop.permute.xlu1 %1573  ;;  %v1599_v9 = vsel %vm1595_vm10, %v1352_v0, %v1593_v38 }
 0x2ac   :  { %v1582_v43 = vsel %vm643_vm9, %v1581_v31, %v1574_v59  ;;  %v878_v11 = vsel %vm643_vm9, %v877_v2, %v870_v49 }
 0x2ad   :  { %7700 = vmatpush3.msk.msra.mxu0 %vm1595_vm10, %v1582_v43  ;;  %v1597_v45 = vsel %vm1595_vm10, %v878_v11, %v1587_v42 }
 0x2ae   :  { %7701 = vmatprep.subr.mxu0 %v12230_v32 }
 0x2af   :  { %v1109_v20 = vpop.permute.xlu0 %1108  ;;  %7702 = vmatpush3.msra.mxu0 %v1599_v9  ;;  %v1224_v39 = vpop.permute.xlu1 %1223 }
 0x2b0   :  { %v1232_v19 = vsel %vm643_vm9, %v1231_v28, %v1224_v39  ;;  %7703 = vmatprep.subr.mxu0 %v12230_v32  ;;  %v1117_v12 = vsel %vm643_vm9, %v1116_v61, %v1109_v20 }
 0x2b1   :  { %v1590_v57 = vrot.slane %v1232_v19, 4 }
 0x2b3   :  { %v755_v23 = vpop.permute.xlu1 %754  ;;  %v1598_v8 = vsel %vm1595_vm10, %v1117_v12, %v1590_v57  ;;  %v630_v54 = vpop.permute.xlu0 %629 }
 0x2b4   :  { %7704 = vmatpush3.msra.mxu0 %v1598_v8  ;;  %v763_v48 = vsel %vm643_vm9, %v762_v50, %v755_v23 }
 0x2b5   :  { %7705 = vmatprep.subr.mxu0 %v12230_v32  ;;  %v1584_v41 = vrot.slane %v763_v48, 4 }
 0x2b6   :  { %7706 = vmatpush3.msra.mxu0 %v1597_v45 }
 0x2b7   :  { %v626_v62 = vpop.permute.xlu1 %625  ;;  %7707 = vmatprep.subr.mxu0 %v12230_v32 }
 0x2b8   :  { %v642_v22 = vsel %vm641_vm8, %v640_v6, %v626_v62 }
 0x2b9   :  { %v644_v51 = vsel %vm643_vm9, %v642_v22, %v630_v54 }
 0x2ba   :  { %v1596_v37 = vsel %vm1595_vm10, %v644_v51, %v1584_v41  ;;  %v12245_v41 = vld [vmem:[#allocation5_spill] sm:$0xff] }
 0x2bb   :  { %7708 = vmatpush3.msra.mxu0 %v1596_v37 }
 0x2bc   :  { %7710 = vmatmul.mubr.msk.f32.vlgmr.msra.gmra.mxu0 %vm1607_vm5, %v1600_v53  ;;  %7722 = vmatprep.subr.msk.mxu0 %vm46_vm2, %v12236_v24 }
 0x2bd   :  { %7723 = vmatpush3.msk.msra.mxu0 %vm46_vm2, %v12236_v24  ;;  %7726 = vmatprep.mubr.msk.f32.mxu0 %vm306_vm11, %v12239_v55  ;;  %vm12252_vm2 = vcmask 195584  }
 0x2be   :  { %7724 = vmatprep.subr.msk.mxu0 %vm45_vm3, %v12236_v24 }
 0x2bf   :  { %7725 = vmatpush3.msk.msra.mxu0 %vm45_vm3, %v12236_v24  ;;  %vm12253_vm3 = vmmov %vm12252_vm2 }
 0x2c0   :  { %7727 = vmatmul.mubr.msk.f32.vlgmr.msra.gmra.mxu0 %vm306_vm11, %v12241_v34  ;;  %7745 = vmatprep.subr.mxu0 %v12230_v32 }
 0x2c1   :  { %7729 = vmatprep.mubr.msk.f32.mxu0 %vm306_vm11, %v12242_v58 }
 0x2c4   :  { %7730 = vmatmul.mubr.msk.f32.gmra.mxu0 %vm306_vm11, %v12243_v56 }
 0x2c5   :  { %7763 = vmatprep.mubr.msk.f32.mxu0 %vm7831_vm1, %v12230_v32 }
 0x30e   :  { %v7718_v16 = vpop.f32.mrf.mxu1 }
 0x310   :  { %v2017_v5 = vpop.f32.mrf.mxu1 }
 0x31c   :  { %v7721_v52 = vpop.f32.mrf.mxu1 }
 0x31e   :  { %v2027_v33 = vpop.f32.mrf.mxu1 }
 0x37c   :  { %v8818_v4 = vpop.f32.mrf.mxu0 }
 0x37d   :  { %12244 = vst [vmem:[#allocation7_spill] sm:$0xff] %v8818_v4 }
 0x37e   :  { %v7711_v10 = vpop.f32.mrf.mxu0 }
 0x380   :  { %v7728_v38 = vpop.f32.mrf.mxu0 }
 0x381   :  { %v2122_v14 = vmax.f32 %v7718_v16, %v7728_v38 }
 0x382   :  { %v2102_v49 = vpop.f32.mrf.mxu0 }
 0x383   :  { %v2121_v31 = vmax.f32 %v2017_v5, %v2102_v49  ;;  %2131 = vrot.lane.b32.xlu0 %v2122_v14, %s7818_s10 }
 0x384   :  { %v7731_v59 = vpop.f32.mrf.mxu0 }
 0x385   :  { %v2124_v60 = vmax.f32 %v7721_v52, %v7731_v59  ;;  %2129 = vrot.lane.b32.xlu1 %v2121_v31, %s7818_s10 }
 0x386   :  { %v2112_v40 = vpop.f32.mrf.mxu0 }
 0x387   :  { %v2123_v43 = vmax.f32 %v2027_v33, %v2112_v40  ;;  %2135 = vrot.lane.b32.xlu0 %v2124_v60, %s7818_s10 }
 0x389   :  { %2133 = vrot.lane.b32.xlu1 %v2123_v43, %s7818_s10 }
 0x3f5   :  { %v2132_v0 = vpop.permute.xlu0 %2131 }
 0x3f6   :  { %v2142_v63 = vsel %vm505_vm12, 0.0, %v2132_v0  ;;  %v12246_v0 = vld [vmem:[#allocation6_spill] sm:$0xff] }
 0x3f7   :  { %v2146_v13 = vsel %vm510_vm13, %v2142_v63, 0.0  ;;  %v2130_v18 = vpop.permute.xlu1 %2129 }
 0x3f8   :  { %v2154_v27 = vrot.slane %v2146_v13, 7  ;;  %v2141_v26 = vsel %vm505_vm12, 0.0, %v2130_v18 }
 0x3f9   :  { %v2145_v9 = vsel %vm510_vm13, %v2141_v26, 0.0  ;;  %v2136_v28 = vpop.permute.xlu0 %2135 }
 0x3fa   :  { %v8829_v7 = vsel %vm527_vm14, 0.0, %v2154_v27  ;;  %v2153_v20 = vrot.slane %v2145_v9, 7  ;;  %v2166_v39 = vsel %vm527_vm14, %v2154_v27, 0.0  ;;  %v2144_v2 = vsel %vm505_vm12, 0.0, %v2136_v28 }
 0x3fb   :  { %2278 = vrot.lane.b32.xlu0 %v8829_v7, %s7820_s11  ;;  %v2134_v30 = vpop.permute.xlu1 %2133  ;;  %v2863_v61 = vrot.slane %v2166_v39, 2  ;;  %v2862_v21 = vrot.slane %v8829_v7, 2  ;;  %v2148_v12 = vsel %vm510_vm13, %v2144_v2, 0.0  ;;  %v2514_v50 = vrot.slane %v2166_v39, 1 }
 0x3fc   :  { %v2161_v36 = vsel %vm527_vm14, 0.0, %v2153_v20  ;;  %v2143_v19 = vsel %vm505_vm12, 0.0, %v2134_v30  ;;  %v2165_v15 = vsel %vm527_vm14, %v2153_v20, 0.0  ;;  %v2156_v23 = vrot.slane %v2148_v12, 7 }
 0x3fd   :  { %2276 = vrot.lane.b32.xlu1 %v2161_v36, %s7820_s11  ;;  %v2147_v57 = vsel %vm510_vm13, %v2143_v19, 0.0  ;;  %v2860_v11 = vrot.slane %v2165_v15, 2  ;;  %v2859_v3 = vrot.slane %v2161_v36, 2  ;;  %v8846_v42 = vsel %vm1233_vm15, %v2862_v21, %v2863_v61 }
 0x3fe   :  { %v2155_v29 = vrot.slane %v2147_v57, 7  ;;  %v2513_v48 = vrot.slane %v8829_v7, 1  ;;  %v2164_v45 = vsel %vm527_vm14, 0.0, %v2156_v23  ;;  %v2511_v47 = vrot.slane %v2165_v15, 1 }
 0x3ff   :  { %2393 = vrot.lane.b32.xlu0 %v8829_v7, %s7821_s12  ;;  %v8851_v8 = vsel %vm1233_vm15, %v2859_v3, %v2860_v11  ;;  %v2510_v1 = vrot.slane %v2161_v36, 1  ;;  %v2186_v62 = vcombine.high %v8829_v7, %v2164_v45  ;;  %v2168_v37 = vsel %vm527_vm14, %v2156_v23, 0.0 }
 0x400   :  { %v2163_v17 = vsel %vm527_vm14, 0.0, %v2155_v29  ;;  %v2515_v6 = vsel %vm12015_vm0, %v2513_v48, %v2514_v50  ;;  %v2167_v24 = vsel %vm527_vm14, %v2155_v29, 0.0  ;;  %v2869_v44 = vrot.slane %v2168_v37, 2 }
 0x401   :  { %2391 = vrot.lane.b32.xlu1 %v2161_v36, %s7821_s12  ;;  %v2170_v46 = vcombine.high %v2161_v36, %v2163_v17  ;;  %v2512_v54 = vsel %vm12015_vm0, %v2510_v1, %v2511_v47  ;;  %v8871_v51 = vrot.slane %v2186_v62, %v12245_v41  ;;  %v2868_v25 = vrot.slane %v2164_v45, 2 }
 0x402   :  { %v2866_v55 = vrot.slane %v2167_v24, 2  ;;  %v2865_v35 = vrot.slane %v2163_v17, 2  ;;  %v2169_v58 = vcombine.low %v2161_v36, %v2163_v17  ;;  %v2185_v16 = vcombine.low %v8829_v7, %v2164_v45 }
 0x403   :  { %2980 = vrot.lane.b32.xlu0 %v8846_v42, %s7820_s11  ;;  %v8867_v22 = vrot.slane %v2170_v46, %v12245_v41  ;;  %v2870_v34 = vsel %vm1233_vm15, %v2868_v25, %v2869_v44  ;;  %v2520_v10 = vrot.slane %v2168_v37, 1  ;;  %v2517_v5 = vrot.slane %v2167_v24, 1 }
 0x404   :  { %v2867_v56 = vsel %vm1233_vm15, %v2865_v35, %v2866_v55  ;;  %v2519_v38 = vrot.slane %v2164_v45, 1  ;;  %v2516_v52 = vrot.slane %v2163_v17, 1  ;;  %v2177_v14 = vrot.slane %v2169_v58, %v12245_v41 }
 0x405   :  { %2978 = vrot.lane.b32.xlu1 %v8851_v8, %s7820_s11  ;;  %v2218_v53 = vcombine.high %v8867_v22, %v8871_v51  ;;  %v2193_v49 = vrot.slane %v2185_v16, %v12245_v41  ;;  %v2217_v26 = vcombine.low %v8867_v22, %v8871_v51  ;;  %v2875_v9 = vcombine.low %v8851_v8, %v2867_v56  ;;  %v1601_v22 = vld [vmem:[%s11986_s2] sm:$0xff] }
 0x406   :  { %v2521_v31 = vsel %vm12015_vm0, %v2519_v38, %v2520_v10  ;;  %v2518_v59 = vsel %vm12015_vm0, %v2516_v52, %v2517_v5  ;;  %v2891_v39 = vcombine.low %v8846_v42, %v2870_v34  ;;  %v2876_v15 = vcombine.high %v8851_v8, %v2867_v56  ;;  %vm12254_vm0 = vmmov %vm12252_vm2 }
 0x407   :  { %3095 = vrot.lane.b32.xlu0 %v8846_v42, %s7821_s12  ;;  %v2201_v33 = vcombine.low %v2177_v14, %v2193_v49  ;;  %v2526_v60 = vcombine.low %v2512_v54, %v2518_v59  ;;  %v2202_v40 = vcombine.high %v2177_v14, %v2193_v49  ;;  %v2542_v43 = vcombine.low %v2515_v6, %v2521_v31 }
 0x408   :  { %v2527_v13 = vcombine.high %v2512_v54, %v2518_v59  ;;  %v2543_v7 = vcombine.high %v2515_v6, %v2521_v31  ;;  %v2225_v36 = vrot.slane %v2217_v26, %v12246_v0  ;;  %v2883_v2 = vrot.slane %v2875_v9, %v12245_v41 }
 0x409   :  { %3093 = vrot.lane.b32.xlu1 %v8851_v8, %s7821_s12  ;;  %v8898_v63 = vrot.slane %v2201_v33, %v12246_v0  ;;  %v2534_v18 = vrot.slane %v2526_v60, %v12245_v41  ;;  %v2216_v27 = vrot.slane %v2202_v40, %v12246_v0  ;;  %v2550_v20 = vrot.slane %v2542_v43, %v12245_v41 }
 0x40a   :  { %v2541_v30 = vrot.slane %v2527_v13, %v12245_v41  ;;  %v2557_v61 = vrot.slane %v2543_v7, %v12245_v41  ;;  %v2892_v21 = vcombine.high %v8846_v42, %v2870_v34  ;;  %v2899_v11 = vrot.slane %v2891_v39, %v12245_v41 }
 0x40b   :  { %2746 = vrot.lane.b32.xlu0 %v2515_v6, %s7821_s12  ;;  %v2233_v28 = vcombine.high %v8898_v63, %v12230_v32  ;;  %v2559_v19 = vcombine.high %v2534_v18, %v2550_v20  ;;  %v2234_v57 = vcombine.high %v2216_v27, %v12230_v32  ;;  %v2558_v29 = vcombine.low %v2534_v18, %v2550_v20 }
 0x40c   :  { %v2574_v3 = vcombine.low %v2541_v30, %v2557_v61  ;;  %v2890_v23 = vrot.slane %v2876_v15, %v12245_v41  ;;  %v2235_v8 = vcombine.high %v2225_v36, %v12230_v32  ;;  %v2906_v50 = vrot.slane %v2892_v21, %v12245_v41 }
 0x40d   :  { %2744 = vrot.lane.b32.xlu1 %v2512_v54, %s7821_s12  ;;  %v2573_v12 = vrot.slane %v2559_v19, %v12246_v0  ;;  %v8930_v48 = vrot.slane %v2558_v29, %v12246_v0  ;;  %v2907_v24 = vcombine.low %v2883_v2, %v2899_v11  ;;  %v7832_v10 = vmov 0  }
 0x40e   :  { %v2582_v42 = vrot.slane %v2574_v3, %v12246_v0  ;;  %v2923_v47 = vcombine.low %v2890_v23, %v2906_v50  ;;  %7810 = vset.pattern.permute.xlu0 %v7832_v10  ;;  %7811 = vset.pattern.permute.xlu1 %v7832_v10 }
 0x40f   :  { %2631 = vrot.lane.b32.xlu0 %v2515_v6, %s7820_s11  ;;  %v2590_v1 = vcombine.high %v8930_v48, %v12230_v32  ;;  %v2924_v6 = vcombine.high %v2890_v23, %v2906_v50  ;;  %v2591_v62 = vcombine.high %v2573_v12, %v12230_v32  ;;  %v8948_v55 = vrot.slane %v2907_v24, %v12246_v0 }
 0x410   :  { %v2931_v46 = vrot.slane %v2923_v47, %v12246_v0  ;;  %v2592_v44 = vcombine.high %v2582_v42, %v12230_v32 }
 0x411   :  { %2629 = vrot.lane.b32.xlu1 %v2512_v54, %s7820_s11  ;;  %v2575_v54 = vcombine.high %v2541_v30, %v2557_v61  ;;  %v2938_v37 = vrot.slane %v2924_v6, %v12246_v0 }
 0x413   :  { %2282 = vrot.lane.b32.xlu0 %v2164_v45, %s7820_s11  ;;  %v2589_v25 = vrot.slane %v2575_v54, %v12246_v0  ;;  %v2942_v16 = vcombine.high %v2938_v37, %v12230_v32 }
 0x415   :  { %2280 = vrot.lane.b32.xlu1 %v2163_v17, %s7820_s11  ;;  %v2593_v35 = vcombine.high %v2589_v25, %v12230_v32 }
 0x417   :  { %2397 = vrot.lane.b32.xlu0 %v2164_v45, %s7821_s12 }
 0x419   :  { %2395 = vrot.lane.b32.xlu1 %v2163_v17, %s7821_s12  ;;  %v2908_v17 = vcombine.high %v2883_v2, %v2899_v11 }
 0x41b   :  { %2984 = vrot.lane.b32.xlu0 %v2870_v34, %s7820_s11  ;;  %v2922_v45 = vrot.slane %v2908_v17, %v12246_v0 }
 0x41d   :  { %2982 = vrot.lane.b32.xlu1 %v2867_v56, %s7820_s11  ;;  %v2940_v58 = vcombine.high %v2922_v45, %v12230_v32 }
 0x41f   :  { %3099 = vrot.lane.b32.xlu0 %v2870_v34, %s7821_s12  ;;  %v2939_v34 = vcombine.high %v8948_v55, %v12230_v32 }
 0x421   :  { %3097 = vrot.lane.b32.xlu1 %v2867_v56, %s7821_s12  ;;  %v2941_v56 = vcombine.high %v2931_v46, %v12230_v32 }
 0x423   :  { %2750 = vrot.lane.b32.xlu0 %v2521_v31, %s7821_s12 }
 0x425   :  { %2748 = vrot.lane.b32.xlu1 %v2518_v59, %s7821_s12 }
 0x427   :  { %2635 = vrot.lane.b32.xlu0 %v2521_v31, %s7820_s11 }
 0x429   :  { %2633 = vrot.lane.b32.xlu1 %v2518_v59, %s7820_s11 }
 0x42b   :  { %2242 = vrot.lane.b32.xlu0 %v2216_v27, %s7824_s13 }
 0x42d   :  { %2238 = vrot.lane.b32.xlu1 %v2233_v28, %s7826_s15 }
 0x42f   :  { %2250 = vrot.lane.b32.xlu0 %v2225_v36, %s7825_s14 }
 0x431   :  { %2246 = vrot.lane.b32.xlu1 %v2234_v57, %s7827_s16 }
 0x433   :  { %2599 = vrot.lane.b32.xlu0 %v2573_v12, %s7824_s13 }
 0x435   :  { %2254 = vrot.lane.b32.xlu1 %v2235_v8, %s7828_s17 }
 0x437   :  { %2607 = vrot.lane.b32.xlu0 %v2582_v42, %s7825_s14 }
 0x439   :  { %2948 = vrot.lane.b32.xlu1 %v2922_v45, %s7824_s13 }
 0x43b   :  { %2595 = vrot.lane.b32.xlu0 %v2590_v1, %s7826_s15 }
 0x43d   :  { %2956 = vrot.lane.b32.xlu1 %v2931_v46, %s7825_s14 }
 0x43f   :  { %2603 = vrot.lane.b32.xlu0 %v2591_v62, %s7827_s16 }
 0x441   :  { %2964 = vrot.lane.b32.xlu1 %v2938_v37, %s7829_s18 }
 0x443   :  { %2611 = vrot.lane.b32.xlu0 %v2592_v44, %s7828_s17 }
 0x445   :  { %2615 = vrot.lane.b32.xlu1 %v2589_v25, %s7829_s18 }
 0x447   :  { %2619 = vrot.lane.b32.xlu0 %v2593_v35, %s7830_s19 }
 0x449   :  { %2944 = vrot.lane.b32.xlu1 %v2939_v34, %s7826_s15 }
 0x44d   :  { %2952 = vrot.lane.b32.xlu1 %v2940_v58, %s7827_s16 }
 0x451   :  { %2960 = vrot.lane.b32.xlu1 %v2941_v56, %s7828_s17 }
 0x455   :  { %2968 = vrot.lane.b32.xlu1 %v2942_v16, %s7830_s19 }
 0x46d   :  { %v2279_v5 = vpop.permute.xlu0 %2278 }
 0x46f   :  { %v2277_v38 = vpop.permute.xlu1 %2276 }
 0x471   :  { %v2394_v52 = vpop.permute.xlu0 %2393 }
 0x473   :  { %v2392_v14 = vpop.permute.xlu1 %2391 }
 0x475   :  { %v8962_v49 = vpop.permute.xlu0 %2980 }
 0x477   :  { %v8964_v31 = vpop.permute.xlu1 %2978 }
 0x479   :  { %v8966_v59 = vpop.permute.xlu0 %3095 }
 0x47b   :  { %v8968_v33 = vpop.permute.xlu1 %3093 }
 0x47d   :  { %v8970_v60 = vpop.permute.xlu0 %2746 }
 0x47f   :  { %v8972_v40 = vpop.permute.xlu1 %2744 }
 0x481   :  { %v8974_v43 = vpop.permute.xlu0 %2631 }
 0x483   :  { %v8976_v13 = vpop.permute.xlu1 %2629 }
 0x485   :  { %v2283_v18 = vpop.permute.xlu0 %2282 }
 0x486   :  { %v2304_v27 = vcombine.low %v2279_v5, %v2283_v18  ;;  %v2305_v57 = vcombine.high %v2279_v5, %v2283_v18 }
 0x487   :  { %v2281_v26 = vpop.permute.xlu1 %2280 }
 0x488   :  { %v2288_v9 = vcombine.low %v2277_v38, %v2281_v26  ;;  %v2312_v20 = vrot.slane %v2304_v27, %v12245_v41  ;;  %v2289_v19 = vcombine.high %v2277_v38, %v2281_v26  ;;  %v2319_v42 = vrot.slane %v2305_v57, %v12245_v41 }
 0x489   :  { %v2398_v7 = vpop.permute.xlu0 %2397 }
 0x48a   :  { %v2296_v28 = vrot.slane %v2288_v9, %v12245_v41  ;;  %v2419_v39 = vcombine.low %v2394_v52, %v2398_v7  ;;  %v2420_v30 = vcombine.high %v2394_v52, %v2398_v7  ;;  %v2303_v23 = vrot.slane %v2289_v19, %v12245_v41 }
 0x48b   :  { %v2396_v36 = vpop.permute.xlu1 %2395 }
 0x48c   :  { %v2321_v15 = vcombine.high %v2296_v28, %v2312_v20  ;;  %v2403_v2 = vcombine.low %v2392_v14, %v2396_v36  ;;  %v2404_v61 = vcombine.high %v2392_v14, %v2396_v36  ;;  %v2427_v11 = vrot.slane %v2419_v39, %v12245_v41 }
 0x48d   :  { %v2434_v12 = vrot.slane %v2420_v30, %v12245_v41  ;;  %v2985_v45 = vpop.permute.xlu0 %2984  ;;  %v2320_v47 = vcombine.low %v2296_v28, %v2312_v20  ;;  %v2336_v62 = vcombine.low %v2303_v23, %v2319_v42  ;;  %v2337_v44 = vcombine.high %v2303_v23, %v2319_v42 }
 0x48e   :  { %v2335_v21 = vrot.slane %v2321_v15, %v12246_v0  ;;  %v2411_v3 = vrot.slane %v2403_v2, %v12245_v41  ;;  %v2418_v29 = vrot.slane %v2404_v61, %v12245_v41  ;;  %v3006_v38 = vcombine.low %v8962_v49, %v2985_v45 }
 0x48f   :  { %v2983_v8 = vpop.permute.xlu1 %2982  ;;  %v8996_v24 = vrot.slane %v2320_v47, %v12246_v0  ;;  %v2344_v34 = vrot.slane %v2336_v62, %v12246_v0  ;;  %v9006_v10 = vrot.slane %v2337_v44, %v12246_v0  ;;  %v3007_v57 = vcombine.high %v8962_v49, %v2985_v45 }
 0x490   :  { %2361 = vrot.lane.b32.xlu0 %v2335_v21, %s7824_s13  ;;  %v2436_v17 = vcombine.high %v2411_v3, %v2427_v11  ;;  %v2451_v50 = vcombine.low %v2418_v29, %v2434_v12  ;;  %v2452_v1 = vcombine.high %v2418_v29, %v2434_v12  ;;  %v2435_v25 = vcombine.low %v2411_v3, %v2427_v11 }
 0x491   :  { %v3100_v35 = vpop.permute.xlu0 %3099  ;;  %v2990_v58 = vcombine.low %v8964_v31, %v2983_v8  ;;  %v2352_v56 = vcombine.high %v8996_v24, %v12230_v32  ;;  %v2353_v27 = vcombine.high %v2335_v21, %v12230_v32  ;;  %v9024_v7 = vrot.slane %v3006_v38, %v12245_v41 }
 0x492   :  { %v2459_v46 = vrot.slane %v2451_v50, %v12246_v0  ;;  %v2450_v6 = vrot.slane %v2436_v17, %v12246_v0  ;;  %v8993_v37 = vrot.slane %v2452_v1, %v12246_v0  ;;  %v9009_v5 = vrot.slane %v2435_v25, %v12246_v0 }
 0x493   :  { %v3098_v54 = vpop.permute.xlu1 %3097  ;;  %v9016_v14 = vrot.slane %v2990_v58, %v12245_v41  ;;  %v3121_v28 = vcombine.low %v8966_v59, %v3100_v35  ;;  %v2991_v39 = vcombine.high %v8964_v31, %v2983_v8  ;;  %v2354_v19 = vcombine.high %v2344_v34, %v12230_v32 }
 0x494   :  { %2484 = vrot.lane.b32.xlu0 %v2459_v46, %s7825_s14  ;;  %2476 = vrot.lane.b32.xlu1 %v2450_v6, %s7824_s13  ;;  %v3105_v26 = vcombine.low %v8968_v33, %v3098_v54  ;;  %v2467_v9 = vcombine.high %v9009_v5, %v12230_v32  ;;  %v3106_v15 = vcombine.high %v8968_v33, %v3098_v54 }
 0x495   :  { %v2751_v52 = vpop.permute.xlu0 %2750  ;;  %v3023_v30 = vcombine.high %v9016_v14, %v9024_v7  ;;  %v2468_v61 = vcombine.high %v2450_v6, %v12230_v32  ;;  %v3122_v11 = vcombine.high %v8966_v59, %v3100_v35  ;;  %v3129_v12 = vrot.slane %v3121_v28, %v12245_v41 }
 0x496   :  { %v2772_v20 = vcombine.low %v8970_v60, %v2751_v52  ;;  %v9039_v2 = vrot.slane %v3105_v26, %v12245_v41  ;;  %v3005_v33 = vrot.slane %v2991_v39, %v12245_v41  ;;  %v3120_v8 = vrot.slane %v3106_v15, %v12245_v41 }
 0x497   :  { %v2749_v16 = vpop.permute.xlu1 %2748  ;;  %v9055_v23 = vrot.slane %v3023_v30, %v12246_v0  ;;  %v2469_v50 = vcombine.high %v2459_v46, %v12230_v32  ;;  %v3021_v42 = vrot.slane %v3007_v57, %v12245_v41  ;;  %v2773_v45 = vcombine.high %v8970_v60, %v2751_v52 }
 0x498   :  { %2492 = vrot.lane.b32.xlu0 %v8993_v37, %s7829_s18  ;;  %2369 = vrot.lane.b32.xlu1 %v2344_v34, %s7825_s14  ;;  %v2756_v18 = vcombine.low %v8972_v40, %v2749_v16  ;;  %v9044_v21 = vrot.slane %v2772_v20, %v12245_v41  ;;  %v2757_v3 = vcombine.high %v8972_v40, %v2749_v16 }
 0x499   :  { %v2636_v49 = vpop.permute.xlu0 %2635  ;;  %v3138_v17 = vcombine.high %v9039_v2, %v3129_v12  ;;  %v3136_v40 = vrot.slane %v3122_v11, %v12245_v41  ;;  %v3038_v1 = vcombine.low %v3005_v33, %v3021_v42  ;;  %v2787_v60 = vrot.slane %v2773_v45, %v12245_v41 }
 0x49a   :  { %v9034_v36 = vrot.slane %v2756_v18, %v12245_v41  ;;  %v2657_v47 = vcombine.low %v8974_v43, %v2636_v49  ;;  %v2771_v6 = vrot.slane %v2757_v3, %v12245_v41  ;;  %v2658_v38 = vcombine.high %v8974_v43, %v2636_v49 }
 0x49b   :  { %v2634_v31 = vpop.permute.xlu1 %2633  ;;  %v3153_v54 = vcombine.low %v3120_v8, %v3136_v40  ;;  %v3152_v44 = vrot.slane %v3138_v17, %v12246_v0  ;;  %v3046_v34 = vrot.slane %v3038_v1, %v12246_v0  ;;  %v3039_v52 = vcombine.high %v3005_v33, %v3021_v42 }
 0x49c   :  { %2357 = vrot.lane.b32.xlu0 %v2352_v56, %s7826_s15  ;;  %2377 = vrot.lane.b32.xlu1 %v9006_v10, %s7829_s18  ;;  %v2789_v29 = vcombine.high %v9034_v36, %v9044_v21  ;;  %v2641_v59 = vcombine.low %v8976_v13, %v2634_v31  ;;  %v2665_v25 = vrot.slane %v2657_v47, %v12245_v41 }
 0x49d   :  { %v2804_v35 = vcombine.low %v2771_v6, %v2787_v60  ;;  %v2642_v58 = vcombine.high %v8976_v13, %v2634_v31  ;;  %v3161_v16 = vrot.slane %v3153_v54, %v12246_v0  ;;  %v2672_v13 = vrot.slane %v2658_v38, %v12245_v41 }
 0x49e   :  { %v2803_v62 = vrot.slane %v2789_v29, %v12246_v0  ;;  %v2649_v46 = vrot.slane %v2641_v59, %v12245_v41  ;;  %v2805_v20 = vcombine.high %v2771_v6, %v2787_v60  ;;  %v3053_v28 = vrot.slane %v3039_v52, %v12246_v0 }
 0x49f   :  { %v2812_v18 = vrot.slane %v2804_v35, %v12246_v0  ;;  %v2656_v26 = vrot.slane %v2642_v58, %v12245_v41  ;;  %v3022_v43 = vcombine.low %v9016_v14, %v9024_v7  ;;  %v3137_v57 = vcombine.low %v9039_v2, %v3129_v12  ;;  %v9123_v29 = vpop.permute.xlu1 %2238 }
 0x4a0   :  { %2365 = vrot.lane.b32.xlu0 %v2353_v27, %s7827_s16  ;;  %2472 = vrot.lane.b32.xlu1 %v2467_v9, %s7826_s15  ;;  %v2674_v56 = vcombine.high %v2649_v46, %v2665_v25  ;;  %v3154_v27 = vcombine.high %v3120_v8, %v3136_v40  ;;  %v2673_v12 = vcombine.low %v2649_v46, %v2665_v25  ;;  %v9143_v40 = vpop.permute.xlu0 %2242 }
 0x4a1   :  { %v2689_v39 = vcombine.low %v2656_v26, %v2672_v13  ;;  %v2690_v15 = vcombine.high %v2656_v26, %v2672_v13  ;;  %v9100_v11 = vrot.slane %v3022_v43, %v12246_v0  ;;  %v3055_v3 = vcombine.high %v9055_v23, %v12230_v32  ;;  %12248 = vst [vmem:[#allocation9_spill] sm:$0xff] %v9143_v40 }
 0x4a2   :  { %v2688_v9 = vrot.slane %v2674_v56, %v12246_v0  ;;  %v3168_v30 = vrot.slane %v3154_v27, %v12246_v0  ;;  %v3170_v49 = vcombine.high %v3152_v44, %v12230_v32  ;;  %v9127_v8 = vrot.slane %v2673_v12, %v12246_v0 }
 0x4a3   :  { %v2697_v31 = vrot.slane %v2689_v39, %v12246_v0  ;;  %v2704_v14 = vrot.slane %v2690_v15, %v12246_v0  ;;  %v2821_v17 = vcombine.high %v2803_v62, %v12230_v32  ;;  %v3171_v42 = vcombine.high %v3161_v16, %v12230_v32 }
 0x4a4   :  { %2373 = vrot.lane.b32.xlu0 %v2354_v19, %s7828_s17  ;;  %2480 = vrot.lane.b32.xlu1 %v2468_v61, %s7827_s16  ;;  %v2788_v19 = vcombine.low %v9034_v36, %v9044_v21  ;;  %v2819_v61 = vrot.slane %v2805_v20, %v12246_v0  ;;  %v3054_v36 = vcombine.high %v9100_v11, %v12230_v32  ;;  %v9153_v54 = vpop.permute.xlu0 %2250 }
 0x4a5   :  { %v9111_v21 = vrot.slane %v3137_v57, %v12246_v0  ;;  %v2705_v59 = vcombine.high %v9127_v8, %v12230_v32  ;;  %v2822_v45 = vcombine.high %v2812_v18, %v12230_v32  ;;  %v2706_v1 = vcombine.high %v2688_v9, %v12230_v32  ;;  %12250 = vst [vmem:[#allocation3_spill] sm:$0xff] %v9153_v54 }
 0x4a6   :  { %v9106_v7 = vrot.slane %v2788_v19, %v12246_v0  ;;  %v3057_v6 = vcombine.high %v3053_v28, %v12230_v32  ;;  %v2470_v60 = vcombine.high %v8993_v37, %v12230_v32  ;;  %v2823_v25 = vcombine.high %v2819_v61, %v12230_v32 }
 0x4a7   :  { %v3169_v33 = vcombine.high %v9111_v21, %v12230_v32  ;;  %v2708_v58 = vcombine.high %v2704_v14, %v12230_v32  ;;  %v2232_v56 = vrot.slane %v2218_v53, %v12246_v0  ;;  %v2355_v37 = vcombine.high %v9006_v10, %v12230_v32 }
 0x4a8   :  { %3063 = vrot.lane.b32.xlu0 %v9055_v23, %s7824_s13  ;;  %2488 = vrot.lane.b32.xlu1 %v2469_v50, %s7828_s17  ;;  %v2820_v2 = vcombine.high %v9106_v7, %v12230_v32  ;;  %v9135_v50 = vpop.permute.xlu1 %2246  ;;  %v3056_v23 = vcombine.high %v3046_v34, %v12230_v32  ;;  %v9164_v35 = vpop.permute.xlu0 %2599 }
 0x4a9   :  { %12247 = vst [vmem:[#allocation14_spill] sm:$0xff] %v9135_v50 }
 0x4ac   :  { %2829 = vrot.lane.b32.xlu0 %v2803_v62, %s7824_s13  ;;  %3178 = vrot.lane.b32.xlu1 %v3152_v44, %s7824_s13  ;;  %v9145_v47 = vpop.permute.xlu1 %2254  ;;  %v2707_v62 = vcombine.high %v2697_v31, %v12230_v32  ;;  %v3172_v44 = vcombine.high %v3168_v30, %v12230_v32  ;;  %v9179_v38 = vpop.permute.xlu0 %2607 }
 0x4ad   :  { %12249 = vst [vmem:[#allocation8_spill] sm:$0xff] %v9145_v47 }
 0x4b0   :  { %3071 = vrot.lane.b32.xlu0 %v3046_v34, %s7825_s14  ;;  %3186 = vrot.lane.b32.xlu1 %v3161_v16, %s7825_s14  ;;  %v9155_v46 = vpop.permute.xlu1 %2948  ;;  %v2236_v16 = vcombine.high %v2232_v56, %v12230_v32  ;;  %v2596_v51 = vpop.permute.xlu0 %2595 }
 0x4b1   :  { %v2622_v0 = vsel %vm632_vm4, %v8930_v48, %v2596_v51 }
 0x4b2   :  { %v2623_v40 = vsel %vm306_vm11, %v2622_v0, %v9164_v35 }
 0x4b4   :  { %2837 = vrot.lane.b32.xlu0 %v2812_v18, %s7825_s14  ;;  %2714 = vrot.lane.b32.xlu1 %v2688_v9, %s7824_s13  ;;  %v9166_v34 = vpop.permute.xlu1 %2956  ;;  %v2604_v10 = vpop.permute.xlu0 %2603 }
 0x4b8   :  { %3079 = vrot.lane.b32.xlu0 %v3053_v28, %s7829_s18  ;;  %3194 = vrot.lane.b32.xlu1 %v3168_v30, %s7829_s18  ;;  %v9181_v52 = vpop.permute.xlu1 %2964  ;;  %v2612_v27 = vpop.permute.xlu0 %2611 }
 0x4bc   :  { %2845 = vrot.lane.b32.xlu0 %v2819_v61, %s7829_s18  ;;  %2722 = vrot.lane.b32.xlu1 %v2697_v31, %s7825_s14  ;;  %v9188_v53 = vpop.permute.xlu1 %2615  ;;  %v9190_v9 = vpop.permute.xlu0 %2619 }
 0x4c0   :  { %2730 = vrot.lane.b32.xlu0 %v2704_v14, %s7829_s18  ;;  %3059 = vrot.lane.b32.xlu1 %v3054_v36, %s7826_s15  ;;  %v2945_v18 = vpop.permute.xlu1 %2944 }
 0x4c1   :  { %v2971_v50 = vsel %vm632_vm4, %v8948_v55, %v2945_v18 }
 0x4c4   :  { %2825 = vrot.lane.b32.xlu0 %v2820_v2, %s7826_s15  ;;  %3174 = vrot.lane.b32.xlu1 %v3169_v33, %s7826_s15  ;;  %v2953_v26 = vpop.permute.xlu1 %2952 }
 0x4c8   :  { %3067 = vrot.lane.b32.xlu0 %v3055_v3, %s7827_s16  ;;  %3182 = vrot.lane.b32.xlu1 %v3170_v49, %s7827_s16  ;;  %v9192_v13 = vpop.permute.xlu1 %2960 }
 0x4cc   :  { %2833 = vrot.lane.b32.xlu0 %v2821_v17, %s7827_s16  ;;  %2710 = vrot.lane.b32.xlu1 %v2705_v59, %s7826_s15  ;;  %v9196_v28 = vpop.permute.xlu1 %2968 }
 0x4d0   :  { %3075 = vrot.lane.b32.xlu0 %v3056_v23, %s7828_s17  ;;  %3190 = vrot.lane.b32.xlu1 %v3171_v42, %s7828_s17 }
 0x4d4   :  { %2841 = vrot.lane.b32.xlu0 %v2822_v45, %s7828_s17  ;;  %2718 = vrot.lane.b32.xlu1 %v2706_v1, %s7827_s16 }
 0x4d8   :  { %3083 = vrot.lane.b32.xlu0 %v3057_v6, %s7830_s19  ;;  %2726 = vrot.lane.b32.xlu1 %v2707_v62, %s7828_s17 }
 0x4dc   :  { %3198 = vrot.lane.b32.xlu0 %v3172_v44, %s7830_s19  ;;  %2496 = vrot.lane.b32.xlu1 %v2470_v60, %s7830_s19 }
 0x4e0   :  { %2849 = vrot.lane.b32.xlu0 %v2823_v25, %s7830_s19  ;;  %2734 = vrot.lane.b32.xlu1 %v2708_v58, %s7830_s19 }
 0x4e4   :  { %2381 = vrot.lane.b32.xlu0 %v2355_v37, %s7830_s19  ;;  %2262 = vrot.lane.b32.xlu1 %v2236_v16, %s7830_s19 }
 0x4e8   :  { %2258 = vrot.lane.b32.xlu0 %v2232_v56, %s7829_s18 }
 0x4ec   :  { %1604 = vperm.xlu0 %7810, %v1601_v22  }
 0x502   :  { %v9194_v20 = vpop.permute.xlu0 %2361 }
 0x506   :  { %v9198_v43 = vpop.permute.xlu0 %2484  ;;  %v9200_v39 = vpop.permute.xlu1 %2476 }
 0x50a   :  { %v9202_v30 = vpop.permute.xlu0 %2492  ;;  %v9204_v19 = vpop.permute.xlu1 %2369 }
 0x50e   :  { %v2358_v15 = vpop.permute.xlu0 %2357  ;;  %v9206_v61 = vpop.permute.xlu1 %2377 }
 0x50f   :  { %12251 = vst [vmem:[#allocation4_spill] sm:$0xff] %v9206_v61 }
 0x512   :  { %v9208_v57 = vpop.permute.xlu0 %2365  ;;  %v2473_v31 = vpop.permute.xlu1 %2472 }
 0x516   :  { %v9210_v14 = vpop.permute.xlu0 %2373  ;;  %v2481_v36 = vpop.permute.xlu1 %2480 }
 0x51a   :  { %v3064_v2 = vpop.permute.xlu0 %3063  ;;  %v9212_v12 = vpop.permute.xlu1 %2488 }
 0x51e   :  { %v2830_v33 = vpop.permute.xlu0 %2829  ;;  %v3179_v3 = vpop.permute.xlu1 %3178 }
 0x522   :  { %v3072_v49 = vpop.permute.xlu0 %3071  ;;  %v3187_v17 = vpop.permute.xlu1 %3186 }
 0x526   :  { %v2838_v59 = vpop.permute.xlu0 %2837  ;;  %v2715_v23 = vpop.permute.xlu1 %2714 }
 0x52a   :  { %v3080_v42 = vpop.permute.xlu0 %3079  ;;  %v3195_v45 = vpop.permute.xlu1 %3194 }
 0x52e   :  { %v9214_v1 = vpop.permute.xlu0 %2845  ;;  %v2723_v6 = vpop.permute.xlu1 %2722 }
 0x532   :  { %v9216_v62 = vpop.permute.xlu0 %2730  ;;  %v3060_v44 = vpop.permute.xlu1 %3059 }
 0x533   :  { %v3086_v16 = vsel %vm632_vm4, %v9100_v11, %v3060_v44  ;;  %v2624_v11 = vsel %vm12253_vm3, %v2623_v40, %v2604_v10  ;;  %vm12255_vm3 = vmmov %vm12254_vm0 }
 0x534   :  { %v3087_v41 = vsel %vm306_vm11, %v3086_v16, %v3064_v2  ;;  %v2972_v2 = vsel %vm306_vm11, %v2971_v50, %v9155_v46  ;;  %v2625_v40 = vsel %vm637_vm6, %v2624_v11, %v9179_v38 }
 0x535   :  { %v2973_v0 = vsel %vm12254_vm0, %v2972_v2, %v2953_v26  ;;  %v2626_v50 = vsel %vm639_vm7, %v2625_v40, %v2612_v27  ;;  %v2384_v27 = vsel %vm632_vm4, %v8996_v24, %v2358_v15 }
 0x536   :  { %v2826_v60 = vpop.permute.xlu0 %2825  ;;  %v3175_v25 = vpop.permute.xlu1 %3174  ;;  %v2974_v10 = vsel %vm637_vm6, %v2973_v0, %v9166_v34  ;;  %v12262_v0 = vld [vmem:[#allocation8_spill] sm:$0xff] }
 0x537   :  { %v3201_v47 = vsel %vm632_vm4, %v9111_v21, %v3175_v25 }
 0x538   :  { %v3202_v44 = vsel %vm306_vm11, %v3201_v47, %v3179_v3  ;;  %v2499_v47 = vsel %vm632_vm4, %v9009_v5, %v2473_v31 }
 0x53a   :  { %v3068_v58 = vpop.permute.xlu0 %3067  ;;  %v3183_v56 = vpop.permute.xlu1 %3182 }
 0x53b   :  { %v3088_v54 = vsel %vm12252_vm2, %v3087_v41, %v3068_v58  ;;  %v2852_v41 = vsel %vm632_vm4, %v9106_v7, %v2826_v60  ;;  %v3203_v21 = vsel %vm12252_vm2, %v3202_v44, %v3183_v56  ;;  %vm12256_vm2 = vmmov %vm12254_vm0  ;;  %v12258_v44 = vld [vmem:[#allocation14_spill] sm:$0xff] }
 0x53c   :  { %v3089_v48 = vsel %vm637_vm6, %v3088_v54, %v3072_v49  ;;  %v2853_v7 = vsel %vm306_vm11, %v2852_v41, %v2830_v33  ;;  %v3204_v46 = vsel %vm637_vm6, %v3203_v21, %v3187_v17  ;;  %v2500_v33 = vsel %vm306_vm11, %v2499_v47, %v9200_v39  ;;  %v12260_v41 = vld [vmem:[#allocation4_spill] sm:$0xff] }
 0x53d   :  { %v2501_v34 = vsel %vm12255_vm3, %v2500_v33, %v2481_v36  ;;  %v2385_v39 = vsel %vm306_vm11, %v2384_v27, %v9194_v20  ;;  %vm12259_vm3 = vmmov %vm12254_vm0 }
 0x53e   :  { %v2834_v37 = vpop.permute.xlu0 %2833  ;;  %v2711_v22 = vpop.permute.xlu1 %2710 }
 0x53f   :  { %v2737_v54 = vsel %vm632_vm4, %v9127_v8, %v2711_v22  ;;  %v2854_v38 = vsel %vm12254_vm0, %v2853_v7, %v2834_v37  ;;  %v2975_v8 = vsel %vm639_vm7, %v2974_v10, %v9192_v13  ;;  %v12257_v22 = vld [vmem:[#allocation9_spill] sm:$0xff] }
 0x540   :  { %v2738_v3 = vsel %vm306_vm11, %v2737_v54, %v2715_v23  ;;  %v2976_v24 = vsel %vm641_vm8, %v2975_v8, %v9181_v52 }
 0x541   :  { %v2977_v25 = vsel %vm643_vm9, %v2976_v24, %v9196_v28  ;;  %v2265_v28 = vsel %vm632_vm4, %v8898_v63, %v9123_v29 }
 0x542   :  { %v3076_v4 = vpop.permute.xlu0 %3075  ;;  %v3191_v61 = vpop.permute.xlu1 %3190 }
 0x543   :  { %v3090_v55 = vsel %vm639_vm7, %v3089_v48, %v3076_v4  ;;  %v3205_v26 = vsel %vm639_vm7, %v3204_v46, %v3191_v61  ;;  %v2627_v61 = vsel %vm641_vm8, %v2626_v50, %v9188_v53  ;;  %v2386_v53 = vsel %vm12254_vm0, %v2385_v39, %v9208_v57 }
 0x544   :  { %v3091_v4 = vsel %vm641_vm8, %v3090_v55, %v3080_v42  ;;  %v2855_v42 = vsel %vm637_vm6, %v2854_v38, %v2838_v59  ;;  %v3206_v13 = vsel %vm641_vm8, %v3205_v26, %v3195_v45  ;;  %v2502_v59 = vsel %vm637_vm6, %v2501_v34, %v9198_v43  ;;  %v12261_v55 = vld [vmem:[#allocation3_spill] sm:$0xff] }
 0x545   :  { %v2503_v52 = vsel %vm639_vm7, %v2502_v59, %v9212_v12  ;;  %v2387_v12 = vsel %vm637_vm6, %v2386_v53, %v9204_v19  ;;  %v12263_v38 = vld [vmem:[#allocation7_spill] sm:$0xff] }
 0x546   :  { %v2842_v51 = vpop.permute.xlu0 %2841  ;;  %v2719_v18 = vpop.permute.xlu1 %2718  ;;  %v2388_v16 = vsel %vm639_vm7, %v2387_v12, %v9210_v14  ;;  %v2504_v63 = vsel %vm641_vm8, %v2503_v52, %v9202_v30 }
 0x547   :  { %v2739_v49 = vsel %vm12256_vm2, %v2738_v3, %v2719_v18  ;;  %v2856_v15 = vsel %vm639_vm7, %v2855_v42, %v2842_v51  ;;  %v2389_v30 = vsel %vm641_vm8, %v2388_v16, %v12260_v41  ;;  %vm1684_vm2 = vcmask 523264  }
 0x548   :  { %v2740_v45 = vsel %vm637_vm6, %v2739_v49, %v2723_v6  ;;  %v2857_v43 = vsel %vm641_vm8, %v2856_v15, %v9214_v1  ;;  %v2628_v6 = vsel %vm643_vm9, %v2627_v61, %v9190_v9  ;;  %v2266_v9 = vsel %vm306_vm11, %v2265_v28, %v12257_v22 }
 0x549   :  { %v2267_v48 = vsel %vm12259_vm3, %v2266_v9, %v12258_v44  ;;  %v3212_v51 = vrot.slane %v2628_v6, 4 }
 0x54a   :  { %v3084_v35 = vpop.permute.xlu0 %3083  ;;  %v2727_v31 = vpop.permute.xlu1 %2726  ;;  %v2268_v18 = vsel %vm637_vm6, %v2267_v48, %v12261_v55 }
 0x54b   :  { %v3092_v5 = vsel %vm643_vm9, %v3091_v4, %v3084_v35  ;;  %v2741_v20 = vsel %vm639_vm7, %v2740_v45, %v2727_v31  ;;  %v2269_v40 = vsel %vm639_vm7, %v2268_v18, %v12262_v0  ;;  %v7816_v4 = vld [vmem:[%s11985_s1] sm:$0xff] }
 0x54c   :  { %v3218_v17 = vrot.slane %v3092_v5, 4  ;;  %v2742_v1 = vsel %vm641_vm8, %v2741_v20, %v9216_v62  ;;  %v3311_v45 = vld [vmem:[%s11987_s3] sm:$0xff]  ;;  %s7835_s3 = smov 88  }
 0x54e   :  { %v3199_v60 = vpop.permute.xlu0 %3198  ;;  %v2497_v23 = vpop.permute.xlu1 %2496  ;;  %v3223_v58 = vsel %vm1595_vm10, %v2977_v25, %v3218_v17 }
 0x54f   :  { %v3207_v36 = vsel %vm643_vm9, %v3206_v13, %v3199_v60  ;;  %v2505_v19 = vsel %vm643_vm9, %v2504_v63, %v2497_v23 }
 0x550   :  { %7733 = vmatpush3.msk.msra.mxu1 %vm1595_vm10, %v3207_v36  ;;  %v3221_v21 = vsel %vm1595_vm10, %v2505_v19, %v3212_v51 }
 0x551   :  { %7734 = vmatprep.subr.mxu1 %v12230_v32 }
 0x552   :  { %v2850_v57 = vpop.permute.xlu0 %2849  ;;  %7735 = vmatpush3.msra.mxu1 %v3223_v58  ;;  %v2735_v37 = vpop.permute.xlu1 %2734  ;;  %v3315_v58 = vld [vmem:[%s11988_s4] sm:$0xff]  ;;  %s7837_s4 = smov 72  }
 0x553   :  { %v2858_v56 = vsel %vm643_vm9, %v2857_v43, %v2850_v57  ;;  %7736 = vmatprep.subr.mxu1 %v12230_v32  ;;  %v2743_v11 = vsel %vm643_vm9, %v2742_v1, %v2735_v37 }
 0x554   :  { %v3215_v29 = vrot.slane %v2858_v56, 4 }
 0x556   :  { %v2382_v2 = vpop.permute.xlu0 %2381  ;;  %v3222_v14 = vsel %vm1595_vm10, %v2743_v11, %v3215_v29  ;;  %v2263_v50 = vpop.permute.xlu1 %2262 }
 0x557   :  { %7737 = vmatpush3.msra.mxu1 %v3222_v14  ;;  %v2390_v62 = vsel %vm643_vm9, %v2389_v30, %v2382_v2  ;;  %v12264_v14 = vld [vmem:[#allocation5_spill] sm:$0xff] }
 0x558   :  { %7738 = vmatprep.subr.mxu1 %v12230_v32  ;;  %v3209_v54 = vrot.slane %v2390_v62, 4 }
 0x559   :  { %7739 = vmatpush3.msra.mxu1 %v3221_v21 }
 0x55a   :  { %v2259_v47 = vpop.permute.xlu0 %2258  ;;  %7740 = vmatprep.subr.mxu1 %v12230_v32 }
 0x55b   :  { %v2270_v7 = vsel %vm641_vm8, %v2269_v40, %v2259_v47 }
 0x55c   :  { %v2271_v46 = vsel %vm643_vm9, %v2270_v7, %v2263_v50 }
 0x55d   :  { %v3220_v35 = vsel %vm1595_vm10, %v2271_v46, %v3209_v54 }
 0x55e   :  { %7741 = vmatpush3.msra.mxu1 %v3220_v35 }
 0x55f   :  { %7743 = vmatmul.mubr.msk.f32.vlgmr.msra.gmra.mxu1 %vm1607_vm5, %v7816_v4  ;;  %7766 = vmatprep.subr.mxu1 %v12230_v32 }
 0x560   :  { %7784 = vmatprep.mubr.msk.f32.mxu1 %vm7831_vm1, %v12230_v32 }
 0x567   :  { %v1605_v10 = vpop.permute.xlu0 %1604 }
 0x568   :  { %v1681_v26 = vadd.f32 %v12263_v38, %v1605_v10 }
 0x56a   :  { %v1685_v5 = vsel %vm1684_vm2, %v1681_v26, 0.0  ;;  %v1689_v31 = vmul.f32 %v1681_v26, %v1681_v26 }
 0x56b   :  { %1686 = vadd.xlane.f32.xlu1 %v1685_v5 }
 0x56c   :  { %v1690_v8 = vsel %vm1684_vm2, %v1689_v31, 0.0 }
 0x56f   :  { %1691 = vadd.xlane.f32.xlu1 %v1690_v8 }
 0x5f4   :  { %v1687_v61 = vpop.xlane.xlu1 %1686 }
 0x5f8   :  { %v1692_v24 = vpop.xlane.xlu1 %1691 }
 0x61f   :  { %v3293_v27 = vpop.f32.mrf.mxu1 }
 0x620   :  { %v3294_v33 = vadd.f32 %v3293_v27, %v1605_v10 }
 0x621   :  { %v7744_v3 = vpop.f32.mrf.mxu1 }
 0x622   :  { %v3297_v34 = vsel %vm1684_vm2, %v3294_v33, 0.0  ;;  %v3301_v49 = vmul.f32 %v3294_v33, %v3294_v33 }
 0x623   :  { %3298 = vadd.xlane.f32.xlu0 %v3297_v34 }
 0x624   :  { %v3302_v17 = vsel %vm1684_vm2, %v3301_v49, 0.0 }
 0x627   :  { %3303 = vadd.xlane.f32.xlu0 %v3302_v17 }
 0x6ac   :  { %v3299_v42 = vpop.xlane.xlu0 %3298 }
 0x6ad   :  { %v3300_v60 = vadd.f32 %v3299_v42, %v1687_v61 }
 0x6af   :  { %v3306_v13 = vmul.f32 0.0078125, %v3300_v60 }
 0x6b0   :  { %v3304_v39 = vpop.xlane.xlu0 %3303 }
 0x6b1   :  { %v3305_v15 = vadd.f32 %v3304_v39, %v1692_v24  ;;  %v3308_v36 = vmul.f32 %v3306_v13, %v3306_v13 }
 0x6b3   :  { %v3307_v23 = vmul.f32 0.0078125, %v3305_v15 }
 0x6b5   :  { %v3309_v25 = vsub.f32 %v3307_v23, %v3308_v36 }
 0x6b7   :  { %v3310_v53 = vmax.f32 %v3309_v25, 0.0 }
 0x6b9   :  { %v3312_v59 = vadd.f32 1e-05, %v3310_v53 }
 0x6bb   :  { %7812 = vrsqrt.f32 %v3312_v59 }
 0x6c8   :  { %v7813_v52 = vpop.eup %7812 }
 0x6c9   :  { %v3314_v20 = vmul.f32 %v7813_v52, %v3311_v45 }
 0x6cb   :  { %3320 = vperm.xlu1 %7811, %v3314_v20   ;;  %v3316_v28 = vmul.f32 %v3314_v20, %v3306_v13 }
 0x6cd   :  { %v3317_v43 = vsub.f32 %v3315_v58, %v3316_v28 }
 0x6cf   :  { %3326 = vperm.xlu0 %7810, %v3317_v43  }
 0x746   :  { %v3321_v57 = vpop.permute.xlu1 %3320 }
 0x747   :  { %v3323_v6 = vmul.f32 %v3321_v57, %v1681_v26  ;;  %v5430_v16 = vmul.f32 %v3321_v57, %v3294_v33  ;;  %v12265_v26 = vld [vmem:[#allocation6_spill] sm:$0xff] }
 0x74a   :  { %v3327_v12 = vpop.permute.xlu0 %3326 }
 0x74b   :  { %v3329_v56 = vadd.f32 %v3327_v12, %v3323_v6  ;;  %v5431_v63 = vadd.f32 %v5430_v16, %v3327_v12 }
 0x74d   :  { %v3330_v37 = vmax.f32 %v3329_v56, 0.0  ;;  %v9342_v29 = vmax.f32 %v5431_v63, 0.0 }
 0x74f   :  { %3338 = vrot.lane.b32.xlu0 %v3330_v37, %s7833_s25  ;;  %3332 = vrot.lane.b32.xlu1 %v3330_v37, %s7834_s26 }
 0x753   :  { %3344 = vrot.lane.b32.xlu0 %v3330_v37, %s7835_s3  ;;  %3335 = vrot.lane.b32.xlu1 %v3330_v37, %s7836_s27 }
 0x757   :  { %3350 = vrot.lane.b32.xlu0 %v3330_v37, %s7837_s4  ;;  %3341 = vrot.lane.b32.xlu1 %v3330_v37, %s7838_s28 }
 0x75b   :  { %3347 = vrot.lane.b32.xlu1 %v3330_v37, %s7839_s0  ;;  %5437 = vrot.lane.b32.xlu0 %v9342_v29, %s7836_s27 }
 0x75f   :  { %5443 = vrot.lane.b32.xlu0 %v9342_v29, %s7838_s28  ;;  %5434 = vrot.lane.b32.xlu1 %v9342_v29, %s7834_s26 }
 0x763   :  { %5449 = vrot.lane.b32.xlu0 %v9342_v29, %s7839_s0  ;;  %5440 = vrot.lane.b32.xlu1 %v9342_v29, %s7833_s25 }
 0x767   :  { %5446 = vrot.lane.b32.xlu1 %v9342_v29, %s7835_s3 }
 0x76b   :  { %5452 = vrot.lane.b32.xlu1 %v9342_v29, %s7837_s4 }
 0x7c1   :  { %v3339_v1 = vpop.permute.xlu0 %3338  ;;  %v3333_v22 = vpop.permute.xlu1 %3332 }
 0x7c2   :  { %v3369_v51 = vcombine.low %v3333_v22, %v3339_v1  ;;  %v3370_v46 = vcombine.high %v3333_v22, %v3339_v1 }
 0x7c4   :  { %v3377_v55 = vrot.slane %v3369_v51, %v12264_v14  ;;  %v3384_v34 = vrot.slane %v3370_v46, %v12264_v14 }
 0x7c5   :  { %v3345_v9 = vpop.permute.xlu0 %3344  ;;  %v3336_v19 = vpop.permute.xlu1 %3335 }
 0x7c6   :  { %v3353_v11 = vcombine.low %v3330_v37, %v3336_v19  ;;  %v3354_v47 = vcombine.high %v3330_v37, %v3336_v19 }
 0x7c8   :  { %v3361_v41 = vrot.slane %v3353_v11, %v12264_v14  ;;  %v3368_v31 = vrot.slane %v3354_v47, %v12264_v14 }
 0x7c9   :  { %v3351_v44 = vpop.permute.xlu0 %3350  ;;  %v3342_v48 = vpop.permute.xlu1 %3341 }
 0x7ca   :  { %v3401_v2 = vcombine.low %v3345_v9, %v3351_v44  ;;  %v3417_v54 = vcombine.low %v3361_v41, %v3377_v55  ;;  %v3402_v50 = vcombine.high %v3345_v9, %v3351_v44  ;;  %v3418_v8 = vcombine.high %v3361_v41, %v3377_v55 }
 0x7cb   :  { %v3433_v13 = vcombine.low %v3368_v31, %v3384_v34  ;;  %v3434_v20 = vcombine.high %v3368_v31, %v3384_v34 }
 0x7cc   :  { %v3409_v0 = vrot.slane %v3401_v2, %v12264_v14  ;;  %v3416_v27 = vrot.slane %v3402_v50, %v12264_v14  ;;  %v3425_v3 = vrot.slane %v3417_v54, %v12265_v26  ;;  %v3432_v15 = vrot.slane %v3418_v8, %v12265_v26 }
 0x7cd   :  { %v3348_v30 = vpop.permute.xlu1 %3347  ;;  %v9352_v62 = vpop.permute.xlu0 %5437  ;;  %v3441_v28 = vrot.slane %v3433_v13, %v12265_v26  ;;  %v3448_v19 = vrot.slane %v3434_v20, %v12265_v26 }
 0x7ce   :  { %v3385_v21 = vcombine.low %v3342_v48, %v3348_v30  ;;  %v3386_v18 = vcombine.high %v3342_v48, %v3348_v30  ;;  %v5455_v36 = vcombine.low %v9342_v29, %v9352_v62  ;;  %v5456_v11 = vcombine.high %v9342_v29, %v9352_v62 }
 0x7d0   :  { %v3393_v40 = vrot.slane %v3385_v21, %v12264_v14  ;;  %v3400_v4 = vrot.slane %v3386_v18, %v12264_v14  ;;  %v5463_v43 = vrot.slane %v5455_v36, %v12264_v14 }
 0x7d1   :  { %v5435_v7 = vpop.permute.xlu1 %5434  ;;  %v5444_v38 = vpop.permute.xlu0 %5443 }
 0x7d2   :  { %v3449_v35 = vcombine.low %v3393_v40, %v3409_v0  ;;  %v3450_v10 = vcombine.high %v3393_v40, %v3409_v0  ;;  %v3465_v49 = vcombine.low %v3400_v4, %v3416_v27  ;;  %v3466_v23 = vcombine.high %v3400_v4, %v3416_v27 }
 0x7d3   :  { %v5470_v40 = vrot.slane %v5456_v11, %v12264_v14 }
 0x7d4   :  { %v3457_v5 = vrot.slane %v3449_v35, %v12265_v26  ;;  %v3464_v42 = vrot.slane %v3450_v10, %v12265_v26  ;;  %v3473_v59 = vrot.slane %v3465_v49, %v12265_v26  ;;  %v3480_v37 = vrot.slane %v3466_v23, %v12265_v26 }
 0x7d5   :  { %v5441_v33 = vpop.permute.xlu1 %5440  ;;  %v5450_v24 = vpop.permute.xlu0 %5449 }
 0x7d6   :  { %v3481_v17 = vcombine.low %v3425_v3, %v3457_v5  ;;  %v3482_v61 = vcombine.high %v3425_v3, %v3457_v5  ;;  %v5471_v60 = vcombine.low %v5435_v7, %v5441_v33  ;;  %v3483_v25 = vcombine.low %v3432_v15, %v3464_v42 }
 0x7d7   :  { %v3484_v53 = vcombine.high %v3432_v15, %v3464_v42  ;;  %v5487_v45 = vcombine.low %v5444_v38, %v5450_v24  ;;  %v3485_v12 = vcombine.low %v3441_v28, %v3473_v59  ;;  %v3486_v56 = vcombine.high %v3441_v28, %v3473_v59 }
 0x7d8   :  { %3497 = vrot.lane.b32.xlu0 %v3481_v17, %s7818_s10  ;;  %3499 = vrot.lane.b32.xlu1 %v3482_v61, %s7818_s10  ;;  %v5479_v52 = vrot.slane %v5471_v60, %v12264_v14  ;;  %v5488_v22 = vcombine.high %v5444_v38, %v5450_v24  ;;  %v5472_v9 = vcombine.high %v5435_v7, %v5441_v33 }
 0x7d9   :  { %v5447_v39 = vpop.permute.xlu1 %5446  ;;  %v5495_v16 = vrot.slane %v5487_v45, %v12264_v14  ;;  %v3487_v2 = vcombine.low %v3448_v19, %v3480_v37  ;;  %v3488_v41 = vcombine.high %v3448_v19, %v3480_v37 }
 0x7da   :  { %v5519_v63 = vcombine.low %v5463_v43, %v5479_v52  ;;  %v5502_v55 = vrot.slane %v5488_v22, %v12264_v14  ;;  %v5486_v18 = vrot.slane %v5472_v9, %v12264_v14  ;;  %v5520_v0 = vcombine.high %v5463_v43, %v5479_v52 }
 0x7dc   :  { %3501 = vrot.lane.b32.xlu0 %v3483_v25, %s7818_s10  ;;  %3503 = vrot.lane.b32.xlu1 %v3484_v53, %s7818_s10  ;;  %v5527_v30 = vrot.slane %v5519_v63, %v12265_v26  ;;  %v5535_v50 = vcombine.low %v5470_v40, %v5486_v18  ;;  %v5534_v7 = vrot.slane %v5520_v0, %v12265_v26 }
 0x7dd   :  { %v5453_v58 = vpop.permute.xlu1 %5452  ;;  %v5536_v38 = vcombine.high %v5470_v40, %v5486_v18 }
 0x7de   :  { %v5503_v57 = vcombine.low %v5447_v39, %v5453_v58  ;;  %v5504_v6 = vcombine.high %v5447_v39, %v5453_v58  ;;  %v5543_v5 = vrot.slane %v5535_v50, %v12265_v26 }
 0x7df   :  { %v5550_v33 = vrot.slane %v5536_v38, %v12265_v26 }
 0x7e0   :  { %v5511_v1 = vrot.slane %v5503_v57, %v12264_v14  ;;  %3505 = vrot.lane.b32.xlu0 %v3485_v12, %s7818_s10  ;;  %3507 = vrot.lane.b32.xlu1 %v3486_v56, %s7818_s10  ;;  %v5518_v48 = vrot.slane %v5504_v6, %v12264_v14 }
 0x7e2   :  { %v5551_v44 = vcombine.low %v5495_v16, %v5511_v1  ;;  %v5552_v51 = vcombine.high %v5495_v16, %v5511_v1  ;;  %v5567_v47 = vcombine.low %v5502_v55, %v5518_v48  ;;  %v5568_v46 = vcombine.high %v5502_v55, %v5518_v48 }
 0x7e4   :  { %v5559_v21 = vrot.slane %v5551_v44, %v12265_v26  ;;  %3509 = vrot.lane.b32.xlu0 %v3487_v2, %s7818_s10  ;;  %3511 = vrot.lane.b32.xlu1 %v3488_v41, %s7818_s10  ;;  %v5566_v54 = vrot.slane %v5552_v51, %v12265_v26  ;;  %v5575_v10 = vrot.slane %v5567_v47, %v12265_v26 }
 0x7e5   :  { %v5582_v27 = vrot.slane %v5568_v46, %v12265_v26 }
 0x7e6   :  { %v5584_v29 = vcombine.high %v5527_v30, %v5559_v21  ;;  %v5583_v62 = vcombine.low %v5527_v30, %v5559_v21  ;;  %v5586_v35 = vcombine.high %v5534_v7, %v5566_v54  ;;  %v5585_v4 = vcombine.low %v5534_v7, %v5566_v54 }
 0x7e7   :  { %v5588_v31 = vcombine.high %v5543_v5, %v5575_v10  ;;  %v5587_v8 = vcombine.low %v5543_v5, %v5575_v10  ;;  %v5590_v3 = vcombine.high %v5550_v33, %v5582_v27  ;;  %v5589_v34 = vcombine.low %v5550_v33, %v5582_v27 }
 0x7e8   :  { %5601 = vrot.lane.b32.xlu1 %v5584_v29, %s7818_s10  ;;  %5599 = vrot.lane.b32.xlu0 %v5583_v62, %s7818_s10 }
 0x7ec   :  { %5605 = vrot.lane.b32.xlu1 %v5586_v35, %s7818_s10  ;;  %5603 = vrot.lane.b32.xlu0 %v5585_v4, %s7818_s10 }
 0x7f0   :  { %5609 = vrot.lane.b32.xlu1 %v5588_v31, %s7818_s10  ;;  %5607 = vrot.lane.b32.xlu0 %v5587_v8, %s7818_s10 }
 0x7f4   :  { %5613 = vrot.lane.b32.xlu1 %v5590_v3, %s7818_s10  ;;  %5611 = vrot.lane.b32.xlu0 %v5589_v34, %s7818_s10 }
 0x84a   :  { %v3498_v49 = vpop.permute.xlu0 %3497  ;;  %v3500_v17 = vpop.permute.xlu1 %3499 }
 0x84b   :  { %v3521_v61 = vsel %vm505_vm12, 0.0, %v3498_v49  ;;  %v3522_v42 = vsel %vm505_vm12, 0.0, %v3500_v17 }
 0x84c   :  { %v3529_v60 = vsel %vm510_vm13, %v3521_v61, 0.0  ;;  %v3530_v13 = vsel %vm510_vm13, %v3522_v42, 0.0 }
 0x84d   :  { %v3545_v24 = vrot.slane %v3529_v60, 7  ;;  %v3546_v39 = vrot.slane %v3530_v13, 7 }
 0x84e   :  { %v3502_v15 = vpop.permute.xlu0 %3501  ;;  %v3504_v36 = vpop.permute.xlu1 %3503 }
 0x84f   :  { %v9410_v23 = vsel %vm527_vm14, 0.0, %v3545_v24  ;;  %v9413_v25 = vsel %vm527_vm14, %v3545_v24, 0.0  ;;  %v9416_v53 = vsel %vm527_vm14, 0.0, %v3546_v39  ;;  %v9419_v59 = vsel %vm527_vm14, %v3546_v39, 0.0 }
 0x850   :  { %v4748_v45 = vrot.slane %v9413_v25, 2  ;;  %v4751_v52 = vrot.slane %v9419_v59, 2  ;;  %3756 = vrot.lane.b32.xlu1 %v9410_v23, %s7820_s11  ;;  %3758 = vrot.lane.b32.xlu0 %v9416_v53, %s7820_s11  ;;  %v3523_v20 = vsel %vm505_vm12, 0.0, %v3502_v15  ;;  %v3524_v58 = vsel %vm505_vm12, 0.0, %v3504_v36 }
 0x851   :  { %v4747_v28 = vrot.slane %v9410_v23, 2  ;;  %v4750_v43 = vrot.slane %v9416_v53, 2  ;;  %v9432_v57 = vsel %vm510_vm13, %v3523_v20, 0.0  ;;  %v9435_v6 = vsel %vm510_vm13, %v3524_v58, 0.0 }
 0x852   :  { %v3506_v12 = vpop.permute.xlu0 %3505  ;;  %v3508_v56 = vpop.permute.xlu1 %3507  ;;  %v3547_v37 = vrot.slane %v9432_v57, 7  ;;  %v3548_v16 = vrot.slane %v9435_v6, 7 }
 0x853   :  { %v3525_v63 = vsel %vm505_vm12, 0.0, %v3506_v12  ;;  %v3526_v1 = vsel %vm505_vm12, 0.0, %v3508_v56  ;;  %v9442_v22 = vsel %vm1233_vm15, %v4747_v28, %v4748_v45  ;;  %v9445_v9 = vsel %vm1233_vm15, %v4750_v43, %v4751_v52 }
 0x854   :  { %v9450_v19 = vsel %vm527_vm14, 0.0, %v3547_v37  ;;  %v9455_v11 = vsel %vm527_vm14, 0.0, %v3548_v16  ;;  %v9458_v44 = vsel %vm510_vm13, %v3525_v63, 0.0  ;;  %v9461_v48 = vsel %vm510_vm13, %v3526_v1, 0.0 }
 0x855   :  { %v3577_v51 = vcombine.low %v9410_v23, %v9450_v19  ;;  %3760 = vrot.lane.b32.xlu1 %v9450_v19, %s7820_s11  ;;  %3762 = vrot.lane.b32.xlu0 %v9455_v11, %s7820_s11  ;;  %v3549_v18 = vrot.slane %v9458_v44, 7  ;;  %v3550_v0 = vrot.slane %v9461_v48, 7  ;;  %v9644_v57 = vsel %vm527_vm14, %v3548_v16, 0.0 }
 0x856   :  { %v3510_v41 = vpop.permute.xlu0 %3509  ;;  %v3512_v30 = vpop.permute.xlu1 %3511  ;;  %v4160_v16 = vrot.slane %v9450_v19, 1  ;;  %v12280_v32 = vcombine.low %v9416_v53, %v9455_v11 }
 0x857   :  { %v3527_v29 = vsel %vm505_vm12, 0.0, %v3510_v41  ;;  %v3528_v62 = vsel %vm505_vm12, 0.0, %v3512_v30  ;;  %v9488_v54 = vsel %vm527_vm14, 0.0, %v3549_v18  ;;  %v9493_v50 = vsel %vm527_vm14, 0.0, %v3550_v0 }
 0x858   :  { %v9480_v40 = vsel %vm510_vm13, %v3527_v29, 0.0  ;;  %v9483_v47 = vsel %vm510_vm13, %v3528_v62, 0.0  ;;  %v3585_v21 = vrot.slane %v3577_v51, %v12264_v14 }
 0x859   :  { %3764 = vrot.lane.b32.xlu1 %v9488_v54, %s7820_s11  ;;  %3766 = vrot.lane.b32.xlu0 %v9493_v50, %s7820_s11  ;;  %v3551_v35 = vrot.slane %v9480_v40, 7  ;;  %v3552_v4 = vrot.slane %v9483_v47, 7  ;;  %v4164_v40 = vrot.slane %v9644_v57, 1 }
 0x85a   :  { %v5600_v7 = vpop.permute.xlu0 %5599  ;;  %v5602_v46 = vpop.permute.xlu1 %5601 }
 0x85b   :  { %v5623_v10 = vsel %vm505_vm12, 0.0, %v5600_v7  ;;  %v9505_v38 = vsel %vm527_vm14, 0.0, %v3551_v35  ;;  %v9510_v5 = vsel %vm527_vm14, 0.0, %v3552_v4  ;;  %v5624_v31 = vsel %vm505_vm12, 0.0, %v5602_v46 }
 0x85c   :  { %v9526_v17 = vsel %vm510_vm13, %v5623_v10, 0.0  ;;  %v9529_v61 = vsel %vm510_vm13, %v5624_v31, 0.0  ;;  %v4157_v7 = vrot.slane %v9416_v53, 1  ;;  %v9664_v6 = vsel %vm527_vm14, %v3552_v4, 0.0 }
 0x85d   :  { %3768 = vrot.lane.b32.xlu1 %v9505_v38, %s7820_s11  ;;  %3951 = vrot.lane.b32.xlu0 %v9410_v23, %s7821_s12  ;;  %v5647_v36 = vrot.slane %v9526_v17, 7  ;;  %v5648_v45 = vrot.slane %v9529_v61, 7  ;;  %v4176_v29 = vrot.slane %v9664_v6, 1 }
 0x85e   :  { %v5604_v8 = vpop.permute.xlu0 %5603  ;;  %v5606_v27 = vpop.permute.xlu1 %5605 }
 0x85f   :  { %v5625_v42 = vsel %vm505_vm12, 0.0, %v5604_v8  ;;  %v5626_v60 = vsel %vm505_vm12, 0.0, %v5606_v27  ;;  %v9549_v28 = vsel %vm527_vm14, 0.0, %v5647_v36  ;;  %v9567_v41 = vsel %vm527_vm14, 0.0, %v5648_v45 }
 0x860   :  { %v9534_v13 = vsel %vm510_vm13, %v5625_v42, 0.0  ;;  %v9537_v24 = vsel %vm510_vm13, %v5626_v60, 0.0  ;;  %v9673_v48 = vsel %vm527_vm14, %v5647_v36, 0.0 }
 0x861   :  { %3953 = vrot.lane.b32.xlu1 %v9416_v53, %s7821_s12  ;;  %3955 = vrot.lane.b32.xlu0 %v9450_v19, %s7821_s12  ;;  %v5649_v52 = vrot.slane %v9534_v13, 7  ;;  %v5650_v20 = vrot.slane %v9537_v24, 7  ;;  %v4175_v13 = vrot.slane %v9510_v5, 1 }
 0x862   :  { %v5608_v39 = vpop.permute.xlu0 %5607  ;;  %v5610_v15 = vpop.permute.xlu1 %5609 }
 0x863   :  { %v5627_v58 = vsel %vm505_vm12, 0.0, %v5608_v39  ;;  %v9554_v43 = vsel %vm527_vm14, 0.0, %v5649_v52  ;;  %v9559_v12 = vsel %vm527_vm14, 0.0, %v5650_v20  ;;  %v5628_v56 = vsel %vm505_vm12, 0.0, %v5610_v15 }
 0x864   :  { %v9578_v46 = vsel %vm510_vm13, %v5627_v58, 0.0  ;;  %v9581_v10 = vsel %vm510_vm13, %v5628_v56, 0.0  ;;  %v6262_v3 = vrot.slane %v9554_v43, 1  ;;  %v6265_v55 = vrot.slane %v9559_v12, 1 }
 0x865   :  { %3957 = vrot.lane.b32.xlu1 %v9455_v11, %s7821_s12  ;;  %3959 = vrot.lane.b32.xlu0 %v9488_v54, %s7821_s12  ;;  %v5651_v61 = vrot.slane %v9578_v46, 7  ;;  %v5652_v42 = vrot.slane %v9581_v10, 7  ;;  %v4172_v10 = vrot.slane %v9505_v38, 1 }
 0x866   :  { %v5612_v63 = vpop.permute.xlu0 %5611  ;;  %v5614_v1 = vpop.permute.xlu1 %5613 }
 0x867   :  { %v5629_v31 = vsel %vm505_vm12, 0.0, %v5612_v63  ;;  %v5630_v8 = vsel %vm505_vm12, 0.0, %v5614_v1  ;;  %v9604_v15 = vsel %vm527_vm14, 0.0, %v5651_v61  ;;  %v9613_v63 = vsel %vm527_vm14, 0.0, %v5652_v42 }
 0x868   :  { %v9586_v27 = vsel %vm510_vm13, %v5629_v31, 0.0  ;;  %v9589_v17 = vsel %vm510_vm13, %v5630_v8, 0.0  ;;  %v9630_v8 = vsel %vm527_vm14, %v3547_v37, 0.0  ;;  %v4158_v31 = vrot.slane %v9419_v59, 1 }
 0x869   :  { %3961 = vrot.lane.b32.xlu1 %v9493_v50, %s7821_s12  ;;  %3963 = vrot.lane.b32.xlu0 %v9505_v38, %s7821_s12  ;;  %v5653_v60 = vrot.slane %v9586_v27, 7  ;;  %v5654_v39 = vrot.slane %v9589_v17, 7  ;;  %v4155_v27 = vrot.slane %v9413_v25, 1  ;;  %v4154_v17 = vrot.slane %v9410_v23, 1 }
 0x86a   :  { %v4161_v46 = vrot.slane %v9630_v8, 1  ;;  %v9649_v37 = vsel %vm527_vm14, %v3549_v18, 0.0  ;;  %v9654_v25 = vsel %vm527_vm14, %v3550_v0, 0.0  ;;  %v9659_v59 = vsel %vm527_vm14, %v3551_v35, 0.0 }
 0x86b   :  { %v9607_v58 = vsel %vm527_vm14, 0.0, %v5653_v60  ;;  %v9610_v56 = vsel %vm527_vm14, 0.0, %v5654_v39  ;;  %v4754_v44 = vrot.slane %v9630_v8, 2  ;;  %v9676_v18 = vsel %vm527_vm14, %v5648_v45, 0.0 }
 0x86c   :  { %vm12266_vm12 = vcmask 1046528   ;;  %v4167_v47 = vrot.slane %v9649_v37, 1  ;;  %v4757_v8 = vrot.slane %v9644_v57, 2  ;;  %v4170_v36 = vrot.slane %v9654_v25, 1 }
 0x86d   :  { %6053 = vrot.lane.b32.xlu0 %v9549_v28, %s7821_s12  ;;  %3965 = vrot.lane.b32.xlu1 %v9510_v5, %s7821_s12  ;;  %v9679_v0 = vsel %vm12266_vm12, %v4154_v17, %v4155_v27  ;;  %vm12267_vm13 = vmmov %vm12266_vm12  ;;  %v4173_v45 = vrot.slane %v9659_v59, 1  ;;  %v6257_v27 = vrot.slane %v9673_v48, 1  ;;  %v6260_v17 = vrot.slane %v9676_v18, 1 }
 0x86e   :  { %v9684_v35 = vsel %vm12267_vm13, %v4157_v7, %v4158_v31  ;;  %vm12268_vm1 = vmmov %vm12266_vm12  ;;  %v4163_v7 = vrot.slane %v9455_v11, 1  ;;  %v9704_v31 = vsel %vm527_vm14, %v5649_v52, 0.0  ;;  %v9709_v57 = vsel %vm527_vm14, %v5650_v20, 0.0 }
 0x86f   :  { %v9687_v4 = vsel %vm12268_vm1, %v4160_v16, %v4161_v46  ;;  %v4166_v46 = vrot.slane %v9488_v54, 1  ;;  %v4169_v16 = vrot.slane %v9493_v50, 1  ;;  %vm12269_vm5 = vmmov %vm12268_vm1  ;;  %v6256_v52 = vrot.slane %v9549_v28, 1 }
 0x870   :  { %v9714_v1 = vsel %vm12269_vm5, %v4163_v7, %v4164_v40  ;;  %vm12270_vm10 = vmmov %vm12268_vm1  ;;  %v9722_v30 = vsel %vm527_vm14, %v5651_v61, 0.0  ;;  %v9725_v24 = vsel %vm527_vm14, %v5652_v42, 0.0  ;;  %v9734_v40 = vsel %vm527_vm14, %v5653_v60, 0.0 }
 0x871   :  { %6057 = vrot.lane.b32.xlu0 %v9554_v43, %s7821_s12  ;;  %6055 = vrot.lane.b32.xlu1 %v9567_v41, %s7821_s12  ;;  %v9717_v62 = vsel %vm12270_vm10, %v4166_v46, %v4167_v47  ;;  %vm12271_vm0 = vmmov %vm12268_vm1  ;;  %v9737_v47 = vsel %vm527_vm14, %v5654_v39, 0.0  ;;  %v6259_v42 = vrot.slane %v9567_v41, 1  ;;  %v4753_v60 = vrot.slane %v9450_v19, 2 }
 0x872   :  { %v9728_v20 = vsel %vm12271_vm0, %v4169_v16, %v4170_v36  ;;  %vm12272_vm3 = vmmov %vm12271_vm0  ;;  %v6266_v36 = vrot.slane %v9709_v57, 1  ;;  %v4756_v39 = vrot.slane %v9455_v11, 2  ;;  %v6272_v7 = vrot.slane %v9725_v24, 1 }
 0x873   :  { %v9731_v49 = vsel %vm12272_vm3, %v4172_v10, %v4173_v45  ;;  %vm12273_vm12 = vmmov %vm12271_vm0  ;;  %v6263_v10 = vrot.slane %v9704_v31, 1  ;;  %v6269_v45 = vrot.slane %v9722_v30, 1  ;;  %v6275_v16 = vrot.slane %v9734_v40, 1 }
 0x874   :  { %v9744_v61 = vsel %vm12273_vm12, %v4175_v13, %v4176_v29  ;;  %vm12274_vm14 = vmmov %vm12271_vm0  ;;  %v6278_v13 = vrot.slane %v9737_v47, 1  ;;  %v9778_v33 = vsel %vm1233_vm15, %v4753_v60, %v4754_v44 }
 0x875   :  { %6061 = vrot.lane.b32.xlu0 %v9604_v15, %s7821_s12  ;;  %6059 = vrot.lane.b32.xlu1 %v9559_v12, %s7821_s12  ;;  %v9754_v46 = vsel %vm12274_vm14, %v6256_v52, %v6257_v27  ;;  %vm12276_vm13 = vmmov %vm12271_vm0  ;;  %v6268_v27 = vrot.slane %v9604_v15, 1  ;;  %v6271_v52 = vrot.slane %v9613_v63, 1 }
 0x876   :  { %12275 = vst [vmem:[#allocation10_spill] sm:$0xff] %v9754_v46  ;;  %v9757_v29 = vsel %vm12276_vm13, %v6259_v42, %v6260_v17  ;;  %v6274_v17 = vrot.slane %v9607_v58, 1  ;;  %v6277_v42 = vrot.slane %v9610_v56, 1  ;;  %vm12278_vm1 = vmmov %vm12271_vm0 }
 0x877   :  { %12277 = vst [vmem:[#allocation2_spill] sm:$0xff] %v9757_v29  ;;  %v9772_v2 = vsel %vm12278_vm1, %v6262_v3, %v6263_v10  ;;  %vm12279_vm5 = vmmov %vm12271_vm0  ;;  %v3601_v29 = vrot.slane %v12280_v32, %v12264_v14  ;;  %v9792_v3 = vsel %vm12271_vm0, %v6271_v52, %v6272_v7  ;;  %v9807_v32 = vsel %vm1233_vm15, %v4756_v39, %v4757_v8 }
 0x878   :  { %v9775_v34 = vsel %vm12279_vm5, %v6265_v55, %v6266_v36  ;;  %vm12281_vm10 = vmmov %vm12271_vm0  ;;  %v12287_v8 = vcombine.low %v9493_v50, %v9510_v5 }
 0x879   :  { %6065 = vrot.lane.b32.xlu0 %v9607_v58, %s7821_s12  ;;  %6063 = vrot.lane.b32.xlu1 %v9613_v63, %s7821_s12  ;;  %v9789_v46 = vsel %vm12281_vm10, %v6268_v27, %v6269_v45  ;;  %vm12282_vm3 = vmmov %vm12271_vm0  ;;  %v3641_v52 = vcombine.low %v3585_v21, %v3601_v29  ;;  %v3642_v7 = vcombine.high %v3585_v21, %v3601_v29 }
 0x87a   :  { %v9795_v55 = vsel %vm12282_vm3, %v6274_v17, %v6275_v16  ;;  %vm12284_vm12 = vmmov %vm12271_vm0  ;;  %v3633_v39 = vrot.slane %v12287_v8, %v12264_v14  ;;  %v12290_v21 = vcombine.high %v9410_v23, %v9450_v19  ;;  %v12291_v16 = vcombine.high %v9416_v53, %v9455_v11 }
 0x87b   :  { %12283 = vst [vmem:[#allocation11_spill] sm:$0xff] %v9795_v55  ;;  %v9798_v44 = vsel %vm12284_vm12, %v6277_v42, %v6278_v13  ;;  %v12286_v13 = vcombine.low %v9488_v54, %v9505_v38  ;;  %v9833_v8 = vrot.slane %v3641_v52, %v12265_v26  ;;  %v9836_v17 = vrot.slane %v3642_v7, %v12265_v26 }
 0x87c   :  { %12285 = vst [vmem:[#allocation12_spill] sm:$0xff] %v9798_v44  ;;  %v3592_v29 = vrot.slane %v12290_v21, %v12264_v14  ;;  %v3608_v45 = vrot.slane %v12291_v16, %v12264_v14  ;;  %v12293_v52 = vcombine.high %v9488_v54, %v9505_v38  ;;  %v12295_v23 = vcombine.low %v9549_v28, %v9554_v43 }
 0x87d   :  { %3770 = vrot.lane.b32.xlu0 %v9510_v5, %s7820_s11  ;;  %6067 = vrot.lane.b32.xlu1 %v9610_v56, %s7821_s12  ;;  %v3617_v27 = vrot.slane %v12286_v13, %v12264_v14  ;;  %v4759_v13 = vrot.slane %v9488_v54, 2  ;;  %12288 = vst [vmem:[#allocation13_spill] sm:$0xff] %v9833_v8  ;;  %12289 = vst [vmem:[#allocation9_spill] sm:$0xff] %v9836_v17  ;;  %v12297_v54 = vcombine.low %v9567_v41, %v9559_v12 }
 0x87e   :  { %v3624_v7 = vrot.slane %v12293_v52, %v12264_v14  ;;  %v5687_v19 = vrot.slane %v12295_v23, %v12264_v14  ;;  %v3657_v11 = vcombine.low %v3592_v29, %v3608_v45  ;;  %v4762_v21 = vrot.slane %v9493_v50, 2 }
 0x87f   :  { %v3673_v60 = vcombine.low %v3617_v27, %v3633_v39  ;;  %v3674_v42 = vcombine.high %v3617_v27, %v3633_v39  ;;  %v12294_v27 = vcombine.high %v9493_v50, %v9510_v5  ;;  %v5703_v16 = vrot.slane %v12297_v54, %v12264_v14 }
 0x880   :  { %v9880_v23 = vrot.slane %v3657_v11, %v12265_v26 }
 0x881   :  { %5860 = vrot.lane.b32.xlu0 %v9567_v41, %s7820_s11  ;;  %5858 = vrot.lane.b32.xlu1 %v9549_v28, %s7820_s11  ;;  %v9847_v36 = vrot.slane %v3673_v60, %v12265_v26  ;;  %v3640_v39 = vrot.slane %v12294_v27, %v12264_v14  ;;  %v9862_v53 = vrot.slane %v3674_v42, %v12265_v26 }
 0x882   :  { %v3658_v60 = vcombine.high %v3592_v29, %v3608_v45  ;;  %12298 = vst [vmem:[#allocation3_spill] sm:$0xff] %v9880_v23  ;;  %v12303_v29 = vcombine.low %v9613_v63, %v9610_v56  ;;  %v5744_v45 = vcombine.high %v5687_v19, %v5703_v16  ;;  %v5743_v52 = vcombine.low %v5687_v19, %v5703_v16 }
 0x883   :  { %12292 = vst [vmem:[#allocation14_spill] sm:$0xff] %v9847_v36  ;;  %12296 = vst [vmem:[#allocation4_spill] sm:$0xff] %v9862_v53  ;;  %v3689_v42 = vcombine.low %v3624_v7, %v3640_v39  ;;  %v3690_v27 = vcombine.high %v3624_v7, %v3640_v39  ;;  %v12302_v7 = vcombine.low %v9604_v15, %v9607_v58  ;;  %v4765_v19 = vrot.slane %v9505_v38, 2 }
 0x884   :  { %v9883_v54 = vrot.slane %v3658_v60, %v12265_v26  ;;  %v5735_v11 = vrot.slane %v12303_v29, %v12264_v14  ;;  %v12304_v60 = vcombine.high %v9549_v28, %v9554_v43  ;;  %v12306_v38 = vcombine.high %v9604_v15, %v9607_v58 }
 0x885   :  { %5864 = vrot.lane.b32.xlu0 %v9559_v12, %s7820_s11  ;;  %5862 = vrot.lane.b32.xlu1 %v9554_v43, %s7820_s11  ;;  %v9886_v51 = vrot.slane %v3689_v42, %v12265_v26  ;;  %v9889_v50 = vrot.slane %v3690_v27, %v12265_v26  ;;  %v5719_v39 = vrot.slane %v12302_v7, %v12264_v14 }
 0x886   :  { %12299 = vst [vmem:[#allocation8_spill] sm:$0xff] %v9883_v54  ;;  %v9903_v42 = vrot.slane %v12304_v60, %v12264_v14  ;;  %v12305_v27 = vcombine.high %v9567_v41, %v9559_v12  ;;  %v6868_v60 = vrot.slane %v9734_v40, 2  ;;  %v9930_v16 = vrot.slane %v12306_v38, %v12264_v14 }
 0x887   :  { %12300 = vst [vmem:[#allocation7_spill] sm:$0xff] %v9886_v51  ;;  %12301 = vst [vmem:[#allocation5_spill] sm:$0xff] %v9889_v50  ;;  %v5776_v17 = vcombine.high %v5719_v39, %v5735_v11  ;;  %v5775_v8 = vcombine.low %v5719_v39, %v5735_v11  ;;  %v12307_v29 = vcombine.high %v9613_v63, %v9610_v56  ;;  %v12308_v40 = vrot.slane %v9649_v37, 2 }
 0x888   :  { %v9909_v10 = vrot.slane %v12305_v27, %v12264_v14  ;;  %v4768_v27 = vrot.slane %v9510_v5, 2  ;;  %v12309_v39 = vrot.slane %v9654_v25, 2  ;;  %v9951_v38 = vrot.slane %v5744_v45, %v12265_v26 }
 0x889   :  { %5868 = vrot.lane.b32.xlu0 %v9613_v63, %s7820_s11  ;;  %5866 = vrot.lane.b32.xlu1 %v9604_v15, %s7820_s11  ;;  %v9936_v7 = vrot.slane %v12307_v29, %v12264_v14  ;;  %v9943_v53 = vsel %vm1233_vm15, %v4759_v13, %v12308_v40  ;;  %v9954_v50 = vrot.slane %v5776_v17, %v12265_v26  ;;  %v6871_v29 = vrot.slane %v9737_v47, 2 }
 0x88a   :  { %v5759_v5 = vcombine.low %v9903_v42, %v9909_v10  ;;  %v9948_v11 = vsel %vm1233_vm15, %v4762_v21, %v12309_v39  ;;  %12310 = vst [vmem:[#allocation6_spill] sm:$0xff] %v9951_v38  ;;  %v9962_v37 = vrot.slane %v5743_v52, %v12265_v26  ;;  %v9965_v25 = vrot.slane %v5775_v8, %v12265_v26  ;;  %v12327_v8 = vld [vmem:[#allocation2_spill] sm:$0xff] }
 0x88b   :  { %12311 = vst [vmem:[#allocation15_spill] sm:$0xff] %v9954_v50  ;;  %v5791_v13 = vcombine.low %v9930_v16, %v9936_v7  ;;  %v12314_v17 = vrot.slane %v9659_v59, 2  ;;  %v6867_v47 = vrot.slane %v9607_v58, 2  ;;  %v6870_v40 = vrot.slane %v9610_v56, 2 }
 0x88c   :  { %12312 = vst [vmem:[#allocation16_spill] sm:$0xff] %v9962_v37  ;;  %12313 = vst [vmem:[#allocation17_spill] sm:$0xff] %v9965_v25  ;;  %v9983_v39 = vrot.slane %v5759_v5, %v12265_v26  ;;  %v6852_v52 = vrot.slane %v9567_v41, 2  ;;  %v6858_v5 = vrot.slane %v9559_v12, 2  ;;  %v12318_v41 = vcombine.low %v9442_v22, %v9778_v33 }
 0x88d   :  { %5872 = vrot.lane.b32.xlu0 %v9610_v56, %s7820_s11  ;;  %5870 = vrot.lane.b32.xlu1 %v9607_v58, %s7820_s11  ;;  %v9972_v21 = vsel %vm1233_vm15, %v4765_v19, %v12314_v17  ;;  %v9986_v59 = vrot.slane %v5791_v13, %v12265_v26  ;;  %v12317_v19 = vrot.slane %v9664_v6, 2  ;;  %v6849_v17 = vrot.slane %v9549_v28, 2 }
 0x88e   :  { %12315 = vst [vmem:[#allocation18_spill] sm:$0xff] %v9983_v39  ;;  %v6855_v56 = vrot.slane %v9554_v43, 2  ;;  %v6861_v13 = vrot.slane %v9604_v15, 2  ;;  %v6864_v6 = vrot.slane %v9613_v63, 2  ;;  %v10006_v28 = vsel %vm1233_vm15, %v6867_v47, %v6868_v60 }
 0x88f   :  { %12316 = vst [vmem:[#allocation19_spill] sm:$0xff] %v9986_v59  ;;  %v9991_v58 = vsel %vm1233_vm15, %v4768_v27, %v12317_v19  ;;  %v10009_v43 = vsel %vm1233_vm15, %v6870_v40, %v6871_v29  ;;  %v10015_v19 = vrot.slane %v12318_v41, %v12264_v14  ;;  %v12320_v12 = vrot.slane %v9673_v48, 2 }
 0x890   :  { %v12321_v63 = vrot.slane %v9676_v18, 2  ;;  %v12322_v60 = vrot.slane %v9704_v31, 2  ;;  %v12323_v48 = vrot.slane %v9709_v57, 2  ;;  %v12324_v18 = vrot.slane %v9722_v30, 2 }
 0x891   :  { %5145 = vrot.lane.b32.xlu0 %v9442_v22, %s7821_s12  ;;  %5147 = vrot.lane.b32.xlu1 %v9445_v9, %s7821_s12  ;;  %12319 = vst [vmem:[#allocation20_spill] sm:$0xff] %v10015_v19  ;;  %v10020_v15 = vsel %vm1233_vm15, %v6849_v17, %v12320_v12  ;;  %v12325_v31 = vrot.slane %v9725_v24, 2  ;;  %v4811_v17 = vcombine.low %v9943_v53, %v9972_v21 }
 0x892   :  { %v10025_v27 = vsel %vm1233_vm15, %v6852_v52, %v12321_v63  ;;  %v10030_v29 = vsel %vm1233_vm15, %v6855_v56, %v12322_v60  ;;  %v10039_v47 = vsel %vm1233_vm15, %v6858_v5, %v12323_v48  ;;  %v10044_v52 = vsel %vm1233_vm15, %v6861_v13, %v12324_v18  ;;  %v12326_v18 = vld [vmem:[#allocation10_spill] sm:$0xff] }
 0x893   :  { %v10049_v40 = vsel %vm1233_vm15, %v6864_v6, %v12325_v31  ;;  %v4827_v56 = vcombine.low %v9948_v11, %v9991_v58  ;;  %v6913_v57 = vcombine.low %v10044_v52, %v10006_v28  ;;  %v4218_v5 = vcombine.low %v9717_v62, %v9731_v49 }
 0x894   :  { %v6929_v30 = vcombine.low %v10049_v40, %v10009_v43  ;;  %v4234_v24 = vcombine.low %v9728_v20, %v9744_v61  ;;  %v6320_v13 = vcombine.low %v9789_v46, %v9795_v55  ;;  %v6336_v6 = vcombine.low %v9792_v3, %v9798_v44 }
 0x895   :  { %5149 = vrot.lane.b32.xlu0 %v9778_v33, %s7821_s12  ;;  %5151 = vrot.lane.b32.xlu1 %v9807_v32, %s7821_s12  ;;  %v4795_v41 = vcombine.low %v9445_v9, %v9807_v32  ;;  %v6881_v12 = vcombine.low %v10020_v15, %v10030_v29  ;;  %v6897_v63 = vcombine.low %v10025_v27, %v10039_v47  ;;  %vm12625_vm15 = vcmask 195584  }
 0x896   :  { %v4186_v60 = vcombine.low %v9679_v0, %v9687_v4  ;;  %v4202_v48 = vcombine.low %v9684_v35, %v9714_v1  ;;  %v6288_v31 = vcombine.low %v12326_v18, %v9772_v2  ;;  %v6304_v45 = vcombine.low %v12327_v8, %v9775_v34  ;;  %vm12630_vm14 = vmmov %vm12625_vm15 }
 0x897   :  { %v10086_v50 = vrot.slane %v4811_v17, %v12264_v14  ;;  %v10089_v38 = vrot.slane %v4827_v56, %v12264_v14  ;;  %v10092_v54 = vrot.slane %v6913_v57, %v12264_v14  ;;  %v10095_v51 = vrot.slane %v6929_v30, %v12264_v14  ;;  %vm12655_vm13 = vmmov %vm12630_vm14 }
 0x898   :  { %v10098_v23 = vrot.slane %v4218_v5, %v12264_v14  ;;  %v10101_v44 = vrot.slane %v4234_v24, %v12264_v14  ;;  %v10104_v55 = vrot.slane %v6320_v13, %v12264_v14  ;;  %v10107_v17 = vrot.slane %v6336_v6, %v12264_v14  ;;  %vm12656_vm1 = vmmov %vm12655_vm13 }
 0x899   :  { %5153 = vrot.lane.b32.xlu0 %v9943_v53, %s7821_s12  ;;  %5155 = vrot.lane.b32.xlu1 %v9948_v11, %s7821_s12  ;;  %12328 = vst [vmem:[#allocation10_spill] sm:$0xff] %v10092_v54  ;;  %12329 = vst [vmem:[#allocation2_spill] sm:$0xff] %v10095_v51  ;;  %v10110_v56 = vrot.slane %v4795_v41, %v12264_v14  ;;  %v10113_v57 = vrot.slane %v6881_v12, %v12264_v14 }
 0x89a   :  { %12330 = vst [vmem:[#allocation21_spill] sm:$0xff] %v10098_v23  ;;  %12331 = vst [vmem:[#allocation22_spill] sm:$0xff] %v10101_v44  ;;  %v10116_v30 = vrot.slane %v6897_v63, %v12264_v14  ;;  %v10119_v5 = vrot.slane %v4186_v60, %v12264_v14  ;;  %v10126_v24 = vrot.slane %v4202_v48, %v12264_v14 }
 0x89b   :  { %12332 = vst [vmem:[#allocation23_spill] sm:$0xff] %v10104_v55  ;;  %12333 = vst [vmem:[#allocation24_spill] sm:$0xff] %v10107_v17  ;;  %v10129_v13 = vrot.slane %v6288_v31, %v12264_v14  ;;  %v10132_v6 = vrot.slane %v6304_v45, %v12264_v14  ;;  %v4875_v41 = vcombine.low %v10086_v50, %v10089_v38 }
 0x89c   :  { %12334 = vst [vmem:[#allocation25_spill] sm:$0xff] %v10110_v56  ;;  %12335 = vst [vmem:[#allocation26_spill] sm:$0xff] %v10113_v57  ;;  %v6977_v12 = vcombine.low %v10092_v54, %v10095_v51  ;;  %v4282_v63 = vcombine.low %v10098_v23, %v10101_v44  ;;  %v6384_v60 = vcombine.low %v10104_v55, %v10107_v17 }
 0x89d   :  { %5157 = vrot.lane.b32.xlu0 %v9972_v21, %s7821_s12  ;;  %5159 = vrot.lane.b32.xlu1 %v9991_v58, %s7821_s12  ;;  %12336 = vst [vmem:[#allocation27_spill] sm:$0xff] %v10116_v30  ;;  %12337 = vst [vmem:[#allocation28_spill] sm:$0xff] %v10119_v5  ;;  %v4843_v48 = vcombine.low %v10015_v19, %v10110_v56  ;;  %v6945_v45 = vcombine.low %v10113_v57, %v10116_v30 }
 0x89e   :  { %12338 = vst [vmem:[#allocation29_spill] sm:$0xff] %v10126_v24  ;;  %12339 = vst [vmem:[#allocation30_spill] sm:$0xff] %v10129_v13  ;;  %v4250_v31 = vcombine.low %v10119_v5, %v10126_v24  ;;  %v6352_v23 = vcombine.low %v10129_v13, %v10132_v6  ;;  %v10155_v55 = vrot.slane %v4875_v41, %v12265_v26  ;;  %v12346_v5 = vld [vmem:[#allocation13_spill] sm:$0xff] }
 0x89f   :  { %12340 = vst [vmem:[#allocation31_spill] sm:$0xff] %v10132_v6  ;;  %v10158_v17 = vrot.slane %v6977_v12, %v12265_v26  ;;  %v10161_v44 = vrot.slane %v4282_v63, %v12265_v26  ;;  %v10164_v54 = vrot.slane %v6384_v60, %v12265_v26  ;;  %v10167_v57 = vrot.slane %v4843_v48, %v12265_v26  ;;  %vm12668_vm5 = vmmov %vm12656_vm1 }
 0x8a0   :  { %12341 = vst [vmem:[#allocation32_spill] sm:$0xff] %v10155_v55  ;;  %v10176_v41 = vrot.slane %v6945_v45, %v12265_v26  ;;  %v10179_v12 = vrot.slane %v4250_v31, %v12265_v26  ;;  %v10182_v63 = vrot.slane %v6352_v23, %v12265_v26  ;;  %v5760_v23 = vcombine.high %v9903_v42, %v9909_v10  ;;  %vm12669_vm10 = vmmov %vm12656_vm1 }
 0x8a1   :  { %7247 = vrot.lane.b32.xlu0 %v10020_v15, %s7821_s12  ;;  %7249 = vrot.lane.b32.xlu1 %v10025_v27, %s7821_s12  ;;  %12342 = vst [vmem:[#allocation33_spill] sm:$0xff] %v10158_v17  ;;  %12343 = vst [vmem:[#allocation34_spill] sm:$0xff] %v10161_v44  ;;  %v5792_v60 = vcombine.high %v9930_v16, %v9936_v7 }
 0x8a2   :  { %12344 = vst [vmem:[#allocation35_spill] sm:$0xff] %v10164_v54  ;;  %12345 = vst [vmem:[#allocation36_spill] sm:$0xff] %v10167_v57  ;;  %v10205_v24 = vrot.slane %v5760_v23, %v12265_v26 }
 0x8a3   :  { %12347 = vst [vmem:[#allocation37_spill] sm:$0xff] %v10176_v41  ;;  %12348 = vst [vmem:[#allocation38_spill] sm:$0xff] %v10179_v12  ;;  %v10208_v48 = vrot.slane %v5792_v60, %v12265_v26 }
 0x8a4   :  { %12349 = vst [vmem:[#allocation39_spill] sm:$0xff] %v10182_v63  ;;  %12350 = vst [vmem:[#allocation40_spill] sm:$0xff] %v10205_v24 }
 0x8a5   :  { %7251 = vrot.lane.b32.xlu0 %v10030_v29, %s7821_s12  ;;  %7253 = vrot.lane.b32.xlu1 %v10039_v47, %s7821_s12  ;;  %12351 = vst [vmem:[#allocation41_spill] sm:$0xff] %v10208_v48  ;;  %vm12685_vm0 = vmmov %vm12656_vm1 }
 0x8a6   :  { %vm12689_vm3 = vmmov %vm12685_vm0 }
 0x8a7   :  { %vm12697_vm12 = vmmov %vm12685_vm0 }
 0x8a9   :  { %7255 = vrot.lane.b32.xlu0 %v10044_v52, %s7821_s12  ;;  %7257 = vrot.lane.b32.xlu1 %v10049_v40, %s7821_s12 }
 0x8ad   :  { %7259 = vrot.lane.b32.xlu0 %v10006_v28, %s7821_s12  ;;  %7261 = vrot.lane.b32.xlu1 %v10009_v43, %s7821_s12 }
 0x8b1   :  { %4950 = vrot.lane.b32.xlu0 %v9442_v22, %s7820_s11  ;;  %4952 = vrot.lane.b32.xlu1 %v9445_v9, %s7820_s11 }
 0x8b5   :  { %4954 = vrot.lane.b32.xlu0 %v9778_v33, %s7820_s11  ;;  %4956 = vrot.lane.b32.xlu1 %v9807_v32, %s7820_s11 }
 0x8b9   :  { %4958 = vrot.lane.b32.xlu0 %v9943_v53, %s7820_s11  ;;  %4960 = vrot.lane.b32.xlu1 %v9948_v11, %s7820_s11 }
 0x8bd   :  { %4962 = vrot.lane.b32.xlu0 %v9972_v21, %s7820_s11  ;;  %4964 = vrot.lane.b32.xlu1 %v9991_v58, %s7820_s11 }
 0x8c1   :  { %7052 = vrot.lane.b32.xlu0 %v10020_v15, %s7820_s11  ;;  %7054 = vrot.lane.b32.xlu1 %v10025_v27, %s7820_s11 }
 0x8c2   :  { %v10222_v16 = vpop.permute.xlu0 %3758  ;;  %v10224_v7 = vpop.permute.xlu1 %3756 }
 0x8c5   :  { %7056 = vrot.lane.b32.xlu0 %v10030_v29, %s7820_s11  ;;  %7058 = vrot.lane.b32.xlu1 %v10039_v47, %s7820_s11 }
 0x8c7   :  { %v10234_v60 = vpop.permute.xlu0 %3762  ;;  %v10236_v23 = vpop.permute.xlu1 %3760 }
 0x8c8   :  { %v3797_v55 = vcombine.high %v10222_v16, %v10234_v60  ;;  %v3780_v51 = vcombine.low %v10224_v7, %v10236_v23 }
 0x8c9   :  { %7060 = vrot.lane.b32.xlu0 %v10044_v52, %s7820_s11  ;;  %7062 = vrot.lane.b32.xlu1 %v10049_v40, %s7820_s11 }
 0x8cb   :  { %v10242_v42 = vpop.permute.xlu0 %3766  ;;  %v10244_v10 = vpop.permute.xlu1 %3764 }
 0x8cd   :  { %7064 = vrot.lane.b32.xlu0 %v10006_v28, %s7820_s11  ;;  %7066 = vrot.lane.b32.xlu1 %v10009_v43, %s7820_s11 }
 0x8cf   :  { %v10250_v31 = vpop.permute.xlu0 %3951  ;;  %v10252_v13 = vpop.permute.xlu1 %3768 }
 0x8d0   :  { %12352 = vst [vmem:[#allocation42_spill] sm:$0xff] %v10250_v31 }
 0x8d1   :  { %4552 = vrot.lane.b32.xlu0 %v9679_v0, %s7821_s12  ;;  %4554 = vrot.lane.b32.xlu1 %v9684_v35, %s7821_s12 }
 0x8d3   :  { %v10258_v45 = vpop.permute.xlu0 %3955  ;;  %v10260_v48 = vpop.permute.xlu1 %3953 }
 0x8d4   :  { %12353 = vst [vmem:[#allocation43_spill] sm:$0xff] %v10258_v45  ;;  %12354 = vst [vmem:[#allocation44_spill] sm:$0xff] %v10260_v48  ;;  %v3975_v44 = vcombine.low %v10250_v31, %v10258_v45 }
 0x8d5   :  { %4556 = vrot.lane.b32.xlu0 %v9687_v4, %s7821_s12  ;;  %4558 = vrot.lane.b32.xlu1 %v9714_v1, %s7821_s12 }
 0x8d6   :  { %v10300_v31 = vrot.slane %v3975_v44, %v12264_v14 }
 0x8d7   :  { %v10266_v24 = vpop.permute.xlu0 %3959  ;;  %v10268_v6 = vpop.permute.xlu1 %3957 }
 0x8d8   :  { %12355 = vst [vmem:[#allocation45_spill] sm:$0xff] %v10266_v24  ;;  %12356 = vst [vmem:[#allocation46_spill] sm:$0xff] %v10268_v6  ;;  %v3991_v12 = vcombine.low %v10260_v48, %v10268_v6 }
 0x8d9   :  { %4560 = vrot.lane.b32.xlu0 %v9717_v62, %s7821_s12  ;;  %4562 = vrot.lane.b32.xlu1 %v9728_v20, %s7821_s12  ;;  %12362 = vst [vmem:[#allocation52_spill] sm:$0xff] %v10300_v31 }
 0x8da   :  { %v10293_v57 = vrot.slane %v3991_v12, %v12264_v14 }
 0x8db   :  { %v10274_v63 = vpop.permute.xlu0 %3963  ;;  %v10276_v54 = vpop.permute.xlu1 %3961 }
 0x8dc   :  { %12357 = vst [vmem:[#allocation47_spill] sm:$0xff] %v10274_v63  ;;  %12358 = vst [vmem:[#allocation48_spill] sm:$0xff] %v10276_v54  ;;  %v4007_v41 = vcombine.low %v10266_v24, %v10274_v63  ;;  %v4039_v6 = vcombine.low %v10300_v31, %v10293_v57  ;;  %v3781_v31 = vcombine.high %v10224_v7, %v10236_v23 }
 0x8dd   :  { %4564 = vrot.lane.b32.xlu0 %v9731_v49, %s7821_s12  ;;  %4566 = vrot.lane.b32.xlu1 %v9744_v61, %s7821_s12  ;;  %12361 = vst [vmem:[#allocation51_spill] sm:$0xff] %v10293_v57 }
 0x8de   :  { %v10303_v45 = vrot.slane %v4007_v41, %v12264_v14 }
 0x8df   :  { %v10288_v17 = vpop.permute.xlu0 %6053  ;;  %v10290_v30 = vpop.permute.xlu1 %3965 }
 0x8e0   :  { %12359 = vst [vmem:[#allocation49_spill] sm:$0xff] %v10288_v17  ;;  %12360 = vst [vmem:[#allocation50_spill] sm:$0xff] %v10290_v30  ;;  %v4023_v48 = vcombine.low %v10276_v54, %v10290_v30  ;;  %v10330_v30 = vrot.slane %v4039_v6, %v12265_v26  ;;  %v3796_v6 = vcombine.low %v10222_v16, %v10234_v60 }
 0x8e1   :  { %6654 = vrot.lane.b32.xlu0 %v12326_v18, %s7821_s12  ;;  %12363 = vst [vmem:[#allocation53_spill] sm:$0xff] %v10303_v45  ;;  %6656 = vrot.lane.b32.xlu1 %v12327_v8, %s7821_s12  ;;  %v3812_v16 = vcombine.low %v10244_v10, %v10252_v13  ;;  %v3813_v60 = vcombine.high %v10244_v10, %v10252_v13 }
 0x8e2   :  { %v10306_v24 = vrot.slane %v4023_v48, %v12264_v14  ;;  %12370 = vst [vmem:[#allocation60_spill] sm:$0xff] %v10330_v30 }
 0x8e3   :  { %v10310_v12 = vpop.permute.xlu0 %6057  ;;  %v10312_v63 = vpop.permute.xlu1 %6055 }
 0x8e4   :  { %12364 = vst [vmem:[#allocation54_spill] sm:$0xff] %v10306_v24  ;;  %12365 = vst [vmem:[#allocation55_spill] sm:$0xff] %v10310_v12  ;;  %v4071_v44 = vcombine.low %v10303_v45, %v10306_v24  ;;  %v12373_v45 = vld [vmem:[#allocation11_spill] sm:$0xff]  ;;  %v12374_v24 = vld [vmem:[#allocation12_spill] sm:$0xff]  ;;  %v6077_v23 = vcombine.low %v10288_v17, %v10310_v12  ;;  %v10390_v17 = vrot.slane %v3780_v51, %v12264_v14 }
 0x8e5   :  { %12366 = vst [vmem:[#allocation56_spill] sm:$0xff] %v10312_v63  ;;  %6658 = vrot.lane.b32.xlu0 %v9772_v2, %s7821_s12  ;;  %6660 = vrot.lane.b32.xlu1 %v9775_v34, %s7821_s12 }
 0x8e6   :  { %v10323_v41 = vrot.slane %v4071_v44, %v12265_v26  ;;  %12381 = vst [vmem:[#allocation67_spill] sm:$0xff] %v10390_v17 }
 0x8e7   :  { %v10325_v48 = vpop.permute.xlu0 %6061  ;;  %v10327_v54 = vpop.permute.xlu1 %6059 }
 0x8e8   :  { %12367 = vst [vmem:[#allocation57_spill] sm:$0xff] %v10323_v41  ;;  %12368 = vst [vmem:[#allocation58_spill] sm:$0xff] %v10325_v48  ;;  %v6093_v19 = vcombine.low %v10312_v63, %v10327_v54  ;;  %v10387_v63 = vrot.slane %v3797_v55, %v12264_v14  ;;  %v10410_v55 = vrot.slane %v6077_v23, %v12264_v14 }
 0x8e9   :  { %12369 = vst [vmem:[#allocation59_spill] sm:$0xff] %v10327_v54  ;;  %6662 = vrot.lane.b32.xlu0 %v9789_v46, %s7821_s12  ;;  %6664 = vrot.lane.b32.xlu1 %v9792_v3, %s7821_s12 }
 0x8ea   :  { %12380 = vst [vmem:[#allocation66_spill] sm:$0xff] %v10387_v63  ;;  %12387 = vst [vmem:[#allocation73_spill] sm:$0xff] %v10410_v55 }
 0x8eb   :  { %v10338_v57 = vpop.permute.xlu0 %6065  ;;  %v10340_v44 = vpop.permute.xlu1 %6063 }
 0x8ec   :  { %12371 = vst [vmem:[#allocation61_spill] sm:$0xff] %v10338_v57  ;;  %12372 = vst [vmem:[#allocation62_spill] sm:$0xff] %v10340_v44  ;;  %v6109_v7 = vcombine.low %v10325_v48, %v10338_v57 }
 0x8ed   :  { %6666 = vrot.lane.b32.xlu0 %v12373_v45, %s7821_s12  ;;  %6668 = vrot.lane.b32.xlu1 %v12374_v24, %s7821_s12 }
 0x8ee   :  { %v10405_v12 = vrot.slane %v6109_v7, %v12264_v14 }
 0x8ef   :  { %v3771_v30 = vpop.permute.xlu0 %3770  ;;  %v10354_v41 = vpop.permute.xlu1 %6067 }
 0x8f0   :  { %12375 = vst [vmem:[#allocation11_spill] sm:$0xff] %v10354_v41  ;;  %v3828_v56 = vcombine.low %v10242_v42, %v3771_v30  ;;  %v3829_v59 = vcombine.high %v10242_v42, %v3771_v30  ;;  %v6125_v39 = vcombine.low %v10340_v44, %v10354_v41  ;;  %v10375_v30 = vrot.slane %v3796_v6, %v12264_v14 }
 0x8f1   :  { %4357 = vrot.lane.b32.xlu0 %v9679_v0, %s7820_s11  ;;  %4359 = vrot.lane.b32.xlu1 %v9684_v35, %s7820_s11  ;;  %v10393_v6 = vrot.slane %v3781_v31, %v12264_v14  ;;  %12386 = vst [vmem:[#allocation72_spill] sm:$0xff] %v10405_v12 }
 0x8f2   :  { %12376 = vst [vmem:[#allocation12_spill] sm:$0xff] %v10375_v30  ;;  %v10378_v42 = vrot.slane %v3828_v56, %v12264_v14  ;;  %v10381_v13 = vrot.slane %v3829_v59, %v12264_v14  ;;  %v10384_v10 = vrot.slane %v6125_v39, %v12264_v14  ;;  %v10396_v56 = vrot.slane %v6093_v19, %v12264_v14 }
 0x8f3   :  { %v5861_v48 = vpop.permute.xlu0 %5860  ;;  %v5859_v57 = vpop.permute.xlu1 %5858  ;;  %12382 = vst [vmem:[#allocation68_spill] sm:$0xff] %v10393_v6  ;;  %v10399_v59 = vrot.slane %v3812_v16, %v12264_v14  ;;  %v10402_v39 = vrot.slane %v3813_v60, %v12264_v14  ;;  %v3844_v7 = vcombine.low %v10390_v17, %v10375_v30  ;;  %v3861_v23 = vcombine.high %v10393_v6, %v10387_v63 }
 0x8f4   :  { %12377 = vst [vmem:[#allocation63_spill] sm:$0xff] %v10378_v42  ;;  %12378 = vst [vmem:[#allocation64_spill] sm:$0xff] %v10381_v13  ;;  %v6173_v31 = vcombine.low %v10405_v12, %v10384_v10  ;;  %v6141_v54 = vcombine.low %v10410_v55, %v10396_v56 }
 0x8f5   :  { %12379 = vst [vmem:[#allocation65_spill] sm:$0xff] %v10384_v10  ;;  %12383 = vst [vmem:[#allocation69_spill] sm:$0xff] %v10396_v56  ;;  %4361 = vrot.lane.b32.xlu0 %v9687_v4, %s7820_s11  ;;  %4363 = vrot.lane.b32.xlu1 %v9714_v1, %s7820_s11  ;;  %v3876_v51 = vcombine.low %v10399_v59, %v10378_v42  ;;  %v3893_v19 = vcombine.high %v10402_v39, %v10381_v13 }
 0x8f6   :  { %12384 = vst [vmem:[#allocation70_spill] sm:$0xff] %v10399_v59  ;;  %12385 = vst [vmem:[#allocation71_spill] sm:$0xff] %v10402_v39  ;;  %v10431_v59 = vrot.slane %v6173_v31, %v12265_v26  ;;  %v10440_v6 = vrot.slane %v6141_v54, %v12265_v26  ;;  %v10443_v63 = vrot.slane %v3844_v7, %v12265_v26 }
 0x8f7   :  { %v5865_v16 = vpop.permute.xlu0 %5864  ;;  %v5863_v60 = vpop.permute.xlu1 %5862  ;;  %v10434_v42 = vrot.slane %v3876_v51, %v12265_v26  ;;  %v10437_v17 = vrot.slane %v3893_v19, %v12265_v26  ;;  %v10446_v30 = vrot.slane %v3861_v23, %v12265_v26 }
 0x8f8   :  { %12388 = vst [vmem:[#allocation74_spill] sm:$0xff] %v10431_v59  ;;  %12391 = vst [vmem:[#allocation77_spill] sm:$0xff] %v10440_v6  ;;  %v5898_v44 = vcombine.low %v5861_v48, %v5865_v16  ;;  %v5899_v41 = vcombine.high %v5861_v48, %v5865_v16  ;;  %v5882_v55 = vcombine.low %v5859_v57, %v5863_v60 }
 0x8f9   :  { %4365 = vrot.lane.b32.xlu0 %v9717_v62, %s7820_s11  ;;  %4367 = vrot.lane.b32.xlu1 %v9728_v20, %s7820_s11  ;;  %12389 = vst [vmem:[#allocation75_spill] sm:$0xff] %v10434_v42  ;;  %12390 = vst [vmem:[#allocation76_spill] sm:$0xff] %v10437_v17  ;;  %v5883_v31 = vcombine.high %v5859_v57, %v5863_v60 }
 0x8fa   :  { %12392 = vst [vmem:[#allocation78_spill] sm:$0xff] %v10443_v63  ;;  %12393 = vst [vmem:[#allocation79_spill] sm:$0xff] %v10446_v30  ;;  %v10459_v56 = vrot.slane %v5898_v44, %v12264_v14  ;;  %v10462_v12 = vrot.slane %v5899_v41, %v12264_v14  ;;  %v10465_v10 = vrot.slane %v5882_v55, %v12264_v14 }
 0x8fb   :  { %v5869_v39 = vpop.permute.xlu0 %5868  ;;  %v5867_v13 = vpop.permute.xlu1 %5866  ;;  %v10468_v54 = vrot.slane %v5883_v31, %v12264_v14 }
 0x8fc   :  { %12394 = vst [vmem:[#allocation80_spill] sm:$0xff] %v10462_v12 }
 0x8fd   :  { %4369 = vrot.lane.b32.xlu0 %v9731_v49, %s7820_s11  ;;  %4371 = vrot.lane.b32.xlu1 %v9744_v61, %s7820_s11  ;;  %12395 = vst [vmem:[#allocation81_spill] sm:$0xff] %v10468_v54 }
 0x8ff   :  { %v5873_v51 = vpop.permute.xlu0 %5872  ;;  %v5871_v19 = vpop.permute.xlu1 %5870 }
 0x900   :  { %v5930_v48 = vcombine.low %v5869_v39, %v5873_v51  ;;  %v5931_v16 = vcombine.high %v5869_v39, %v5873_v51  ;;  %v5914_v57 = vcombine.low %v5867_v13, %v5871_v19  ;;  %v5915_v60 = vcombine.high %v5867_v13, %v5871_v19 }
 0x901   :  { %6459 = vrot.lane.b32.xlu0 %v12326_v18, %s7820_s11  ;;  %6461 = vrot.lane.b32.xlu1 %v12327_v8, %s7820_s11  ;;  %v5946_v19 = vcombine.low %v10465_v10, %v10459_v56 }
 0x902   :  { %v10473_v23 = vrot.slane %v5930_v48, %v12264_v14  ;;  %v10476_v13 = vrot.slane %v5931_v16, %v12264_v14  ;;  %v10479_v44 = vrot.slane %v5914_v57, %v12264_v14  ;;  %v10482_v41 = vrot.slane %v5915_v60, %v12264_v14 }
 0x903   :  { %v10486_v39 = vpop.permute.xlu0 %5145  ;;  %v10488_v55 = vpop.permute.xlu1 %5147  ;;  %v5963_v48 = vcombine.high %v10468_v54, %v10462_v12  ;;  %v10515_v30 = vrot.slane %v5946_v19, %v12265_v26 }
 0x904   :  { %12396 = vst [vmem:[#allocation82_spill] sm:$0xff] %v10476_v13  ;;  %12397 = vst [vmem:[#allocation83_spill] sm:$0xff] %v10482_v41  ;;  %v5978_v31 = vcombine.low %v10479_v44, %v10473_v23  ;;  %v5995_v51 = vcombine.high %v10482_v41, %v10476_v13 }
 0x905   :  { %12398 = vst [vmem:[#allocation84_spill] sm:$0xff] %v10486_v39  ;;  %12399 = vst [vmem:[#allocation85_spill] sm:$0xff] %v10488_v55  ;;  %6463 = vrot.lane.b32.xlu0 %v9772_v2, %s7820_s11  ;;  %6465 = vrot.lane.b32.xlu1 %v9775_v34, %s7820_s11  ;;  %v10518_v17 = vrot.slane %v5963_v48, %v12265_v26 }
 0x906   :  { %v10507_v60 = vrot.slane %v5978_v31, %v12265_v26  ;;  %v10510_v7 = vrot.slane %v5995_v51, %v12265_v26  ;;  %12404 = vst [vmem:[#allocation90_spill] sm:$0xff] %v10515_v30 }
 0x907   :  { %v10502_v16 = vpop.permute.xlu0 %5149  ;;  %v10504_v57 = vpop.permute.xlu1 %5151  ;;  %12405 = vst [vmem:[#allocation91_spill] sm:$0xff] %v10518_v17 }
 0x908   :  { %12400 = vst [vmem:[#allocation86_spill] sm:$0xff] %v10502_v16  ;;  %12401 = vst [vmem:[#allocation87_spill] sm:$0xff] %v10504_v57  ;;  %v5169_v19 = vcombine.low %v10486_v39, %v10502_v16  ;;  %v5185_v48 = vcombine.low %v10488_v55, %v10504_v57  ;;  %v12412_v57 = vcombine.high %v12346_v5, %v9847_v36  ;;  %v12422_v36 = vld [vmem:[#allocation7_spill] sm:$0xff] }
 0x909   :  { %12402 = vst [vmem:[#allocation88_spill] sm:$0xff] %v10507_v60  ;;  %12403 = vst [vmem:[#allocation89_spill] sm:$0xff] %v10510_v7  ;;  %6467 = vrot.lane.b32.xlu0 %v9789_v46, %s7820_s11  ;;  %6469 = vrot.lane.b32.xlu1 %v9792_v3, %s7820_s11 }
 0x90a   :  { %v10547_v39 = vrot.slane %v5169_v19, %v12264_v14  ;;  %v10550_v55 = vrot.slane %v5185_v48, %v12264_v14 }
 0x90b   :  { %v10522_v54 = vpop.permute.xlu0 %5153  ;;  %v10524_v12 = vpop.permute.xlu1 %5155 }
 0x90c   :  { %12406 = vst [vmem:[#allocation92_spill] sm:$0xff] %v10522_v54  ;;  %12407 = vst [vmem:[#allocation93_spill] sm:$0xff] %v10524_v12 }
 0x90d   :  { %6471 = vrot.lane.b32.xlu0 %v12373_v45, %s7820_s11  ;;  %6473 = vrot.lane.b32.xlu1 %v12374_v24, %s7820_s11  ;;  %12410 = vst [vmem:[#allocation96_spill] sm:$0xff] %v10547_v39  ;;  %12411 = vst [vmem:[#allocation97_spill] sm:$0xff] %v10550_v55 }
 0x90f   :  { %v10538_v41 = vpop.permute.xlu0 %5157  ;;  %v10540_v13 = vpop.permute.xlu1 %5159 }
 0x910   :  { %12408 = vst [vmem:[#allocation94_spill] sm:$0xff] %v10538_v41  ;;  %12409 = vst [vmem:[#allocation95_spill] sm:$0xff] %v10540_v13  ;;  %v5201_v31 = vcombine.low %v10522_v54, %v10538_v41  ;;  %v5217_v51 = vcombine.low %v10524_v12, %v10540_v13  ;;  %v12415_v54 = vld [vmem:[#allocation9_spill] sm:$0xff]  ;;  %v12416_v12 = vld [vmem:[#allocation4_spill] sm:$0xff] }
 0x911   :  { %3714 = vrot.lane.b32.xlu0 %v12412_v57, %s7826_s15  ;;  %v12417_v13 = vcombine.low %v12415_v54, %v12416_v12  ;;  %v5233_v57 = vcombine.low %v10547_v39, %v10550_v55 }
 0x912   :  { %v10557_v16 = vrot.slane %v5201_v31, %v12264_v14  ;;  %v10560_v17 = vrot.slane %v5217_v51, %v12264_v14  ;;  %v12420_v31 = vcombine.high %v12415_v54, %v12416_v12  ;;  %v12421_v51 = vld [vmem:[#allocation3_spill] sm:$0xff]  ;;  %v12429_v54 = vld [vmem:[#allocation8_spill] sm:$0xff] }
 0x913   :  { %3718 = vrot.lane.b32.xlu1 %v12417_v13, %s7824_s13  ;;  %v10566_v19 = vpop.permute.xlu0 %7247  ;;  %v10568_v48 = vpop.permute.xlu1 %7249  ;;  %v12423_v5 = vcombine.low %v12421_v51, %v12422_v36  ;;  %v12427_v39 = vcombine.high %v12421_v51, %v12422_v36  ;;  %v10594_v12 = vrot.slane %v5233_v57, %v12265_v26  ;;  %v6930_v36 = vcombine.high %v10049_v40, %v10009_v43  ;;  %v12435_v51 = vld [vmem:[#allocation6_spill] sm:$0xff]  ;;  %v12436_v43 = vld [vmem:[#allocation15_spill] sm:$0xff] }
 0x914   :  { %12413 = vst [vmem:[#allocation98_spill] sm:$0xff] %v10557_v16  ;;  %12414 = vst [vmem:[#allocation99_spill] sm:$0xff] %v10560_v17  ;;  %v5265_v41 = vcombine.low %v10557_v16, %v10560_v17  ;;  %v12437_v40 = vcombine.high %v12435_v51, %v12436_v43  ;;  %v4828_v17 = vcombine.high %v9948_v11, %v9991_v58 }
 0x915   :  { %12418 = vst [vmem:[#allocation9_spill] sm:$0xff] %v10566_v19  ;;  %12419 = vst [vmem:[#allocation4_spill] sm:$0xff] %v10568_v48  ;;  %3722 = vrot.lane.b32.xlu0 %v12420_v31, %s7827_s16  ;;  %v12430_v31 = vld [vmem:[#allocation5_spill] sm:$0xff] }
 0x916   :  { %v10587_v30 = vrot.slane %v5265_v41, %v12265_v26  ;;  %12428 = vst [vmem:[#allocation101_spill] sm:$0xff] %v10594_v12  ;;  %v12431_v55 = vcombine.low %v12429_v54, %v12430_v31 }
 0x917   :  { %3726 = vrot.lane.b32.xlu1 %v12423_v5, %s7825_s14  ;;  %v10582_v13 = vpop.permute.xlu0 %7251  ;;  %v10584_v7 = vpop.permute.xlu1 %7253  ;;  %v6914_v5 = vcombine.high %v10044_v52, %v10006_v28  ;;  %v12434_v28 = vcombine.high %v12429_v54, %v12430_v31  ;;  %v6898_v52 = vcombine.high %v10025_v27, %v10039_v47  ;;  %v10640_v47 = vrot.slane %v6930_v36, %v12264_v14 }
 0x918   :  { %12424 = vst [vmem:[#allocation3_spill] sm:$0xff] %v10582_v13  ;;  %12425 = vst [vmem:[#allocation7_spill] sm:$0xff] %v10584_v7  ;;  %v7271_v57 = vcombine.low %v10566_v19, %v10582_v13 }
 0x919   :  { %12426 = vst [vmem:[#allocation100_spill] sm:$0xff] %v10587_v30  ;;  %3730 = vrot.lane.b32.xlu0 %v12427_v39, %s7828_s17  ;;  %v6882_v39 = vcombine.high %v10020_v15, %v10030_v29  ;;  %v4780_v15 = vcombine.high %v9442_v22, %v9778_v33  ;;  %v4812_v29 = vcombine.high %v9943_v53, %v9972_v21 }
 0x91a   :  { %v10633_v54 = vrot.slane %v6914_v5, %v12264_v14  ;;  %v4876_v33 = vcombine.high %v10086_v50, %v10089_v38  ;;  %v4796_v53 = vcombine.high %v9445_v9, %v9807_v32  ;;  %v10654_v21 = vrot.slane %v7271_v57, %v12264_v14  ;;  %v12441_v32 = vld [vmem:[#allocation18_spill] sm:$0xff]  ;;  %v12442_v38 = vld [vmem:[#allocation19_spill] sm:$0xff]  ;;  %v12444_v57 = vld [vmem:[#allocation25_spill] sm:$0xff] }
 0x91b   :  { %3734 = vrot.lane.b32.xlu1 %v12431_v55, %s7829_s18  ;;  %v10602_v16 = vpop.permute.xlu0 %7255  ;;  %v10604_v41 = vpop.permute.xlu1 %7257  ;;  %v7287_v55 = vcombine.low %v10568_v48, %v10584_v7  ;;  %v10651_v11 = vrot.slane %v6882_v39, %v12264_v14  ;;  %v12440_v5 = vcombine.high %v9962_v37, %v9965_v25  ;;  %v10664_v36 = vrot.slane %v6898_v52, %v12264_v14  ;;  %v12448_v37 = vld [vmem:[#allocation2_spill] sm:$0xff] }
 0x91c   :  { %12432 = vst [vmem:[#allocation8_spill] sm:$0xff] %v10602_v16  ;;  %12433 = vst [vmem:[#allocation5_spill] sm:$0xff] %v10604_v41  ;;  %v12443_v39 = vcombine.low %v12441_v32, %v12442_v38  ;;  %v10679_v25 = vrot.slane %v4812_v29, %v12264_v14  ;;  %v4842_v52 = vrot.slane %v4828_v17, %v12264_v14  ;;  %v12450_v38 = vld [vmem:[#allocation32_spill] sm:$0xff] }
 0x91d   :  { %3738 = vrot.lane.b32.xlu0 %v12434_v28, %s7830_s19  ;;  %v10657_v58 = vrot.slane %v7287_v55, %v12264_v14  ;;  %v12445_v55 = vld [vmem:[#allocation20_spill] sm:$0xff]  ;;  %v6993_v29 = vcombine.low %v10633_v54, %v10640_v47  ;;  %v4794_v13 = vrot.slane %v4780_v15, %v12264_v14 }
 0x91f   :  { %5824 = vrot.lane.b32.xlu1 %v12437_v40, %s7827_s16  ;;  %v10635_v31 = vpop.permute.xlu0 %7259  ;;  %v10637_v27 = vpop.permute.xlu1 %7261  ;;  %v4844_v40 = vcombine.high %v12445_v55, %v12444_v57  ;;  %v4890_v57 = vrot.slane %v4876_v33, %v12265_v26  ;;  %v7335_v17 = vcombine.low %v10654_v21, %v10657_v58  ;;  %v12452_v55 = vcombine.low %v12435_v51, %v12436_v43  ;;  %v12457_v51 = vld [vmem:[#allocation33_spill] sm:$0xff] }
 0x920   :  { %12438 = vst [vmem:[#allocation6_spill] sm:$0xff] %v10635_v31  ;;  %12439 = vst [vmem:[#allocation15_spill] sm:$0xff] %v10637_v27  ;;  %v7303_v28 = vcombine.low %v10602_v16, %v10635_v31  ;;  %v7319_v22 = vcombine.low %v10604_v41, %v10637_v27  ;;  %v12458_v43 = vld [vmem:[#allocation37_spill] sm:$0xff] }
 0x921   :  { %5816 = vrot.lane.b32.xlu0 %v12440_v5, %s7826_s15  ;;  %v4858_v33 = vrot.slane %v4844_v40, %v12265_v26  ;;  %v4891_v40 = vcombine.low %v10679_v25, %v4842_v52  ;;  %v10724_v41 = vrot.slane %v7335_v17, %v12265_v26 }
 0x922   :  { %v10667_v50 = vrot.slane %v7303_v28, %v12264_v14  ;;  %v10670_v9 = vrot.slane %v7319_v22, %v12264_v14  ;;  %v12449_v22 = vld [vmem:[#allocation10_spill] sm:$0xff] }
 0x923   :  { %5828 = vrot.lane.b32.xlu1 %v12443_v39, %s7825_s14  ;;  %v10682_v5 = vpop.permute.xlu0 %4950  ;;  %v10684_v28 = vpop.permute.xlu1 %4952  ;;  %v6978_v48 = vcombine.high %v12449_v22, %v12448_v37  ;;  %v12451_v39 = vld [vmem:[#allocation36_spill] sm:$0xff]  ;;  %v12453_v37 = vld [vmem:[#allocation27_spill] sm:$0xff]  ;;  %v12454_v22 = vld [vmem:[#allocation26_spill] sm:$0xff] }
 0x924   :  { %12446 = vst [vmem:[#allocation25_spill] sm:$0xff] %v10682_v5  ;;  %12447 = vst [vmem:[#allocation20_spill] sm:$0xff] %v10684_v28  ;;  %v7367_v7 = vcombine.low %v10667_v50, %v10670_v9  ;;  %v4908_v32 = vcombine.high %v12451_v39, %v12450_v38  ;;  %v6946_v19 = vcombine.high %v12454_v22, %v12453_v37 }
 0x925   :  { %5820 = vrot.lane.b32.xlu0 %v12452_v55, %s7824_s13  ;;  %v4810_v38 = vrot.slane %v4796_v53, %v12264_v14  ;;  %v6961_v39 = vcombine.low %v10651_v11, %v10664_v36  ;;  %v7010_v55 = vcombine.high %v12458_v43, %v12457_v51  ;;  %v6992_v37 = vrot.slane %v6978_v48, %v12265_v26 }
 0x926   :  { %v10717_v15 = vrot.slane %v7367_v7, %v12265_v26  ;;  %v4909_v53 = vcombine.low %v4858_v33, %v4890_v57  ;;  %v6960_v22 = vrot.slane %v6946_v19, %v12265_v26  ;;  %12460 = vst [vmem:[#allocation26_spill] sm:$0xff] %v10724_v41 }
 0x927   :  { %4916 = vrot.lane.b32.xlu1 %v4908_v32, %s7826_s15  ;;  %v10709_v12 = vpop.permute.xlu0 %4954  ;;  %v10711_v30 = vpop.permute.xlu1 %4956  ;;  %v7001_v32 = vrot.slane %v6993_v29, %v12265_v26  ;;  %v6969_v51 = vrot.slane %v6961_v39, %v12265_v26  ;;  %v4859_v48 = vcombine.low %v4794_v13, %v4810_v38  ;;  %v4910_v29 = vcombine.high %v4858_v33, %v4890_v57 }
 0x928   :  { %12455 = vst [vmem:[#allocation2_spill] sm:$0xff] %v10709_v12  ;;  %12456 = vst [vmem:[#allocation10_spill] sm:$0xff] %v10711_v30  ;;  %v7011_v27 = vcombine.low %v6960_v22, %v6992_v37  ;;  %v4974_v19 = vcombine.low %v10682_v5, %v10709_v12  ;;  %v4990_v17 = vcombine.low %v10684_v28, %v10711_v30 }
 0x929   :  { %12459 = vst [vmem:[#allocation27_spill] sm:$0xff] %v10717_v15  ;;  %7018 = vrot.lane.b32.xlu0 %v7010_v55, %s7826_s15  ;;  %v7013_v16 = vcombine.low %v6969_v51, %v7001_v32  ;;  %v4899_v55 = vrot.slane %v4891_v40, %v12265_v26  ;;  %v4867_v39 = vrot.slane %v4859_v48, %v12265_v26 }
 0x92a   :  { %v4892_v28 = vcombine.high %v10679_v25, %v4842_v52  ;;  %v4860_v33 = vcombine.high %v4794_v13, %v4810_v38  ;;  %v7012_v52 = vcombine.high %v6960_v22, %v6992_v37  ;;  %v6962_v13 = vcombine.high %v10651_v11, %v10664_v36 }
 0x92b   :  { %4920 = vrot.lane.b32.xlu1 %v4909_v53, %s7824_s13  ;;  %v10728_v43 = vpop.permute.xlu0 %4958  ;;  %v10730_v7 = vpop.permute.xlu1 %4960  ;;  %v4912_v12 = vcombine.high %v4867_v39, %v4899_v55  ;;  %v6321_v37 = vcombine.high %v9789_v46, %v12373_v45  ;;  %v6337_v11 = vcombine.high %v9792_v3, %v12374_v24  ;;  %v6305_v46 = vcombine.high %v12327_v8, %v9775_v34  ;;  %v12469_v8 = vld [vmem:[#allocation34_spill] sm:$0xff] }
 0x92c   :  { %v6976_v22 = vrot.slane %v6962_v13, %v12265_v26  ;;  %v4219_v3 = vcombine.high %v9717_v62, %v9731_v49  ;;  %v12471_v62 = vld [vmem:[#allocation22_spill] sm:$0xff] }
 0x92d   :  { %7022 = vrot.lane.b32.xlu0 %v7011_v27, %s7824_s13  ;;  %v10752_v27 = vrot.slane %v4974_v19, %v12264_v14  ;;  %v6994_v19 = vcombine.high %v10633_v54, %v10640_v47  ;;  %v4911_v47 = vcombine.low %v4867_v39, %v4899_v55  ;;  %v6289_v39 = vcombine.high %v12326_v18, %v9772_v2  ;;  %v12470_v18 = vld [vmem:[#allocation38_spill] sm:$0xff] }
 0x92e   :  { %v10817_v2 = vrot.slane %v6337_v11, %v12264_v14  ;;  %v4315_v49 = vcombine.high %v12470_v18, %v12469_v8 }
 0x92f   :  { %7030 = vrot.lane.b32.xlu1 %v7013_v16, %s7825_s14  ;;  %v10742_v53 = vpop.permute.xlu0 %4962  ;;  %v10744_v31 = vpop.permute.xlu1 %4964  ;;  %v10755_v16 = vrot.slane %v4990_v17, %v12264_v14  ;;  %v7014_v17 = vcombine.high %v6969_v51, %v7001_v32  ;;  %v7008_v51 = vrot.slane %v6994_v19, %v12265_v26  ;;  %v4187_v32 = vcombine.high %v9679_v0, %v9687_v4 }
 0x930   :  { %v5006_v40 = vcombine.low %v10728_v43, %v10742_v53  ;;  %v5022_v5 = vcombine.low %v10730_v7, %v10744_v31  ;;  %v4235_v0 = vcombine.high %v9728_v20, %v9744_v61  ;;  %v4203_v19 = vcombine.high %v9684_v35, %v9714_v1 }
 0x931   :  { %4924 = vrot.lane.b32.xlu0 %v4910_v29, %s7827_s16  ;;  %v7015_v24 = vcombine.low %v6976_v22, %v7008_v51  ;;  %v10826_v61 = vrot.slane %v4187_v32, %v12264_v14  ;;  %v10834_v13 = vrot.slane %v6289_v39, %v12264_v14  ;;  %v10845_v1 = vrot.slane %v4219_v3, %v12264_v14  ;;  %v12475_v39 = vld [vmem:[#allocation24_spill] sm:$0xff] }
 0x932   :  { %v10759_v48 = vrot.slane %v5006_v40, %v12264_v14  ;;  %v10762_v57 = vrot.slane %v5022_v5, %v12264_v14  ;;  %v4906_v40 = vrot.slane %v4892_v28, %v12265_v26  ;;  %v5038_v5 = vcombine.low %v10752_v27, %v10755_v16 }
 0x933   :  { %4932 = vrot.lane.b32.xlu1 %v4912_v12, %s7828_s17  ;;  %v10765_v30 = vpop.permute.xlu0 %7052  ;;  %v10767_v25 = vpop.permute.xlu1 %7054  ;;  %v4874_v12 = vrot.slane %v4860_v33, %v12265_v26  ;;  %v10814_v33 = vrot.slane %v6321_v37, %v12264_v14  ;;  %v4249_v35 = vrot.slane %v4235_v0, %v12264_v14  ;;  %v4217_v0 = vrot.slane %v4203_v19, %v12264_v14 }
 0x934   :  { %12461 = vst [vmem:[#allocation102_spill] sm:$0xff] %v10765_v30  ;;  %12462 = vst [vmem:[#allocation103_spill] sm:$0xff] %v10767_v25  ;;  %v5070_v29 = vcombine.low %v10759_v48, %v10762_v57  ;;  %v10798_v55 = vrot.slane %v5038_v5, %v12265_v26 }
 0x935   :  { %7026 = vrot.lane.b32.xlu0 %v7012_v52, %s7827_s16  ;;  %v4913_v36 = vcombine.low %v4874_v12, %v4906_v40  ;;  %v12472_v52 = vld [vmem:[#allocation21_spill] sm:$0xff]  ;;  %v4914_v32 = vcombine.high %v4874_v12, %v4906_v40  ;;  %v6400_v3 = vcombine.low %v10814_v33, %v10817_v2 }
 0x936   :  { %v10787_v28 = vrot.slane %v5070_v29, %v12265_v26  ;;  %12466 = vst [vmem:[#allocation107_spill] sm:$0xff] %v10798_v55  ;;  %v4283_v20 = vcombine.high %v12472_v52, %v12471_v62  ;;  %v12473_v29 = vld [vmem:[#allocation29_spill] sm:$0xff] }
 0x937   :  { %7034 = vrot.lane.b32.xlu1 %v7014_v17, %s7828_s17  ;;  %v10781_v38 = vpop.permute.xlu0 %7056  ;;  %v10783_v54 = vpop.permute.xlu1 %7058  ;;  %v12474_v17 = vld [vmem:[#allocation28_spill] sm:$0xff] }
 0x938   :  { %12463 = vst [vmem:[#allocation104_spill] sm:$0xff] %v10781_v38  ;;  %12464 = vst [vmem:[#allocation105_spill] sm:$0xff] %v10783_v54  ;;  %v4251_v5 = vcombine.high %v12474_v17, %v12473_v29  ;;  %v7076_v37 = vcombine.low %v10765_v30, %v10781_v38  ;;  %v7092_v11 = vcombine.low %v10767_v25, %v10783_v54  ;;  %v12478_v29 = vld [vmem:[#allocation35_spill] sm:$0xff] }
 0x939   :  { %12465 = vst [vmem:[#allocation106_spill] sm:$0xff] %v10787_v28  ;;  %4928 = vrot.lane.b32.xlu0 %v4911_v47, %s7825_s14  ;;  %v10837_v47 = vrot.slane %v6305_v46, %v12264_v14  ;;  %v12479_v17 = vld [vmem:[#allocation39_spill] sm:$0xff] }
 0x93a   :  { %v6417_v45 = vcombine.high %v12479_v17, %v12478_v29  ;;  %v4265_v12 = vrot.slane %v4251_v5, %v12265_v26  ;;  %v10869_v18 = vrot.slane %v7076_v37, %v12264_v14  ;;  %v6408_v17 = vrot.slane %v6400_v3, %v12265_v26 }
 0x93b   :  { %4936 = vrot.lane.b32.xlu1 %v4913_v36, %s7829_s18  ;;  %v10809_v4 = vpop.permute.xlu0 %7060  ;;  %v10819_v34 = vpop.permute.xlu1 %7062  ;;  %v6368_v19 = vcombine.low %v10834_v13, %v10837_v47 }
 0x93c   :  { %12467 = vst [vmem:[#allocation108_spill] sm:$0xff] %v10809_v4  ;;  %12468 = vst [vmem:[#allocation109_spill] sm:$0xff] %v10819_v34 }
 0x93d   :  { %7038 = vrot.lane.b32.xlu0 %v7015_v24, %s7829_s18  ;;  %v12476_v24 = vld [vmem:[#allocation23_spill] sm:$0xff] }
 0x93e   :  { %v6385_v46 = vcombine.high %v12476_v24, %v12475_v39  ;;  %v12480_v39 = vld [vmem:[#allocation31_spill] sm:$0xff]  ;;  %v12481_v24 = vld [vmem:[#allocation30_spill] sm:$0xff] }
 0x93f   :  { %4323 = vrot.lane.b32.xlu1 %v4315_v49, %s7826_s15  ;;  %v10848_v36 = vpop.permute.xlu0 %7064  ;;  %v10854_v52 = vpop.permute.xlu1 %7066  ;;  %v4297_v49 = vrot.slane %v4283_v20, %v12265_v26  ;;  %v6353_v8 = vcombine.high %v12481_v24, %v12480_v39  ;;  %v10872_v20 = vrot.slane %v7092_v11, %v12264_v14  ;;  %v7016_v39 = vcombine.high %v6976_v22, %v7008_v51 }
 0x940   :  { %v7108_v62 = vcombine.low %v10809_v4, %v10848_v36  ;;  %12477 = vst [vmem:[#allocation22_spill] sm:$0xff] %v10854_v52  ;;  %v7124_v40 = vcombine.low %v10819_v34, %v10854_v52  ;;  %v6399_v37 = vrot.slane %v6385_v46, %v12265_v26  ;;  %v6376_v51 = vrot.slane %v6368_v19, %v12265_v26 }
 0x941   :  { %4940 = vrot.lane.b32.xlu0 %v4914_v32, %s7830_s19  ;;  %v4316_v11 = vcombine.low %v4265_v12, %v4297_v49  ;;  %v7140_v25 = vcombine.low %v10869_v18, %v10872_v20  ;;  %v4266_v22 = vcombine.low %v10826_v61, %v4217_v0  ;;  %v4317_v34 = vcombine.high %v4265_v12, %v4297_v49 }
 0x942   :  { %v10875_v29 = vrot.slane %v7108_v62, %v12264_v14  ;;  %v10881_v32 = vrot.slane %v7124_v40, %v12264_v14  ;;  %v4298_v62 = vcombine.low %v10845_v1, %v4249_v35  ;;  %v6367_v40 = vrot.slane %v6353_v8, %v12265_v26 }
 0x943   :  { %6425 = vrot.lane.b32.xlu1 %v6417_v45, %s7826_s15  ;;  %v10883_v5 = vpop.permute.xlu0 %4552  ;;  %v10886_v24 = vpop.permute.xlu1 %4554  ;;  %v6420_v30 = vcombine.low %v6376_v51, %v6408_v17  ;;  %v4274_v8 = vrot.slane %v4266_v22, %v12265_v26  ;;  %v10911_v19 = vrot.slane %v7140_v25, %v12265_v26  ;;  %v4267_v49 = vcombine.high %v10826_v61, %v4217_v0  ;;  %v12495_v0 = vld [vmem:[#allocation65_spill] sm:$0xff] }
 0x944   :  { %12482 = vst [vmem:[#allocation21_spill] sm:$0xff] %v10883_v5  ;;  %12483 = vst [vmem:[#allocation29_spill] sm:$0xff] %v10886_v24  ;;  %v7172_v45 = vcombine.low %v10875_v29, %v10881_v32  ;;  %v6418_v3 = vcombine.low %v6367_v40, %v6399_v37  ;;  %v4306_v38 = vrot.slane %v4298_v62, %v12265_v26 }
 0x945   :  { %7042 = vrot.lane.b32.xlu0 %v7016_v39, %s7830_s19  ;;  %12487 = vst [vmem:[#allocation31_spill] sm:$0xff] %v10911_v19  ;;  %v4299_v62 = vcombine.high %v10845_v1, %v4249_v35  ;;  %v6419_v22 = vcombine.high %v6367_v40, %v6399_v37  ;;  %v6401_v1 = vcombine.high %v10814_v33, %v10817_v2  ;;  %v12496_v37 = vld [vmem:[#allocation72_spill] sm:$0xff] }
 0x946   :  { %v10905_v39 = vrot.slane %v7172_v45, %v12265_v26  ;;  %v4319_v4 = vcombine.high %v4274_v8, %v4306_v38  ;;  %v6174_v40 = vcombine.high %v12496_v37, %v12495_v0  ;;  %v12503_v0 = vld [vmem:[#allocation48_spill] sm:$0xff] }
 0x947   :  { %4327 = vrot.lane.b32.xlu1 %v4316_v11, %s7824_s13  ;;  %v10899_v46 = vpop.permute.xlu0 %4556  ;;  %v10901_v54 = vpop.permute.xlu1 %4558  ;;  %v4313_v45 = vrot.slane %v4299_v62, %v12265_v26  ;;  %v6415_v62 = vrot.slane %v6401_v1, %v12265_v26  ;;  %v12505_v1 = vld [vmem:[#allocation53_spill] sm:$0xff] }
 0x948   :  { %12484 = vst [vmem:[#allocation28_spill] sm:$0xff] %v10899_v46  ;;  %12485 = vst [vmem:[#allocation24_spill] sm:$0xff] %v10901_v54  ;;  %v4592_v25 = vcombine.low %v10886_v24, %v10901_v54 }
 0x949   :  { %12486 = vst [vmem:[#allocation23_spill] sm:$0xff] %v10905_v39  ;;  %6429 = vrot.lane.b32.xlu0 %v6418_v3, %s7824_s13  ;;  %v6421_v3 = vcombine.high %v6376_v51, %v6408_v17  ;;  %v4281_v17 = vrot.slane %v4267_v49, %v12265_v26 }
 0x94a   :  { %v10945_v33 = vrot.slane %v4592_v25, %v12264_v14 }
 0x94b   :  { %6437 = vrot.lane.b32.xlu1 %v6420_v30, %s7825_s14  ;;  %v10913_v11 = vpop.permute.xlu0 %4560  ;;  %v10915_v52 = vpop.permute.xlu1 %4562  ;;  %v4576_v30 = vcombine.low %v10883_v5, %v10899_v46  ;;  %v4320_v25 = vcombine.low %v4281_v17, %v4313_v45 }
 0x94c   :  { %12488 = vst [vmem:[#allocation30_spill] sm:$0xff] %v10913_v11  ;;  %12489 = vst [vmem:[#allocation110_spill] sm:$0xff] %v10915_v52 }
 0x94d   :  { %4331 = vrot.lane.b32.xlu0 %v4317_v34, %s7827_s16  ;;  %v10942_v61 = vrot.slane %v4576_v30, %v12264_v14  ;;  %12493 = vst [vmem:[#allocation114_spill] sm:$0xff] %v10945_v33 }
 0x94f   :  { %4339 = vrot.lane.b32.xlu1 %v4319_v4, %s7828_s17  ;;  %v10927_v12 = vpop.permute.xlu0 %4564  ;;  %v10933_v34 = vpop.permute.xlu1 %4566  ;;  %v6369_v4 = vcombine.high %v10834_v13, %v10837_v47  ;;  %12492 = vst [vmem:[#allocation113_spill] sm:$0xff] %v10942_v61  ;;  %v4318_v47 = vcombine.low %v4274_v8, %v4306_v38  ;;  %v4640_v38 = vcombine.low %v10942_v61, %v10945_v33  ;;  %v12504_v8 = vld [vmem:[#allocation54_spill] sm:$0xff]  ;;  %v12514_v33 = vld [vmem:[#allocation52_spill] sm:$0xff] }
 0x950   :  { %12490 = vst [vmem:[#allocation111_spill] sm:$0xff] %v10927_v12  ;;  %v4608_v35 = vcombine.low %v10913_v11, %v10927_v12  ;;  %12491 = vst [vmem:[#allocation112_spill] sm:$0xff] %v10933_v34  ;;  %v4624_v24 = vcombine.low %v10915_v52, %v10933_v34  ;;  %v4072_v5 = vcombine.high %v12505_v1, %v12504_v8  ;;  %v12507_v52 = vld [vmem:[#allocation46_spill] sm:$0xff]  ;;  %v12510_v11 = vld [vmem:[#allocation45_spill] sm:$0xff] }
 0x951   :  { %6433 = vrot.lane.b32.xlu0 %v6419_v22, %s7827_s16  ;;  %v12500_v22 = vld [vmem:[#allocation69_spill] sm:$0xff] }
 0x952   :  { %v10948_v2 = vrot.slane %v4608_v35, %v12264_v14  ;;  %v10955_v51 = vrot.slane %v4624_v24, %v12264_v14  ;;  %v12501_v35 = vld [vmem:[#allocation73_spill] sm:$0xff]  ;;  %v12502_v24 = vld [vmem:[#allocation50_spill] sm:$0xff] }
 0x953   :  { %6441 = vrot.lane.b32.xlu1 %v6421_v3, %s7828_s17  ;;  %v10957_v13 = vpop.permute.xlu0 %6654  ;;  %v10960_v30 = vpop.permute.xlu1 %6656  ;;  %v6142_v54 = vcombine.high %v12501_v35, %v12500_v22  ;;  %v6383_v3 = vrot.slane %v6369_v4, %v12265_v26  ;;  %v4024_v37 = vcombine.high %v12503_v0, %v12502_v24  ;;  %v6188_v35 = vrot.slane %v6174_v40, %v12265_v26  ;;  %v12509_v4 = vld [vmem:[#allocation47_spill] sm:$0xff] }
 0x954   :  { %12494 = vst [vmem:[#allocation115_spill] sm:$0xff] %v10948_v2  ;;  %12497 = vst [vmem:[#allocation65_spill] sm:$0xff] %v10955_v51  ;;  %v4672_v49 = vcombine.low %v10948_v2, %v10955_v51  ;;  %v4008_v12 = vcombine.high %v12510_v11, %v12509_v4  ;;  %v4321_v0 = vcombine.high %v4281_v17, %v4313_v45  ;;  %v12515_v40 = vld [vmem:[#allocation43_spill] sm:$0xff]  ;;  %v12516_v2 = vld [vmem:[#allocation42_spill] sm:$0xff] }
 0x955   :  { %12498 = vst [vmem:[#allocation72_spill] sm:$0xff] %v10957_v13  ;;  %12499 = vst [vmem:[#allocation116_spill] sm:$0xff] %v10960_v30  ;;  %4335 = vrot.lane.b32.xlu0 %v4318_v47, %s7825_s14  ;;  %v6422_v22 = vcombine.low %v6383_v3, %v6415_v62  ;;  %v12508_v47 = vld [vmem:[#allocation44_spill] sm:$0xff]  ;;  %v6156_v1 = vrot.slane %v6142_v54, %v12265_v26  ;;  %v3976_v51 = vcombine.high %v12516_v2, %v12515_v40 }
 0x956   :  { %v3992_v34 = vcombine.high %v12508_v47, %v12507_v52  ;;  %v10985_v61 = vrot.slane %v4672_v49, %v12265_v26  ;;  %v10994_v52 = vrot.slane %v4024_v37, %v12264_v14  ;;  %v10998_v11 = vrot.slane %v4640_v38, %v12265_v26 }
 0x957   :  { %4343 = vrot.lane.b32.xlu1 %v4320_v25, %s7829_s18  ;;  %v10975_v46 = vpop.permute.xlu0 %6658  ;;  %v10982_v24 = vpop.permute.xlu1 %6660  ;;  %v12513_v25 = vld [vmem:[#allocation51_spill] sm:$0xff]  ;;  %v6207_v17 = vcombine.low %v6156_v1, %v6188_v35  ;;  %v11007_v54 = vrot.slane %v4008_v12, %v12264_v14  ;;  %v6423_v37 = vcombine.high %v6383_v3, %v6415_v62  ;;  %v11016_v47 = vrot.slane %v3976_v51, %v12264_v14 }
 0x958   :  { %12506 = vst [vmem:[#allocation69_spill] sm:$0xff] %v10975_v46  ;;  %12511 = vst [vmem:[#allocation73_spill] sm:$0xff] %v10982_v24  ;;  %v4040_v8 = vcombine.high %v12514_v33, %v12513_v25  ;;  %v4086_v33 = vrot.slane %v4072_v5, %v12265_v26  ;;  %v11004_v49 = vrot.slane %v3992_v34, %v12264_v14  ;;  %v12522_v25 = vld [vmem:[#allocation57_spill] sm:$0xff] }
 0x959   :  { %12512 = vst [vmem:[#allocation50_spill] sm:$0xff] %v10985_v61  ;;  %6445 = vrot.lane.b32.xlu0 %v6422_v22, %s7829_s18  ;;  %12517 = vst [vmem:[#allocation48_spill] sm:$0xff] %v10998_v11  ;;  %v4087_v5 = vcombine.low %v11007_v54, %v10994_v52  ;;  %v6678_v12 = vcombine.low %v10957_v13, %v10975_v46  ;;  %v6694_v34 = vcombine.low %v10960_v30, %v10982_v24  ;;  %v12525_v13 = vld [vmem:[#allocation11_spill] sm:$0xff] }
 0x95a   :  { %v4054_v38 = vrot.slane %v4040_v8, %v12265_v26  ;;  %v4055_v4 = vcombine.low %v11016_v47, %v11004_v49  ;;  %v12523_v8 = vld [vmem:[#allocation60_spill] sm:$0xff]  ;;  %v5979_v46 = vcombine.high %v10479_v44, %v10473_v23  ;;  %v5947_v23 = vcombine.high %v10465_v10, %v10459_v56 }
 0x95b   :  { %4347 = vrot.lane.b32.xlu1 %v4321_v0, %s7830_s19  ;;  %v11000_v45 = vpop.permute.xlu0 %6662  ;;  %v11009_v2 = vpop.permute.xlu1 %6664  ;;  %v4104_v40 = vcombine.high %v12523_v8, %v12522_v25  ;;  %v11042_v22 = vrot.slane %v6694_v34, %v12264_v14  ;;  %v4095_v24 = vrot.slane %v4087_v5, %v12265_v26  ;;  %v12526_v25 = vld [vmem:[#allocation62_spill] sm:$0xff]  ;;  %v6208_v34 = vcombine.high %v6156_v1, %v6188_v35  ;;  %v12529_v5 = vld [vmem:[#allocation59_spill] sm:$0xff] }
 0x95c   :  { %12518 = vst [vmem:[#allocation54_spill] sm:$0xff] %v11000_v45  ;;  %12519 = vst [vmem:[#allocation53_spill] sm:$0xff] %v11009_v2  ;;  %v4106_v3 = vcombine.high %v4054_v38, %v4086_v33  ;;  %v6126_v8 = vcombine.high %v12526_v25, %v12525_v13  ;;  %v12531_v13 = vld [vmem:[#allocation61_spill] sm:$0xff]  ;;  %v12532_v25 = vld [vmem:[#allocation58_spill] sm:$0xff]  ;;  %v11081_v10 = vrot.slane %v5979_v46, %v12265_v26 }
 0x95d   :  { %6218 = vrot.lane.b32.xlu0 %v6207_v17, %s7824_s13  ;;  %v12533_v1 = vld [vmem:[#allocation55_spill] sm:$0xff] }
 0x95f   :  { %6449 = vrot.lane.b32.xlu1 %v6423_v37, %s7830_s19  ;;  %v11025_v62 = vpop.permute.xlu0 %6666  ;;  %v11031_v0 = vpop.permute.xlu1 %6668  ;;  %v11039_v37 = vrot.slane %v6678_v12, %v12264_v14 }
 0x960   :  { %12520 = vst [vmem:[#allocation46_spill] sm:$0xff] %v11025_v62  ;;  %v6710_v51 = vcombine.low %v11000_v45, %v11025_v62  ;;  %12521 = vst [vmem:[#allocation44_spill] sm:$0xff] %v11031_v0  ;;  %v6726_v17 = vcombine.low %v11009_v2, %v11031_v0  ;;  %v12530_v0 = vld [vmem:[#allocation56_spill] sm:$0xff]  ;;  %v6110_v62 = vcombine.high %v12532_v25, %v12531_v13 }
 0x961   :  { %4120 = vrot.lane.b32.xlu0 %v4106_v3, %s7827_s16  ;;  %12524 = vst [vmem:[#allocation47_spill] sm:$0xff] %v11039_v37  ;;  %v6094_v45 = vcombine.high %v12530_v0, %v12529_v5  ;;  %v6742_v35 = vcombine.low %v11039_v37, %v11042_v22  ;;  %v6140_v0 = vrot.slane %v6126_v8, %v12264_v14  ;;  %v12545_v37 = vld [vmem:[#allocation71_spill] sm:$0xff] }
 0x962   :  { %v11045_v30 = vrot.slane %v6710_v51, %v12264_v14  ;;  %v11054_v3 = vrot.slane %v6726_v17, %v12264_v14  ;;  %v6206_v51 = vcombine.high %v10440_v6, %v10431_v59  ;;  %v4105_v25 = vcombine.low %v4054_v38, %v4086_v33  ;;  %v12543_v6 = vld [vmem:[#allocation67_spill] sm:$0xff] }
 0x963   :  { %4112 = vrot.lane.b32.xlu1 %v4104_v40, %s7826_s15  ;;  %v11056_v12 = vpop.permute.xlu0 %4357  ;;  %v11058_v2 = vpop.permute.xlu1 %4359  ;;  %v4063_v40 = vrot.slane %v4055_v4, %v12265_v26  ;;  %v12534_v4 = vld [vmem:[#allocation49_spill] sm:$0xff]  ;;  %v6108_v59 = vrot.slane %v6094_v45, %v12264_v14  ;;  %v11092_v8 = vrot.slane %v5947_v23, %v12265_v26  ;;  %v11096_v46 = vrot.slane %v6742_v35, %v12265_v26 }
 0x964   :  { %12527 = vst [vmem:[#allocation45_spill] sm:$0xff] %v11056_v12  ;;  %12528 = vst [vmem:[#allocation51_spill] sm:$0xff] %v11058_v2  ;;  %v6774_v44 = vcombine.low %v11045_v30, %v11054_v3  ;;  %v6078_v17 = vcombine.high %v12534_v4, %v12533_v1  ;;  %v3909_v23 = vcombine.high %v10443_v63, %v10434_v42 }
 0x965   :  { %6222 = vrot.lane.b32.xlu0 %v6208_v34, %s7827_s16  ;;  %v4107_v13 = vcombine.low %v4063_v40, %v4095_v24  ;;  %12538 = vst [vmem:[#allocation11_spill] sm:$0xff] %v11096_v46  ;;  %v6012_v45 = vcombine.low %v11092_v8, %v11081_v10  ;;  %v4108_v35 = vcombine.high %v4063_v40, %v4095_v24 }
 0x966   :  { %v11086_v34 = vrot.slane %v6774_v44, %v12265_v26  ;;  %v6092_v1 = vrot.slane %v6078_v17, %v12264_v14  ;;  %v12539_v44 = vld [vmem:[#allocation63_spill] sm:$0xff]  ;;  %v12542_v17 = vld [vmem:[#allocation12_spill] sm:$0xff] }
 0x967   :  { %6214 = vrot.lane.b32.xlu1 %v6206_v51, %s7826_s15  ;;  %v11078_v5 = vpop.permute.xlu0 %4361  ;;  %v11083_v56 = vpop.permute.xlu1 %4363  ;;  %v6124_v51 = vrot.slane %v6110_v62, %v12264_v14  ;;  %v12540_v62 = vld [vmem:[#allocation70_spill] sm:$0xff]  ;;  %v3845_v11 = vcombine.high %v12543_v6, %v12542_v17 }
 0x968   :  { %12535 = vst [vmem:[#allocation52_spill] sm:$0xff] %v11078_v5  ;;  %12536 = vst [vmem:[#allocation43_spill] sm:$0xff] %v11083_v56  ;;  %v3877_v4 = vcombine.high %v12540_v62, %v12539_v44  ;;  %v4381_v61 = vcombine.low %v11056_v12, %v11078_v5  ;;  %v4397_v44 = vcombine.low %v11058_v2, %v11083_v56  ;;  %v12544_v62 = vld [vmem:[#allocation64_spill] sm:$0xff]  ;;  %v12547_v17 = vld [vmem:[#allocation90_spill] sm:$0xff] }
 0x969   :  { %12537 = vst [vmem:[#allocation42_spill] sm:$0xff] %v11086_v34  ;;  %4124 = vrot.lane.b32.xlu0 %v4107_v13, %s7825_s14  ;;  %v6189_v33 = vcombine.low %v6124_v51, %v6140_v0  ;;  %v3892_v42 = vcombine.low %v12545_v37, %v12544_v62  ;;  %v6011_v12 = vcombine.high %v12547_v17, %v10507_v60  ;;  %v12548_v56 = vld [vmem:[#allocation66_spill] sm:$0xff] }
 0x96a   :  { %v3891_v2 = vrot.slane %v3877_v4, %v12265_v26  ;;  %v11138_v40 = vrot.slane %v4381_v61, %v12264_v14  ;;  %v6190_v4 = vcombine.high %v6124_v51, %v6140_v0  ;;  %v6158_v17 = vcombine.high %v6092_v1, %v6108_v59 }
 0x96b   :  { %4116 = vrot.lane.b32.xlu1 %v4105_v25, %s7824_s13  ;;  %v11099_v38 = vpop.permute.xlu0 %4365  ;;  %v11105_v13 = vpop.permute.xlu1 %4367  ;;  %v6157_v25 = vcombine.low %v6092_v1, %v6108_v59  ;;  %v6197_v46 = vrot.slane %v6189_v33, %v12265_v26  ;;  %v11141_v33 = vrot.slane %v4397_v44, %v12264_v14  ;;  %v11154_v61 = vrot.slane %v3892_v42, %v12265_v26 }
 0x96c   :  { %12541 = vst [vmem:[#allocation62_spill] sm:$0xff] %v11105_v13  ;;  %v4088_v42 = vcombine.high %v11007_v54, %v10994_v52  ;;  %v11174_v51 = vrot.slane %v6190_v4, %v12265_v26  ;;  %v11185_v52 = vrot.slane %v6158_v17, %v12265_v26  ;;  %v12554_v4 = vld [vmem:[#allocation82_spill] sm:$0xff]  ;;  %v6013_v17 = vcombine.high %v11092_v8, %v11081_v10 }
 0x96d   :  { %6023 = vrot.lane.b32.xlu0 %v6012_v45, %s7824_s13  ;;  %v6165_v24 = vrot.slane %v6157_v25, %v12265_v26 }
 0x96f   :  { %3917 = vrot.lane.b32.xlu1 %v3909_v23, %s7826_s15  ;;  %v11121_v63 = vpop.permute.xlu0 %4369  ;;  %v11126_v6 = vpop.permute.xlu1 %4371  ;;  %v12549_v23 = vld [vmem:[#allocation68_spill] sm:$0xff]  ;;  %v6210_v25 = vcombine.high %v6165_v24, %v6197_v46 }
 0x970   :  { %v4413_v45 = vcombine.low %v11099_v38, %v11121_v63  ;;  %12546 = vst [vmem:[#allocation59_spill] sm:$0xff] %v11126_v6  ;;  %v3860_v5 = vcombine.low %v12549_v23, %v12548_v56  ;;  %v4429_v37 = vcombine.low %v11105_v13, %v11126_v6  ;;  %v3859_v56 = vrot.slane %v3845_v11, %v12265_v26 }
 0x971   :  { %4128 = vrot.lane.b32.xlu0 %v4108_v35, %s7828_s17 }
 0x972   :  { %v11144_v62 = vrot.slane %v4413_v45, %v12264_v14  ;;  %v11149_v23 = vrot.slane %v4429_v37, %v12264_v14  ;;  %v3910_v44 = vcombine.low %v3859_v56, %v3891_v2  ;;  %v11162_v11 = vrot.slane %v3860_v5, %v12265_v26 }
 0x973   :  { %6019 = vrot.lane.b32.xlu1 %v6011_v12, %s7826_s15  ;;  %v11151_v35 = vpop.permute.xlu0 %6459  ;;  %v11156_v60 = vpop.permute.xlu1 %6461  ;;  %v4445_v12 = vcombine.low %v11138_v40, %v11141_v33  ;;  %v6209_v5 = vcombine.low %v6165_v24, %v6197_v46  ;;  %v6211_v24 = vcombine.low %v11185_v52, %v11174_v51 }
 0x974   :  { %12550 = vst [vmem:[#allocation56_spill] sm:$0xff] %v11151_v35  ;;  %12551 = vst [vmem:[#allocation61_spill] sm:$0xff] %v11156_v60  ;;  %v4477_v45 = vcombine.low %v11144_v62, %v11149_v23  ;;  %v3912_v59 = vcombine.low %v11162_v11, %v11154_v61 }
 0x975   :  { %6230 = vrot.lane.b32.xlu0 %v6210_v25, %s7828_s17  ;;  %v4056_v25 = vcombine.high %v11016_v47, %v11004_v49  ;;  %v11189_v54 = vrot.slane %v4445_v12, %v12265_v26  ;;  %v4102_v49 = vrot.slane %v4088_v42, %v12265_v26 }
 0x976   :  { %v11179_v37 = vrot.slane %v4477_v45, %v12265_v26  ;;  %v3911_v45 = vcombine.high %v3859_v56, %v3891_v2 }
 0x977   :  { %3921 = vrot.lane.b32.xlu1 %v3910_v44, %s7824_s13  ;;  %v11169_v0 = vpop.permute.xlu0 %6463  ;;  %v11176_v1 = vpop.permute.xlu1 %6465  ;;  %v12555_v44 = vld [vmem:[#allocation83_spill] sm:$0xff] }
 0x978   :  { %12552 = vst [vmem:[#allocation58_spill] sm:$0xff] %v11169_v0  ;;  %12553 = vst [vmem:[#allocation55_spill] sm:$0xff] %v11176_v1  ;;  %v5994_v13 = vcombine.low %v12555_v44, %v12554_v4  ;;  %v6483_v6 = vcombine.low %v11151_v35, %v11169_v0  ;;  %v6499_v4 = vcombine.low %v11156_v60, %v11176_v1 }
 0x979   :  { %3929 = vrot.lane.b32.xlu0 %v3912_v59, %s7825_s14  ;;  %v12557_v59 = vld [vmem:[#allocation80_spill] sm:$0xff]  ;;  %v4070_v44 = vrot.slane %v4056_v25, %v12265_v26 }
 0x97a   :  { %v6002_v56 = vrot.slane %v5994_v13, %v12265_v26  ;;  %v11221_v60 = vrot.slane %v6483_v6, %v12264_v14  ;;  %v11224_v25 = vrot.slane %v6499_v4, %v12264_v14 }
 0x97b   :  { %6226 = vrot.lane.b32.xlu1 %v6209_v5, %s7825_s14  ;;  %v11193_v46 = vpop.permute.xlu0 %6467  ;;  %v11198_v47 = vpop.permute.xlu1 %6469  ;;  %v12558_v5 = vld [vmem:[#allocation81_spill] sm:$0xff]  ;;  %v4110_v2 = vcombine.high %v4070_v44, %v4102_v49  ;;  %v4109_v1 = vcombine.low %v4070_v44, %v4102_v49 }
 0x97c   :  { %12556 = vst [vmem:[#allocation49_spill] sm:$0xff] %v11198_v47  ;;  %v5962_v12 = vcombine.low %v12558_v5, %v12557_v59  ;;  %v6547_v35 = vcombine.low %v11221_v60, %v11224_v25 }
 0x97d   :  { %6234 = vrot.lane.b32.xlu0 %v6211_v24, %s7829_s18 }
 0x97e   :  { %v5970_v13 = vrot.slane %v5962_v12, %v12265_v26  ;;  %v11258_v44 = vrot.slane %v6547_v35, %v12265_v26  ;;  %v7336_v35 = vcombine.high %v10654_v21, %v10657_v58  ;;  %v12576_v58 = vld [vmem:[#allocation86_spill] sm:$0xff] }
 0x97f   :  { %3925 = vrot.lane.b32.xlu1 %v3911_v45, %s7827_s16  ;;  %v11211_v42 = vpop.permute.xlu0 %6471  ;;  %v11216_v5 = vpop.permute.xlu1 %6473 }
 0x980   :  { %v6515_v59 = vcombine.low %v11193_v46, %v11211_v42  ;;  %v6531_v24 = vcombine.low %v11198_v47, %v11216_v5  ;;  %v6015_v6 = vcombine.high %v5970_v13, %v6002_v56  ;;  %v6014_v49 = vcombine.low %v5970_v13, %v6002_v56  ;;  %v12569_v13 = vld [vmem:[#allocation94_spill] sm:$0xff] }
 0x981   :  { %4136 = vrot.lane.b32.xlu0 %v4110_v2, %s7830_s19  ;;  %v12562_v2 = vld [vmem:[#allocation76_spill] sm:$0xff]  ;;  %v3913_v56 = vcombine.high %v11162_v11, %v11154_v61  ;;  %v7400_v61 = vcombine.high %v10724_v41, %v10717_v15 }
 0x982   :  { %v11231_v45 = vrot.slane %v6515_v59, %v12264_v14  ;;  %v11235_v10 = vrot.slane %v6531_v24, %v12264_v14  ;;  %v12563_v59 = vld [vmem:[#allocation79_spill] sm:$0xff]  ;;  %v12577_v11 = vld [vmem:[#allocation84_spill] sm:$0xff] }
 0x983   :  { %6027 = vrot.lane.b32.xlu1 %v6013_v17, %s7827_s16  ;;  %v11237_v8 = vpop.permute.xlu0 %3714  ;;  %v3914_v24 = vcombine.low %v12563_v59, %v12562_v2  ;;  %v12567_v2 = vld [vmem:[#allocation91_spill] sm:$0xff] }
 0x984   :  { %12559 = vst [vmem:[#allocation63_spill] sm:$0xff] %v11237_v8  ;;  %v6579_v12 = vcombine.low %v11231_v45, %v11235_v10 }
 0x985   :  { %v11239_v4 = vpop.permute.xlu1 %3718  ;;  %6035 = vrot.lane.b32.xlu0 %v6015_v6, %s7828_s17 }
 0x986   :  { %12560 = vst [vmem:[#allocation70_spill] sm:$0xff] %v11239_v4  ;;  %v11252_v8 = vrot.slane %v6579_v12, %v12265_v26  ;;  %v12574_v12 = vld [vmem:[#allocation98_spill] sm:$0xff] }
 0x987   :  { %4132 = vrot.lane.b32.xlu1 %v4109_v1, %s7829_s18  ;;  %v11247_v17 = vpop.permute.xlu0 %3722  ;;  %v7368_v1 = vcombine.high %v10667_v50, %v10670_v9  ;;  %v12570_v50 = vld [vmem:[#allocation92_spill] sm:$0xff] }
 0x988   :  { %12561 = vst [vmem:[#allocation12_spill] sm:$0xff] %v11247_v17  ;;  %v12566_v17 = vld [vmem:[#allocation89_spill] sm:$0xff]  ;;  %v5202_v9 = vcombine.high %v12570_v50, %v12569_v13  ;;  %v6212_v13 = vcombine.high %v11185_v52, %v11174_v51  ;;  %v12579_v50 = vld [vmem:[#allocation87_spill] sm:$0xff]  ;;  %v12584_v51 = vld [vmem:[#allocation8_spill] sm:$0xff] }
 0x989   :  { %v11254_v4 = vpop.permute.xlu1 %3726  ;;  %3937 = vrot.lane.b32.xlu0 %v3914_v24, %s7829_s18  ;;  %v6016_v59 = vcombine.low %v12567_v2, %v12566_v17  ;;  %v12571_v24 = vld [vmem:[#allocation95_spill] sm:$0xff]  ;;  %v7382_v21 = vrot.slane %v7368_v1, %v12265_v26 }
 0x98a   :  { %12564 = vst [vmem:[#allocation67_spill] sm:$0xff] %v11254_v4  ;;  %v12573_v17 = vld [vmem:[#allocation99_spill] sm:$0xff]  ;;  %v11301_v1 = vrot.slane %v5202_v9, %v12264_v14 }
 0x98b   :  { %6031 = vrot.lane.b32.xlu1 %v6014_v49, %s7825_s14  ;;  %v11263_v6 = vpop.permute.xlu0 %3730  ;;  %v12572_v49 = vld [vmem:[#allocation93_spill] sm:$0xff]  ;;  %v5266_v2 = vcombine.high %v12574_v12, %v12573_v17  ;;  %v12582_v17 = vld [vmem:[#allocation96_spill] sm:$0xff] }
 0x98c   :  { %12565 = vst [vmem:[#allocation64_spill] sm:$0xff] %v11263_v6  ;;  %v5218_v6 = vcombine.high %v12572_v49, %v12571_v24  ;;  %v12581_v49 = vld [vmem:[#allocation97_spill] sm:$0xff] }
 0x98d   :  { %v11269_v4 = vpop.permute.xlu1 %3734  ;;  %6039 = vrot.lane.b32.xlu0 %v6016_v59, %s7829_s18  ;;  %v5170_v59 = vcombine.high %v12577_v11, %v12576_v58  ;;  %v5234_v12 = vcombine.high %v12582_v17, %v12581_v49  ;;  %v12583_v11 = vld [vmem:[#allocation6_spill] sm:$0xff]  ;;  %v12590_v17 = vld [vmem:[#allocation101_spill] sm:$0xff] }
 0x98e   :  { %12568 = vst [vmem:[#allocation71_spill] sm:$0xff] %v11269_v4  ;;  %v11304_v58 = vrot.slane %v5218_v6, %v12264_v14  ;;  %v7304_v52 = vcombine.high %v12584_v51, %v12583_v11  ;;  %v12589_v6 = vld [vmem:[#allocation100_spill] sm:$0xff]  ;;  %v12591_v11 = vld [vmem:[#allocation3_spill] sm:$0xff]  ;;  %v12592_v51 = vld [vmem:[#allocation9_spill] sm:$0xff] }
 0x98f   :  { %3933 = vrot.lane.b32.xlu1 %v3913_v56, %s7828_s17  ;;  %v11283_v4 = vpop.permute.xlu0 %3738  ;;  %v12580_v56 = vld [vmem:[#allocation85_spill] sm:$0xff]  ;;  %v5298_v41 = vcombine.high %v12590_v17, %v12589_v6  ;;  %v7272_v47 = vcombine.high %v12592_v51, %v12591_v11 }
 0x990   :  { %12575 = vst [vmem:[#allocation66_spill] sm:$0xff] %v11283_v4  ;;  %v5186_v24 = vcombine.high %v12580_v56, %v12579_v50  ;;  %v7350_v4 = vrot.slane %v7336_v35, %v12265_v26  ;;  %v12586_v50 = vld [vmem:[#allocation5_spill] sm:$0xff]  ;;  %v11315_v35 = vrot.slane %v5170_v59, %v12264_v14  ;;  %v5281_v59 = vcombine.low %v11301_v1, %v11304_v58 }
 0x991   :  { %v11290_v0 = vpop.permute.xlu1 %5824  ;;  %7408 = vrot.lane.b32.xlu0 %v7400_v61, %s7826_s15  ;;  %v5280_v61 = vrot.slane %v5266_v2, %v12265_v26  ;;  %v5248_v2 = vrot.slane %v5234_v12, %v12265_v26 }
 0x992   :  { %12578 = vst [vmem:[#allocation68_spill] sm:$0xff] %v11290_v0  ;;  %v12585_v0 = vld [vmem:[#allocation15_spill] sm:$0xff]  ;;  %v7401_v49 = vcombine.low %v7350_v4, %v7382_v21 }
 0x993   :  { %6238 = vrot.lane.b32.xlu1 %v6212_v13, %s7830_s19  ;;  %v7320_v56 = vcombine.high %v12586_v50, %v12585_v0  ;;  %v11311_v15 = vpop.permute.xlu0 %5816  ;;  %v11322_v13 = vrot.slane %v5186_v24, %v12264_v14  ;;  %v12593_v0 = vld [vmem:[#allocation7_spill] sm:$0xff]  ;;  %v12594_v50 = vld [vmem:[#allocation4_spill] sm:$0xff]  ;;  %v5300_v11 = vcombine.high %v5248_v2, %v5280_v61 }
 0x994   :  { %12587 = vst [vmem:[#allocation82_spill] sm:$0xff] %v11311_v15  ;;  %v7288_v15 = vcombine.high %v12594_v50, %v12593_v0  ;;  %v5299_v0 = vcombine.low %v5248_v2, %v5280_v61  ;;  %v7402_v50 = vcombine.high %v7350_v4, %v7382_v21  ;;  %v11358_v61 = vrot.slane %v5281_v59, %v12265_v26 }
 0x995   :  { %v11317_v9 = vpop.permute.xlu1 %5828  ;;  %7412 = vrot.lane.b32.xlu0 %v7401_v49, %s7824_s13  ;;  %v11337_v24 = vrot.slane %v7320_v56, %v12264_v14  ;;  %v5249_v12 = vcombine.low %v11315_v35, %v11322_v13  ;;  %v5039_v4 = vcombine.high %v10752_v27, %v10755_v16  ;;  %v7205_v27 = vcombine.high %v10911_v19, %v10905_v39 }
 0x996   :  { %12588 = vst [vmem:[#allocation83_spill] sm:$0xff] %v11317_v9  ;;  %v11334_v9 = vrot.slane %v7304_v52, %v12264_v14  ;;  %v11349_v49 = vrot.slane %v7288_v15, %v12264_v14  ;;  %v5103_v15 = vcombine.high %v10798_v55, %v10787_v28  ;;  %v12609_v55 = vld [vmem:[#allocation105_spill] sm:$0xff] }
 0x997   :  { %5306 = vrot.lane.b32.xlu1 %v5298_v41, %s7826_s15  ;;  %v11339_v6 = vpop.permute.xlu0 %5820  ;;  %v11346_v41 = vrot.slane %v7272_v47, %v12264_v14  ;;  %v5071_v47 = vcombine.high %v10759_v48, %v10762_v57  ;;  %v5007_v48 = vcombine.high %v10728_v43, %v10742_v53  ;;  %v5023_v57 = vcombine.high %v10730_v7, %v10744_v31  ;;  %v12598_v43 = vld [vmem:[#allocation2_spill] sm:$0xff]  ;;  %v12599_v53 = vld [vmem:[#allocation25_spill] sm:$0xff]  ;;  %v12601_v7 = vld [vmem:[#allocation20_spill] sm:$0xff] }
 0x998   :  { %12595 = vst [vmem:[#allocation80_spill] sm:$0xff] %v11339_v6  ;;  %v7383_v52 = vcombine.low %v11334_v9, %v11337_v24  ;;  %v12600_v31 = vld [vmem:[#allocation10_spill] sm:$0xff] }
 0x999   :  { %v11341_v51 = vpop.permute.xlu1 %4916  ;;  %5314 = vrot.lane.b32.xlu0 %v5300_v11, %s7827_s16  ;;  %v7351_v11 = vcombine.low %v11346_v41, %v11349_v49  ;;  %v5085_v16 = vrot.slane %v5071_v47, %v12265_v26  ;;  %v11402_v47 = vrot.slane %v5023_v57, %v12264_v14 }
 0x99a   :  { %v7391_v6 = vrot.slane %v7383_v52, %v12265_v26 }
 0x99b   :  { %5310 = vrot.lane.b32.xlu1 %v5299_v0, %s7824_s13  ;;  %v11355_v56 = vpop.permute.xlu0 %7018  ;;  %v5257_v0 = vrot.slane %v5249_v12, %v12265_v26  ;;  %v7173_v12 = vcombine.high %v10875_v29, %v10881_v32  ;;  %v7359_v52 = vrot.slane %v7351_v11, %v12265_v26  ;;  %v7141_v29 = vcombine.high %v10869_v18, %v10872_v20 }
 0x99c   :  { %v5053_v32 = vrot.slane %v5039_v4, %v12265_v26 }
 0x99d   :  { %v11362_v2 = vpop.permute.xlu1 %4920  ;;  %7416 = vrot.lane.b32.xlu0 %v7402_v50, %s7827_s16  ;;  %v5301_v59 = vcombine.low %v5257_v0, %v11358_v61  ;;  %v7187_v11 = vrot.slane %v7173_v12, %v12265_v26  ;;  %v7155_v4 = vrot.slane %v7141_v29, %v12265_v26  ;;  %v12604_v12 = vld [vmem:[#allocation108_spill] sm:$0xff] }
 0x99e   :  { %v12607_v29 = vld [vmem:[#allocation104_spill] sm:$0xff] }
 0x99f   :  { %5111 = vrot.lane.b32.xlu1 %v5103_v15, %s7826_s15  ;;  %v11377_v21 = vpop.permute.xlu0 %7022  ;;  %v4975_v15 = vcombine.high %v12599_v53, %v12598_v43  ;;  %v7403_v53 = vcombine.low %v7359_v52, %v7391_v6  ;;  %v7206_v19 = vcombine.low %v7155_v4, %v7187_v11 }
 0x9a0   :  { %12596 = vst [vmem:[#allocation81_spill] sm:$0xff] %v11377_v21  ;;  %v4991_v21 = vcombine.high %v12601_v7, %v12600_v31  ;;  %v7109_v7 = vcombine.high %v12604_v12, %v10848_v36  ;;  %v7384_v36 = vcombine.high %v11334_v9, %v11337_v24 }
 0x9a1   :  { %v11383_v50 = vpop.permute.xlu1 %7030  ;;  %5318 = vrot.lane.b32.xlu0 %v5301_v59, %s7825_s14  ;;  %v5104_v59 = vcombine.low %v5053_v32, %v5085_v16  ;;  %v11410_v18 = vrot.slane %v4975_v15, %v12264_v14  ;;  %v12605_v15 = vld [vmem:[#allocation22_spill] sm:$0xff] }
 0x9a2   :  { %12597 = vst [vmem:[#allocation94_spill] sm:$0xff] %v11383_v50  ;;  %v11399_v50 = vrot.slane %v5007_v48, %v12264_v14  ;;  %v11413_v20 = vrot.slane %v4991_v21, %v12264_v14 }
 0x9a3   :  { %7213 = vrot.lane.b32.xlu1 %v7205_v27, %s7826_s15  ;;  %v11404_v43 = vpop.permute.xlu0 %4924  ;;  %v5105_v27 = vcombine.high %v5053_v32, %v5085_v16 }
 0x9a4   :  { %v5086_v48 = vcombine.low %v11399_v50, %v11402_v47 }
 0x9a5   :  { %v11406_v31 = vpop.permute.xlu1 %4932  ;;  %7420 = vrot.lane.b32.xlu0 %v7403_v53, %s7825_s14  ;;  %v5054_v53 = vcombine.low %v11410_v18, %v11413_v20 }
 0x9a6   :  { %12602 = vst [vmem:[#allocation92_spill] sm:$0xff] %v11406_v31  ;;  %v12606_v31 = vld [vmem:[#allocation109_spill] sm:$0xff]  ;;  %v5094_v12 = vrot.slane %v5086_v48, %v12265_v26 }
 0x9a7   :  { %5115 = vrot.lane.b32.xlu1 %v5104_v59, %s7824_s13  ;;  %v11420_v57 = vpop.permute.xlu0 %7026  ;;  %v7125_v39 = vcombine.high %v12606_v31, %v12605_v15  ;;  %v12608_v59 = vld [vmem:[#allocation102_spill] sm:$0xff]  ;;  %v7404_v31 = vcombine.high %v7359_v52, %v7391_v6  ;;  %v5282_v15 = vcombine.high %v11301_v1, %v11304_v58  ;;  %v5062_v9 = vrot.slane %v5054_v53, %v12265_v26 }
 0x9a8   :  { %12603 = vst [vmem:[#allocation95_spill] sm:$0xff] %v11420_v57  ;;  %v7077_v28 = vcombine.high %v12608_v59, %v12607_v29  ;;  %v12610_v57 = vld [vmem:[#allocation103_spill] sm:$0xff]  ;;  %v5250_v6 = vcombine.high %v11315_v35, %v11322_v13 }
 0x9a9   :  { %v11426_v21 = vpop.permute.xlu1 %7034  ;;  %5119 = vrot.lane.b32.xlu0 %v5105_v27, %s7827_s16  ;;  %v7093_v16 = vcombine.high %v12610_v57, %v12609_v55  ;;  %v7123_v27 = vrot.slane %v7109_v7, %v12264_v14  ;;  %v7139_v29 = vrot.slane %v7125_v39, %v12264_v14  ;;  %v5302_v55 = vcombine.high %v5257_v0, %v11358_v61 }
 0x9aa   :  { %v7091_v1 = vrot.slane %v7077_v28, %v12264_v14  ;;  %v5106_v24 = vcombine.low %v5062_v9, %v5094_v12  ;;  %v7398_v61 = vrot.slane %v7384_v36, %v12265_v26  ;;  %v5296_v52 = vrot.slane %v5282_v15, %v12265_v26 }
 0x9ab   :  { %7217 = vrot.lane.b32.xlu1 %v7206_v19, %s7824_s13  ;;  %v11438_v32 = vpop.permute.xlu0 %4928  ;;  %v7352_v19 = vcombine.high %v11346_v41, %v11349_v49  ;;  %v7107_v58 = vrot.slane %v7093_v16, %v12264_v14  ;;  %v7188_v0 = vcombine.low %v7123_v27, %v7139_v29  ;;  %v7207_v49 = vcombine.high %v7155_v4, %v7187_v11 }
 0x9ac   :  { %v5264_v28 = vrot.slane %v5250_v6, %v12265_v26  ;;  %v6775_v4 = vcombine.high %v11045_v30, %v11054_v3  ;;  %v12612_v3 = vld [vmem:[#allocation50_spill] sm:$0xff] }
 0x9ad   :  { %v11445_v59 = vpop.permute.xlu1 %4936  ;;  %7424 = vrot.lane.b32.xlu0 %v7404_v31, %s7828_s17  ;;  %v7366_v35 = vrot.slane %v7352_v19, %v12265_v26  ;;  %v7156_v13 = vcombine.low %v7091_v1, %v7107_v58  ;;  %v11468_v16 = vrot.slane %v7188_v0, %v12265_v26  ;;  %v12611_v19 = vld [vmem:[#allocation47_spill] sm:$0xff] }
 0x9ae   :  { %v5303_v53 = vcombine.low %v5264_v28, %v5296_v52  ;;  %v5304_v31 = vcombine.high %v5264_v28, %v5296_v52  ;;  %v6743_v6 = vcombine.high %v12611_v19, %v11042_v22  ;;  %v7157_v28 = vcombine.high %v7091_v1, %v7107_v58  ;;  %v12614_v22 = vld [vmem:[#allocation65_spill] sm:$0xff]  ;;  %v12616_v1 = vld [vmem:[#allocation114_spill] sm:$0xff] }
 0x9af   :  { %5322 = vrot.lane.b32.xlu1 %v5302_v55, %s7828_s17  ;;  %v11457_v39 = vpop.permute.xlu0 %7038  ;;  %v7405_v57 = vcombine.low %v7366_v35, %v7398_v61  ;;  %v7164_v11 = vrot.slane %v7156_v13, %v12265_v26  ;;  %v11483_v13 = vrot.slane %v6775_v4, %v12265_v26  ;;  %v12617_v58 = vld [vmem:[#allocation113_spill] sm:$0xff] }
 0x9b0   :  { %v4641_v19 = vcombine.high %v12617_v58, %v12616_v1  ;;  %v12621_v1 = vld [vmem:[#allocation11_spill] sm:$0xff] }
 0x9b1   :  { %v4324_v41 = vpop.permute.xlu1 %4323  ;;  %5123 = vrot.lane.b32.xlu0 %v5106_v24, %s7825_s14  ;;  %v7208_v55 = vcombine.low %v7164_v11, %v11468_v16  ;;  %v7189_v24 = vcombine.high %v7123_v27, %v7139_v29  ;;  %v6807_v58 = vcombine.high %v12621_v1, %v11086_v34  ;;  %v12627_v34 = vld [vmem:[#allocation30_spill] sm:$0xff] }
 0x9b2   :  { %v12629_v1 = vld [vmem:[#allocation110_spill] sm:$0xff] }
 0x9b3   :  { %7221 = vrot.lane.b32.xlu1 %v7207_v49, %s7827_s16  ;;  %v11465_v48 = vpop.permute.xlu0 %4940  ;;  %v7406_v49 = vcombine.high %v7366_v35, %v7398_v61  ;;  %v11497_v35 = vrot.slane %v7189_v24, %v12265_v26 }
 0x9b5   :  { %v6426_v7 = vpop.permute.xlu1 %6425  ;;  %7428 = vrot.lane.b32.xlu0 %v7405_v57, %s7829_s18  ;;  %v12613_v57 = vld [vmem:[#allocation48_spill] sm:$0xff] }
 0x9b6   :  { %v4705_v52 = vcombine.high %v12613_v57, %v12612_v3  ;;  %v12634_v57 = vld [vmem:[#allocation29_spill] sm:$0xff] }
 0x9b7   :  { %5326 = vrot.lane.b32.xlu1 %v5303_v53, %s7829_s18  ;;  %v11475_v36 = vpop.permute.xlu0 %7042  ;;  %v11489_v53 = vrot.slane %v6743_v6, %v12265_v26  ;;  %v11503_v6 = vrot.slane %v7157_v28, %v12265_v26 }
 0x9b9   :  { %v4328_v15 = vpop.permute.xlu1 %4327  ;;  %5330 = vrot.lane.b32.xlu0 %v5304_v31, %s7830_s19  ;;  %v12615_v31 = vld [vmem:[#allocation115_spill] sm:$0xff]  ;;  %v6808_v61 = vcombine.low %v11489_v53, %v11483_v13 }
 0x9ba   :  { %v4673_v27 = vcombine.high %v12615_v31, %v12614_v22  ;;  %v12619_v22 = vld [vmem:[#allocation35_spill] sm:$0xff] }
 0x9bb   :  { %7225 = vrot.lane.b32.xlu1 %v7208_v55, %s7825_s14  ;;  %v6430_v0 = vpop.permute.xlu0 %6429  ;;  %v5107_v55 = vcombine.high %v5062_v9, %v5094_v12  ;;  %v7210_v12 = vcombine.low %v11503_v6, %v11497_v35 }
 0x9bc   :  { %v4687_v9 = vrot.slane %v4673_v27, %v12265_v26  ;;  %v4655_v27 = vrot.slane %v4641_v19, %v12265_v26 }
 0x9bd   :  { %v6438_v30 = vpop.permute.xlu1 %6437  ;;  %7432 = vrot.lane.b32.xlu0 %v7406_v49, %s7830_s19  ;;  %v5087_v49 = vcombine.high %v11399_v50, %v11402_v47  ;;  %v5055_v50 = vcombine.high %v11410_v18, %v11413_v20  ;;  %v12622_v47 = vld [vmem:[#allocation38_spill] sm:$0xff]  ;;  %v12628_v20 = vld [vmem:[#allocation112_spill] sm:$0xff] }
 0x9bf   :  { %4713 = vrot.lane.b32.xlu1 %v4705_v52, %s7826_s15  ;;  %v4332_v29 = vpop.permute.xlu0 %4331  ;;  %v12618_v52 = vld [vmem:[#allocation39_spill] sm:$0xff] }
 0x9c0   :  { %v12620_v31 = vcombine.low %v12618_v52, %v12619_v22 }
 0x9c1   :  { %v4340_v4 = vpop.permute.xlu1 %4339  ;;  %6819 = vrot.lane.b32.xlu0 %v6808_v61, %s7824_s13 }
 0x9c2   :  { %v6452_v24 = vsel %vm632_vm4, %v12620_v31, %v6426_v7  ;;  %v5101_v31 = vrot.slane %v5087_v49, %v12265_v26 }
 0x9c3   :  { %5127 = vrot.lane.b32.xlu1 %v5107_v55, %s7828_s17  ;;  %v6434_v3 = vpop.permute.xlu0 %6433  ;;  %v6453_v61 = vsel %vm306_vm11, %v6452_v24, %v6430_v0  ;;  %v12623_v55 = vld [vmem:[#allocation34_spill] sm:$0xff]  ;;  %v12626_v24 = vld [vmem:[#allocation111_spill] sm:$0xff] }
 0x9c4   :  { %v12624_v52 = vcombine.low %v12622_v47, %v12623_v55  ;;  %v6454_v22 = vsel %vm12625_vm15, %v6453_v61, %v6434_v3  ;;  %v4609_v18 = vcombine.high %v12627_v34, %v12626_v24  ;;  %v4625_v47 = vcombine.high %v12629_v1, %v12628_v20  ;;  %vm12706_vm15 = vmmov %vm12685_vm0 }
 0x9c5   :  { %v6442_v28 = vpop.permute.xlu1 %6441  ;;  %7233 = vrot.lane.b32.xlu0 %v7210_v12, %s7829_s18  ;;  %v4707_v3 = vcombine.high %v4655_v27, %v4687_v9  ;;  %v6455_v12 = vsel %vm637_vm6, %v6454_v22, %v6438_v30  ;;  %v4706_v20 = vcombine.low %v4655_v27, %v4687_v9  ;;  %v6809_v9 = vcombine.high %v11489_v53, %v11483_v13  ;;  %v12635_v27 = vld [vmem:[#allocation46_spill] sm:$0xff]  ;;  %v12641_v13 = vld [vmem:[#allocation73_spill] sm:$0xff]  ;;  %v12642_v53 = vld [vmem:[#allocation116_spill] sm:$0xff] }
 0x9c6   :  { %v4350_v7 = vsel %vm632_vm4, %v12624_v52, %v4324_v41  ;;  %v12632_v52 = vld [vmem:[#allocation21_spill] sm:$0xff]  ;;  %v11548_v30 = vrot.slane %v4609_v18, %v12264_v14 }
 0x9c7   :  { %v4351_v0 = vsel %vm306_vm11, %v4350_v7, %v4328_v15  ;;  %6815 = vrot.lane.b32.xlu1 %v6807_v58, %s7826_s15  ;;  %v4336_v55 = vpop.permute.xlu0 %4335  ;;  %v7209_v15 = vcombine.high %v7164_v11, %v11468_v16  ;;  %v12631_v58 = vld [vmem:[#allocation28_spill] sm:$0xff]  ;;  %v11551_v16 = vrot.slane %v4625_v47, %v12264_v14  ;;  %v6456_v11 = vsel %vm639_vm7, %v6455_v12, %v6442_v28 }
 0x9c8   :  { %v4352_v41 = vsel %vm12630_vm14, %v4351_v0, %v4332_v29  ;;  %v4577_v49 = vcombine.high %v12632_v52, %v12631_v58  ;;  %v12633_v7 = vld [vmem:[#allocation24_spill] sm:$0xff]  ;;  %v5069_v29 = vrot.slane %v5055_v50, %v12265_v26  ;;  %vm12707_vm14 = vmmov %vm12685_vm0 }
 0x9c9   :  { %v4353_v19 = vsel %vm637_vm6, %v4352_v41, %v4336_v55  ;;  %v4344_v61 = vpop.permute.xlu1 %4343  ;;  %v4593_v34 = vcombine.high %v12634_v57, %v12633_v7  ;;  %4721 = vrot.lane.b32.xlu0 %v4707_v3, %s7827_s16  ;;  %v4688_v28 = vcombine.low %v11548_v30, %v11551_v16  ;;  %v12636_v55 = vld [vmem:[#allocation54_spill] sm:$0xff]  ;;  %v12637_v12 = vld [vmem:[#allocation44_spill] sm:$0xff]  ;;  %v12639_v7 = vld [vmem:[#allocation69_spill] sm:$0xff] }
 0x9ca   :  { %v4354_v24 = vsel %vm639_vm7, %v4353_v19, %v4340_v4  ;;  %v5109_v57 = vcombine.high %v5069_v29, %v5101_v31  ;;  %v11556_v50 = vrot.slane %v4577_v49, %v12264_v14  ;;  %v6711_v3 = vcombine.high %v12636_v55, %v12635_v27  ;;  %v12638_v19 = vld [vmem:[#allocation53_spill] sm:$0xff] }
 0x9cb   :  { %v4355_v1 = vsel %vm641_vm8, %v4354_v24, %v4344_v61  ;;  %7229 = vrot.lane.b32.xlu1 %v7209_v15, %s7828_s17  ;;  %v6446_v22 = vpop.permute.xlu0 %6445  ;;  %v11559_v41 = vrot.slane %v4593_v34, %v12264_v14  ;;  %v6727_v61 = vcombine.high %v12638_v19, %v12637_v12  ;;  %v5108_v58 = vcombine.low %v5069_v29, %v5101_v31  ;;  %v12640_v34 = vld [vmem:[#allocation72_spill] sm:$0xff] }
 0x9cc   :  { %v6457_v4 = vsel %vm641_vm8, %v6456_v11, %v6446_v22  ;;  %v6679_v24 = vcombine.high %v12640_v34, %v12639_v7  ;;  %v6580_v11 = vcombine.high %v11231_v45, %v11235_v10  ;;  %v7211_v29 = vcombine.high %v11503_v6, %v11497_v35  ;;  %v12643_v35 = vld [vmem:[#allocation60_spill] sm:$0xff]  ;;  %v12644_v6 = vld [vmem:[#allocation57_spill] sm:$0xff]  ;;  %v12650_v34 = vld [vmem:[#allocation43_spill] sm:$0xff] }
 0x9cd   :  { %v4348_v0 = vpop.permute.xlu1 %4347  ;;  %5135 = vrot.lane.b32.xlu0 %v5109_v57, %s7830_s19  ;;  %v4656_v52 = vcombine.low %v11556_v50, %v11559_v41  ;;  %v11590_v22 = vrot.slane %v4688_v28, %v12265_v26  ;;  %v11593_v57 = vrot.slane %v6711_v3, %v12264_v14  ;;  %v4510_v45 = vcombine.high %v11189_v54, %v11179_v37  ;;  %v12647_v3 = vld [vmem:[#allocation62_spill] sm:$0xff]  ;;  %v12648_v7 = vld [vmem:[#allocation52_spill] sm:$0xff] }
 0x9ce   :  { %v11562_v18 = vsel %vm643_vm9, %v4355_v1, %v4348_v0  ;;  %v6695_v1 = vcombine.high %v12642_v53, %v12641_v13  ;;  %v4478_v0 = vcombine.high %v11144_v62, %v11149_v23  ;;  %v6548_v10 = vcombine.high %v11221_v60, %v11224_v25  ;;  %v12646_v25 = vld [vmem:[#allocation59_spill] sm:$0xff]  ;;  %v12652_v53 = vld [vmem:[#allocation77_spill] sm:$0xff] }
 0x9cf   :  { %4717 = vrot.lane.b32.xlu1 %v4706_v20, %s7824_s13  ;;  %v6219_v47 = vpop.permute.xlu0 %6218  ;;  %v12645_v28 = vcombine.low %v12643_v35, %v12644_v6  ;;  %v11610_v27 = vrot.slane %v4656_v52, %v12265_v26  ;;  %v11613_v55 = vrot.slane %v6679_v24, %v12264_v14  ;;  %v4446_v23 = vcombine.high %v11138_v40, %v11141_v33  ;;  %v12651_v24 = vld [vmem:[#allocation51_spill] sm:$0xff] }
 0x9d0   :  { %v11616_v62 = vrot.slane %v6695_v1, %v12264_v14  ;;  %v4414_v60 = vcombine.high %v11099_v38, %v11121_v63  ;;  %v4430_v12 = vcombine.high %v12647_v3, %v12646_v25  ;;  %v6612_v40 = vcombine.high %v11258_v44, %v11252_v8  ;;  %v12649_v63 = vld [vmem:[#allocation45_spill] sm:$0xff]  ;;  %v12653_v1 = vld [vmem:[#allocation74_spill] sm:$0xff] }
 0x9d1   :  { %v6450_v15 = vpop.permute.xlu1 %6449  ;;  %6823 = vrot.lane.b32.xlu0 %v6809_v9, %s7827_s16  ;;  %v4492_v33 = vrot.slane %v4478_v0, %v12265_v26  ;;  %v4382_v38 = vcombine.high %v12649_v63, %v12648_v7  ;;  %v4398_v13 = vcombine.high %v12651_v24, %v12650_v34  ;;  %v4460_v35 = vrot.slane %v4446_v23, %v12265_v26 }
 0x9d2   :  { %v11577_v49 = vsel %vm643_vm9, %v6457_v4, %v6450_v15  ;;  %v11596_v4 = vrot.slane %v6727_v61, %v12264_v14  ;;  %v4708_v61 = vcombine.low %v11610_v27, %v11590_v22  ;;  %v6594_v15 = vrot.slane %v6580_v11, %v12265_v26 }
 0x9d3   :  { %5131 = vrot.lane.b32.xlu1 %v5108_v58, %s7829_s18  ;;  %v4121_v31 = vpop.permute.xlu0 %4120  ;;  %v11649_v6 = vrot.slane %v4414_v60, %v12264_v14  ;;  %v11662_v23 = vrot.slane %v4398_v13, %v12264_v14  ;;  %v4512_v63 = vcombine.high %v4460_v35, %v4492_v33  ;;  %v6516_v34 = vcombine.high %v11193_v46, %v11211_v42  ;;  %v12664_v46 = vld [vmem:[#allocation61_spill] sm:$0xff] }
 0x9d4   :  { %v6790_v58 = vcombine.low %v11593_v57, %v11596_v4 }
 0x9d5   :  { %v4113_v20 = vpop.permute.xlu1 %4112  ;;  %7237 = vrot.lane.b32.xlu0 %v7211_v29, %s7830_s19  ;;  %v12654_v29 = vcombine.low %v12652_v53, %v12653_v1  ;;  %v12658_v1 = vld [vmem:[#allocation78_spill] sm:$0xff] }
 0x9d6   :  { %v4139_v9 = vsel %vm632_vm4, %v12645_v28, %v4113_v20  ;;  %v6562_v20 = vrot.slane %v6548_v10, %v12265_v26  ;;  %v11652_v28 = vrot.slane %v4430_v12, %v12264_v14  ;;  %v6798_v7 = vrot.slane %v6790_v58, %v12265_v26 }
 0x9d7   :  { %4518 = vrot.lane.b32.xlu1 %v4510_v45, %s7826_s15  ;;  %v6223_v19 = vpop.permute.xlu0 %6222  ;;  %v6758_v45 = vcombine.low %v11613_v55, %v11616_v62 }
 0x9d8   :  { %v6613_v3 = vcombine.low %v6562_v20, %v6594_v15 }
 0x9d9   :  { %v6215_v52 = vpop.permute.xlu1 %6214  ;;  %4725 = vrot.lane.b32.xlu0 %v4708_v61, %s7825_s14 }
 0x9da   :  { %v6241_v11 = vsel %vm632_vm4, %v12654_v29, %v6215_v52  ;;  %v4511_v52 = vcombine.low %v4460_v35, %v4492_v33  ;;  %v12659_v29 = vld [vmem:[#allocation75_spill] sm:$0xff]  ;;  %v12661_v33 = vld [vmem:[#allocation58_spill] sm:$0xff] }
 0x9db   :  { %v6242_v0 = vsel %vm306_vm11, %v6241_v11, %v6219_v47  ;;  %6620 = vrot.lane.b32.xlu1 %v6612_v40, %s7826_s15  ;;  %v4125_v25 = vpop.permute.xlu0 %4124  ;;  %v11659_v47 = vrot.slane %v4382_v38, %v12264_v14  ;;  %v4493_v40 = vcombine.low %v11649_v6, %v11652_v28  ;;  %v12660_v11 = vcombine.low %v12658_v1, %v12659_v29 }
 0x9dc   :  { %v11655_v61 = vsel %vm12655_vm13, %v6242_v0, %v6223_v19  ;;  %v6766_v19 = vrot.slane %v6758_v45, %v12265_v26  ;;  %v12662_v0 = vld [vmem:[#allocation56_spill] sm:$0xff]  ;;  %vm12708_vm13 = vmmov %vm12685_vm0 }
 0x9dd   :  { %v4117_v10 = vpop.permute.xlu1 %4116  ;;  %6624 = vrot.lane.b32.xlu0 %v6613_v3, %s7824_s13  ;;  %v6484_v35 = vcombine.high %v12662_v0, %v12661_v33  ;;  %v6791_v3 = vcombine.high %v11593_v57, %v11596_v4  ;;  %v12666_v57 = vld [vmem:[#allocation88_spill] sm:$0xff] }
 0x9de   :  { %v4140_v60 = vsel %vm306_vm11, %v4139_v9, %v4117_v10  ;;  %v12657_v9 = vld [vmem:[#allocation49_spill] sm:$0xff]  ;;  %v6810_v53 = vcombine.low %v6766_v19, %v6798_v7  ;;  %v6811_v29 = vcombine.high %v6766_v19, %v6798_v7 }
 0x9df   :  { %v4141_v12 = vsel %vm12656_vm1, %v4140_v60, %v4121_v31  ;;  %4522 = vrot.lane.b32.xlu1 %v4511_v52, %s7824_s13  ;;  %v6024_v58 = vpop.permute.xlu0 %6023  ;;  %v6532_v24 = vcombine.high %v12657_v9, %v11216_v5  ;;  %v4461_v31 = vcombine.low %v11659_v47, %v11662_v23  ;;  %v4689_v5 = vcombine.high %v11548_v30, %v11551_v16  ;;  %v12665_v16 = vld [vmem:[#allocation90_spill] sm:$0xff]  ;;  %vm12717_vm1 = vmmov %vm12685_vm0 }
 0x9e0   :  { %v4142_v38 = vsel %vm637_vm6, %v4141_v12, %v4125_v25  ;;  %v12663_v25 = vld [vmem:[#allocation55_spill] sm:$0xff]  ;;  %v6614_v52 = vcombine.high %v6562_v20, %v6594_v15  ;;  %v4501_v60 = vrot.slane %v4493_v40, %v12265_v26  ;;  %v6530_v12 = vrot.slane %v6516_v34, %v12264_v14 }
 0x9e1   :  { %v3918_v13 = vpop.permute.xlu1 %3917  ;;  %4526 = vrot.lane.b32.xlu0 %v4512_v63, %s7827_s16  ;;  %v6500_v42 = vcombine.high %v12664_v46, %v12663_v25  ;;  %v6546_v63 = vrot.slane %v6532_v24, %v12264_v14  ;;  %v6759_v30 = vcombine.high %v11613_v55, %v11616_v62  ;;  %v12667_v4 = vcombine.low %v12665_v16, %v12666_v57 }
 0x9e2   :  { %v3944_v45 = vsel %vm632_vm4, %v12660_v11, %v3918_v13  ;;  %v4469_v20 = vrot.slane %v4461_v31, %v12265_v26  ;;  %v4657_v40 = vcombine.high %v11556_v50, %v11559_v41  ;;  %v6805_v62 = vrot.slane %v6791_v3, %v12265_v26 }
 0x9e3   :  { %6827 = vrot.lane.b32.xlu1 %v6810_v53, %s7825_s14  ;;  %v4129_v10 = vpop.permute.xlu0 %4128  ;;  %v4709_v53 = vcombine.high %v11610_v27, %v11590_v22  ;;  %v6514_v34 = vrot.slane %v6500_v42, %v12264_v14  ;;  %v6595_v24 = vcombine.low %v6530_v12, %v6546_v63  ;;  %v4703_v31 = vrot.slane %v4689_v5, %v12265_v26 }
 0x9e4   :  { %v11696_v9 = vsel %vm639_vm7, %v4142_v38, %v4129_v10  ;;  %v6498_v38 = vrot.slane %v6484_v35, %v12264_v14  ;;  %v4513_v55 = vcombine.low %v4469_v20, %v4501_v60  ;;  %v6773_v50 = vrot.slane %v6759_v30, %v12265_v26 }
 0x9e5   :  { %v6020_v13 = vpop.permute.xlu1 %6019  ;;  %6628 = vrot.lane.b32.xlu0 %v6614_v52, %s7827_s16  ;;  %v4671_v41 = vrot.slane %v4657_v40, %v12265_v26  ;;  %v6603_v25 = vrot.slane %v6595_v24, %v12265_v26  ;;  %v6596_v46 = vcombine.high %v6530_v12, %v6546_v63  ;;  %v4494_v30 = vcombine.high %v11649_v6, %v11652_v28 }
 0x9e6   :  { %v6046_v15 = vsel %vm632_vm4, %v12667_v4, %v6020_v13  ;;  %v6563_v14 = vcombine.low %v6498_v38, %v6514_v34  ;;  %v6812_v33 = vcombine.low %v6773_v50, %v6805_v62  ;;  %v6564_v13 = vcombine.high %v6498_v38, %v6514_v34 }
 0x9e7   :  { %4729 = vrot.lane.b32.xlu1 %v4709_v53, %s7828_s17  ;;  %v6047_v22 = vsel %vm306_vm11, %v6046_v15, %v6024_v58  ;;  %v6231_v27 = vpop.permute.xlu0 %6230  ;;  %v4710_v35 = vcombine.low %v4671_v41, %v4703_v31  ;;  %v4711_v5 = vcombine.high %v4671_v41, %v4703_v31  ;;  %v6813_v12 = vcombine.high %v6773_v50, %v6805_v62  ;;  %v12671_v41 = vld [vmem:[#allocation76_spill] sm:$0xff] }
 0x9e8   :  { %v6610_v63 = vrot.slane %v6596_v46, %v12265_v26  ;;  %v4514_v4 = vcombine.high %v4469_v20, %v4501_v60  ;;  %v4462_v15 = vcombine.high %v11659_v47, %v11662_v23  ;;  %v6578_v38 = vrot.slane %v6564_v13, %v12265_v26  ;;  %v12676_v46 = vld [vmem:[#allocation91_spill] sm:$0xff]  ;;  %v12679_v13 = vld [vmem:[#allocation40_spill] sm:$0xff] }
 0x9e9   :  { %v3922_v1 = vpop.permute.xlu1 %3921  ;;  %4530 = vrot.lane.b32.xlu0 %v4513_v55, %s7825_s14  ;;  %v4508_v6 = vrot.slane %v4494_v30, %v12265_v26  ;;  %v5341_v30 = vld [vmem:[%s11989_s6] sm:$0xff] }
 0x9ea   :  { %v3945_v11 = vsel %vm306_vm11, %v3944_v45, %v3922_v1  ;;  %v6571_v45 = vrot.slane %v6563_v14, %v12265_v26  ;;  %v4476_v47 = vrot.slane %v4462_v15, %v12265_v26  ;;  %v6618_v31 = vcombine.high %v6578_v38, %v6610_v63  ;;  %v12670_v14 = vld [vmem:[#allocation79_spill] sm:$0xff] }
 0x9eb   :  { %6831 = vrot.lane.b32.xlu1 %v6811_v29, %s7828_s17  ;;  %v3930_v58 = vpop.permute.xlu0 %3929 }
 0x9ec   :  { %v6615_v52 = vcombine.low %v6571_v45, %v6603_v25  ;;  %v6616_v55 = vcombine.high %v6571_v45, %v6603_v25  ;;  %v4515_v24 = vcombine.low %v4476_v47, %v4508_v6 }
 0x9ed   :  { %v6227_v0 = vpop.permute.xlu1 %6226  ;;  %6835 = vrot.lane.b32.xlu0 %v6812_v33, %s7829_s18 }
 0x9ee   :  { %v6244_v7 = vsel %vm637_vm6, %v11655_v61, %v6227_v0 }
 0x9ef   :  { %4733 = vrot.lane.b32.xlu1 %v4710_v35, %s7829_s18  ;;  %v6245_v19 = vsel %vm639_vm7, %v6244_v7, %v6231_v27  ;;  %v6235_v42 = vpop.permute.xlu0 %6234  ;;  %v6617_v27 = vcombine.low %v6578_v38, %v6610_v63  ;;  %v12673_v7 = vld [vmem:[#allocation18_spill] sm:$0xff] }
 0x9f0   :  { %v6246_v3 = vsel %vm641_vm8, %v6245_v19, %v6235_v42  ;;  %v12674_v19 = vld [vmem:[#allocation19_spill] sm:$0xff]  ;;  %v12677_v42 = vld [vmem:[#allocation89_spill] sm:$0xff] }
 0x9f1   :  { %v3926_v10 = vpop.permute.xlu1 %3925  ;;  %4737 = vrot.lane.b32.xlu0 %v4711_v5, %s7830_s19  ;;  %v12675_v45 = vcombine.high %v12673_v7, %v12674_v19  ;;  %v12678_v5 = vcombine.high %v12676_v46, %v12677_v42 }
 0x9f2   :  { %v3946_v53 = vsel %vm12668_vm5, %v3945_v11, %v3926_v10  ;;  %vm12718_vm5 = vmmov %vm12685_vm0 }
 0x9f3   :  { %6632 = vrot.lane.b32.xlu1 %v6615_v52, %s7825_s14  ;;  %v3947_v61 = vsel %vm637_vm6, %v3946_v53, %v3930_v58  ;;  %v4137_v16 = vpop.permute.xlu0 %4136  ;;  %v12672_v58 = vcombine.high %v12670_v14, %v12671_v41  ;;  %v12680_v53 = vld [vmem:[#allocation41_spill] sm:$0xff] }
 0x9f5   :  { %v6028_v57 = vpop.permute.xlu1 %6027  ;;  %6839 = vrot.lane.b32.xlu0 %v6813_v12, %s7830_s19 }
 0x9f6   :  { %v6048_v40 = vsel %vm12669_vm10, %v6047_v22, %v6028_v57  ;;  %v4516_v22 = vcombine.high %v4476_v47, %v4508_v6  ;;  %vm12725_vm10 = vmmov %vm12685_vm0 }
 0x9f7   :  { %4534 = vrot.lane.b32.xlu1 %v4514_v4, %s7828_s17  ;;  %v6036_v34 = vpop.permute.xlu0 %6035 }
 0x9f9   :  { %v4133_v28 = vpop.permute.xlu1 %4132  ;;  %6640 = vrot.lane.b32.xlu0 %v6617_v27, %s7829_s18 }
 0x9fa   :  { %v4144_v60 = vsel %vm641_vm8, %v11696_v9, %v4133_v28 }
 0x9fb   :  { %6636 = vrot.lane.b32.xlu1 %v6616_v55, %s7828_s17  ;;  %v11749_v23 = vsel %vm643_vm9, %v4144_v60, %v4137_v16  ;;  %v3938_v20 = vpop.permute.xlu0 %3937  ;;  %v12683_v60 = vld [vmem:[#allocation100_spill] sm:$0xff] }
 0x9fc   :  { %v12684_v47 = vcombine.low %v12590_v17, %v12683_v60 }
 0x9fd   :  { %v6032_v62 = vpop.permute.xlu1 %6031  ;;  %4542 = vrot.lane.b32.xlu0 %v4516_v22, %s7830_s19 }
 0x9fe   :  { %v6049_v1 = vsel %vm637_vm6, %v6048_v40, %v6032_v62 }
 0x9ff   :  { %4538 = vrot.lane.b32.xlu1 %v4515_v24, %s7829_s18  ;;  %v6050_v9 = vsel %vm639_vm7, %v6049_v1, %v6036_v34  ;;  %v6040_v29 = vpop.permute.xlu0 %6039 }
 0xa00   :  { %v11756_v26 = vsel %vm641_vm8, %v6050_v9, %v6040_v29 }
 0xa01   :  { %v3934_v11 = vpop.permute.xlu1 %3933  ;;  %6644 = vrot.lane.b32.xlu0 %v6618_v31, %s7830_s19  ;;  %v12686_v31 = vld [vmem:[#allocation26_spill] sm:$0xff] }
 0xa02   :  { %v3948_v50 = vsel %vm639_vm7, %v3947_v61, %v3934_v11  ;;  %v12681_v61 = vcombine.low %v12679_v13, %v12680_v53  ;;  %v12687_v11 = vld [vmem:[#allocation27_spill] sm:$0xff] }
 0xa03   :  { %3941 = vrot.lane.b32.xlu1 %v12672_v58, %s7830_s19  ;;  %v11765_v33 = vsel %vm641_vm8, %v3948_v50, %v3938_v20  ;;  %v7409_v0 = vpop.permute.xlu0 %7408  ;;  %v12688_v50 = vcombine.low %v12686_v31, %v12687_v11 }
 0xa05   :  { %v6239_v35 = vpop.permute.xlu1 %6238  ;;  %5832 = vrot.lane.b32.xlu0 %v12675_v45, %s7828_s17  ;;  %v7435_v14 = vsel %vm632_vm4, %v12688_v50, %v7409_v0  ;;  %v12701_v50 = vld [vmem:[#allocation31_spill] sm:$0xff] }
 0xa06   :  { %v11768_v25 = vsel %vm643_vm9, %v6246_v3, %v6239_v35  ;;  %v12682_v3 = vcombine.high %v12679_v13, %v12680_v53 }
 0xa07   :  { %6043 = vrot.lane.b32.xlu1 %v12678_v5, %s7830_s19  ;;  %v7413_v10 = vpop.permute.xlu0 %7412  ;;  %v12690_v5 = vmov 0.0  }
 0xa08   :  { %v7436_v17 = vsel %vm306_vm11, %v7435_v14, %v7413_v10 }
 0xa09   :  { %v5307_v52 = vpop.permute.xlu1 %5306  ;;  %5836 = vrot.lane.b32.xlu0 %v12681_v61, %s7829_s18 }
 0xa0a   :  { %v5333_v20 = vsel %vm632_vm4, %v12684_v47, %v5307_v52  ;;  %v12694_v47 = vld [vmem:[#allocation37_spill] sm:$0xff] }
 0xa0b   :  { %5840 = vrot.lane.b32.xlu1 %v12682_v3, %s7830_s19  ;;  %v5315_v16 = vpop.permute.xlu0 %5314 }
 0xa0d   :  { %v5311_v12 = vpop.permute.xlu1 %5310  ;;  %5344 = vperm.xlu0 %7810, %v5341_v30  }
 0xa0e   :  { %v5334_v62 = vsel %vm306_vm11, %v5333_v20, %v5311_v12  ;;  %v12695_v20 = vld [vmem:[#allocation33_spill] sm:$0xff] }
 0xa0f   :  { %v7417_v63 = vpop.permute.xlu0 %7416  ;;  %v5335_v1 = vsel %vm12685_vm0, %v5334_v62, %v5315_v16  ;;  %v12696_v62 = vcombine.low %v12694_v47, %v12695_v20 }
 0xa10   :  { %v7437_v7 = vsel %vm12689_vm3, %v7436_v17, %v7417_v63  ;;  %v12691_v63 = vld [vmem:[#allocation36_spill] sm:$0xff]  ;;  %v12704_v17 = vld [vmem:[#allocation81_spill] sm:$0xff]  ;;  %vm12728_vm3 = vmmov %vm12685_vm0 }
 0xa11   :  { %v5112_v57 = vpop.permute.xlu1 %5111 }
 0xa13   :  { %v5319_v4 = vpop.permute.xlu0 %5318 }
 0xa14   :  { %v5336_v29 = vsel %vm637_vm6, %v5335_v1, %v5319_v4  ;;  %v12692_v4 = vld [vmem:[#allocation32_spill] sm:$0xff] }
 0xa15   :  { %v7214_v15 = vpop.permute.xlu1 %7213 }
 0xa17   :  { %v7421_v40 = vpop.permute.xlu0 %7420 }
 0xa18   :  { %v7438_v46 = vsel %vm637_vm6, %v7437_v7, %v7421_v40  ;;  %v12693_v40 = vcombine.low %v12691_v63, %v12692_v4  ;;  %v12705_v7 = vld [vmem:[#allocation95_spill] sm:$0xff]  ;;  %v12710_v63 = vld [vmem:[#allocation94_spill] sm:$0xff] }
 0xa19   :  { %v5116_v38 = vpop.permute.xlu1 %5115 }
 0xa1b   :  { %v5120_v34 = vpop.permute.xlu0 %5119 }
 0xa1d   :  { %v7218_v27 = vpop.permute.xlu1 %7217 }
 0xa1f   :  { %v7425_v6 = vpop.permute.xlu0 %7424 }
 0xa20   :  { %v7439_v42 = vsel %vm639_vm7, %v7438_v46, %v7425_v6  ;;  %v4943_v6 = vsel %vm632_vm4, %v12693_v40, %v11341_v51  ;;  %v12702_v51 = vld [vmem:[#allocation23_spill] sm:$0xff] }
 0xa21   :  { %v5323_v28 = vpop.permute.xlu1 %5322  ;;  %v12703_v14 = vcombine.low %v12701_v50, %v12702_v51 }
 0xa22   :  { %v5337_v41 = vsel %vm639_vm7, %v5336_v29, %v5323_v28  ;;  %v4944_v28 = vsel %vm306_vm11, %v4943_v6, %v11362_v2  ;;  %v12699_v29 = vld [vmem:[#allocation106_spill] sm:$0xff] }
 0xa23   :  { %v5124_v55 = vpop.permute.xlu0 %5123  ;;  %v4945_v1 = vsel %vm12697_vm12, %v4944_v28, %v11404_v43  ;;  %v7240_v2 = vsel %vm632_vm4, %v12703_v14, %v7214_v15  ;;  %v12714_v14 = vld [vmem:[#allocation11_spill] sm:$0xff] }
 0xa24   :  { %v7241_v43 = vsel %vm306_vm11, %v7240_v2, %v7218_v27  ;;  %v12715_v2 = vld [vmem:[#allocation42_spill] sm:$0xff] }
 0xa25   :  { %v7222_v22 = vpop.permute.xlu1 %7221 }
 0xa26   :  { %v7242_v46 = vsel %vm12708_vm13, %v7241_v43, %v7222_v22 }
 0xa27   :  { %v7429_v24 = vpop.permute.xlu0 %7428 }
 0xa28   :  { %v7440_v0 = vsel %vm641_vm8, %v7439_v42, %v7429_v24  ;;  %v7045_v24 = vsel %vm632_vm4, %v12696_v62, %v11355_v56  ;;  %v4946_v56 = vsel %vm637_vm6, %v4945_v1, %v11438_v32 }
 0xa29   :  { %v5327_v9 = vpop.permute.xlu1 %5326 }
 0xa2a   :  { %v5338_v58 = vsel %vm641_vm8, %v5337_v41, %v5327_v9  ;;  %v12698_v9 = vld [vmem:[#allocation107_spill] sm:$0xff] }
 0xa2b   :  { %v5331_v35 = vpop.permute.xlu0 %5330  ;;  %v12700_v31 = vcombine.low %v12698_v9, %v12699_v29  ;;  %v12711_v9 = vld [vmem:[#allocation48_spill] sm:$0xff]  ;;  %v12712_v29 = vld [vmem:[#allocation50_spill] sm:$0xff] }
 0xa2c   :  { %v5339_v19 = vsel %vm643_vm9, %v5338_v58, %v5331_v35  ;;  %v7046_v58 = vsel %vm306_vm11, %v7045_v24, %v12704_v17  ;;  %v12716_v17 = vcombine.low %v12714_v14, %v12715_v2  ;;  %v12734_v2 = vld [vmem:[#allocation67_spill] sm:$0xff] }
 0xa2d   :  { %v7226_v45 = vpop.permute.xlu1 %7225  ;;  %7746 = vmatpush3.msra.mxu0 %v5339_v19  ;;  %v5138_v11 = vsel %vm632_vm4, %v12700_v31, %v5112_v57  ;;  %v7047_v19 = vsel %vm12706_vm15, %v7046_v58, %v12705_v7  ;;  %v12713_v31 = vcombine.low %v12711_v9, %v12712_v29 }
 0xa2e   :  { %7747 = vmatprep.subr.mxu0 %v12690_v5  ;;  %v5139_v35 = vsel %vm306_vm11, %v5138_v11, %v5116_v38  ;;  %v7243_v42 = vsel %vm637_vm6, %v7242_v46, %v7226_v45  ;;  %v7048_v4 = vsel %vm637_vm6, %v7047_v19, %v12710_v63 }
 0xa2f   :  { %v7433_v52 = vpop.permute.xlu0 %7432  ;;  %v5140_v57 = vsel %vm12707_vm14, %v5139_v35, %v5120_v34 }
 0xa30   :  { %v7441_v10 = vsel %vm643_vm9, %v7440_v0, %v7433_v52  ;;  %v5141_v15 = vsel %vm637_vm6, %v5140_v57, %v5124_v55  ;;  %v12709_v52 = vld [vmem:[#allocation92_spill] sm:$0xff] }
 0xa31   :  { %v4714_v13 = vpop.permute.xlu1 %4713  ;;  %7767 = vmatpush3.msra.mxu1 %v7441_v10  ;;  %v4947_v10 = vsel %vm639_vm7, %v4946_v56, %v12709_v52 }
 0xa32   :  { %7768 = vmatprep.subr.mxu1 %v12690_v5  ;;  %v4948_v55 = vsel %vm641_vm8, %v4947_v10, %v11445_v59 }
 0xa33   :  { %v11811_v53 = vpop.permute.xlu0 %6819 }
 0xa35   :  { %v5128_v61 = vpop.permute.xlu1 %5127 }
 0xa36   :  { %v5142_v32 = vsel %vm639_vm7, %v5141_v15, %v5128_v61  ;;  %v7049_v61 = vsel %vm639_vm7, %v7048_v4, %v11426_v21 }
 0xa37   :  { %v7234_v3 = vpop.permute.xlu0 %7233 }
 0xa39   :  { %v6816_v30 = vpop.permute.xlu1 %6815 }
 0xa3a   :  { %v6842_v58 = vsel %vm632_vm4, %v12716_v17, %v6816_v30 }
 0xa3b   :  { %v4722_v16 = vpop.permute.xlu0 %4721  ;;  %v6843_v19 = vsel %vm306_vm11, %v6842_v58, %v11811_v53  ;;  %v12735_v58 = vld [vmem:[#allocation64_spill] sm:$0xff] }
 0xa3d   :  { %v7230_v12 = vpop.permute.xlu1 %7229 }
 0xa3e   :  { %v7244_v38 = vsel %vm639_vm7, %v7243_v42, %v7230_v12  ;;  %v4949_v12 = vsel %vm643_vm9, %v4948_v55, %v11465_v48  ;;  %v12721_v55 = vld [vmem:[#allocation63_spill] sm:$0xff] }
 0xa3f   :  { %v5136_v60 = vpop.permute.xlu0 %5135  ;;  %v7245_v40 = vsel %vm641_vm8, %v7244_v38, %v7234_v3 }
 0xa41   :  { %v4718_v41 = vpop.permute.xlu1 %4717 }
 0xa43   :  { %v6824_v0 = vpop.permute.xlu0 %6823 }
 0xa45   :  { %v5132_v27 = vpop.permute.xlu1 %5131 }
 0xa46   :  { %v5143_v34 = vsel %vm641_vm8, %v5142_v32, %v5132_v27  ;;  %v12719_v32 = vcombine.low %v11189_v54, %v11179_v37  ;;  %v12720_v27 = vcombine.low %v11258_v44, %v11252_v8 }
 0xa47   :  { %v5144_v22 = vsel %vm643_vm9, %v5143_v34, %v5136_v60  ;;  %v7238_v45 = vpop.permute.xlu0 %7237  ;;  %v7050_v60 = vsel %vm641_vm8, %v7049_v61, %v11457_v39 }
 0xa48   :  { %7748 = vmatpush3.msra.mxu0 %v5144_v22  ;;  %v7246_v6 = vsel %vm643_vm9, %v7245_v40, %v7238_v45  ;;  %v7051_v59 = vsel %vm643_vm9, %v7050_v60, %v11475_v36  ;;  %v4740_v36 = vsel %vm632_vm4, %v12713_v31, %v4714_v13  ;;  %v12722_v45 = vld [vmem:[#allocation13_spill] sm:$0xff]  ;;  %v12723_v40 = vld [vmem:[#allocation14_spill] sm:$0xff] }
 0xa49   :  { %7749 = vmatprep.subr.mxu0 %v12690_v5  ;;  %v4519_v28 = vpop.permute.xlu1 %4518  ;;  %7769 = vmatpush3.msra.mxu1 %v7246_v6  ;;  %v4741_v50 = vsel %vm306_vm11, %v4740_v36, %v4718_v41  ;;  %v6844_v41 = vsel %vm12718_vm5, %v6843_v19, %v6824_v0  ;;  %v12724_v61 = vcombine.low %v12722_v45, %v12723_v40 }
 0xa4a   :  { %7750 = vmatpush3.msra.mxu0 %v4949_v12  ;;  %7770 = vmatprep.subr.mxu1 %v12690_v5  ;;  %v4742_v56 = vsel %vm12717_vm1, %v4741_v50, %v4722_v16  ;;  %v4545_v38 = vsel %vm632_vm4, %v12719_v32, %v4519_v28 }
 0xa4b   :  { %7751 = vmatprep.subr.mxu0 %v12690_v5  ;;  %v4726_v21 = vpop.permute.xlu0 %4725  ;;  %7771 = vmatpush3.msra.mxu1 %v7051_v59  ;;  %v3741_v12 = vsel %vm632_vm4, %v12724_v61, %v12721_v55 }
 0xa4c   :  { %7772 = vmatprep.subr.mxu1 %v12690_v5  ;;  %v4743_v43 = vsel %vm637_vm6, %v4742_v56, %v4726_v21  ;;  %v12726_v21 = vld [vmem:[#allocation70_spill] sm:$0xff] }
 0xa4d   :  { %v6621_v48 = vpop.permute.xlu1 %6620 }
 0xa4e   :  { %v6647_v63 = vsel %vm632_vm4, %v12720_v27, %v6621_v48  ;;  %v3742_v48 = vsel %vm306_vm11, %v3741_v12, %v12726_v21  ;;  %v7526_v21 = vld [vmem:[%s11991_s7] sm:$0xff] }
 0xa4f   :  { %v6625_v3 = vpop.permute.xlu0 %6624 }
 0xa50   :  { %v6648_v34 = vsel %vm306_vm11, %v6647_v63, %v6625_v3 }
 0xa51   :  { %v4523_v47 = vpop.permute.xlu1 %4522 }
 0xa52   :  { %v4546_v22 = vsel %vm306_vm11, %v4545_v38, %v4523_v47  ;;  %v12727_v47 = vld [vmem:[#allocation12_spill] sm:$0xff] }
 0xa53   :  { %v4527_v20 = vpop.permute.xlu0 %4526 }
 0xa54   :  { %v4547_v37 = vsel %vm12725_vm10, %v4546_v22, %v4527_v20  ;;  %v3743_v20 = vsel %vm12728_vm3, %v3742_v48, %v12727_v47  ;;  %v7530_v47 = vld [vmem:[%s11992_s8] sm:$0xff] }
 0xa55   :  { %v6828_v62 = vpop.permute.xlu1 %6827  ;;  %v3744_v17 = vsel %vm637_vm6, %v3743_v20, %v12734_v2 }
 0xa56   :  { %v6845_v30 = vsel %vm637_vm6, %v6844_v41, %v6828_v62  ;;  %v3745_v56 = vsel %vm639_vm7, %v3744_v17, %v12735_v58 }
 0xa57   :  { %v6629_v24 = vpop.permute.xlu0 %6628 }
 0xa58   :  { %v6649_v54 = vsel %vm12685_vm0, %v6648_v34, %v6629_v24  ;;  %v12729_v24 = vld [vmem:[#allocation82_spill] sm:$0xff] }
 0xa59   :  { %v4730_v39 = vpop.permute.xlu1 %4729 }
 0xa5a   :  { %v4744_v7 = vsel %vm639_vm7, %v4743_v43, %v4730_v39  ;;  %v12730_v39 = vld [vmem:[#allocation16_spill] sm:$0xff] }
 0xa5b   :  { %v4531_v1 = vpop.permute.xlu0 %4530 }
 0xa5c   :  { %v4548_v6 = vsel %vm637_vm6, %v4547_v37, %v4531_v1  ;;  %v12731_v1 = vld [vmem:[#allocation17_spill] sm:$0xff] }
 0xa5d   :  { %v6832_v11 = vpop.permute.xlu1 %6831  ;;  %v12732_v9 = vcombine.low %v12730_v39, %v12731_v1 }
 0xa5e   :  { %v6846_v16 = vsel %vm639_vm7, %v6845_v30, %v6832_v11  ;;  %v12733_v11 = vld [vmem:[#allocation80_spill] sm:$0xff] }
 0xa5f   :  { %v6836_v51 = vpop.permute.xlu0 %6835  ;;  %v5843_v29 = vsel %vm632_vm4, %v12732_v9, %v12729_v24  ;;  %vm5347_vm4 = vcmask 588800  }
 0xa60   :  { %v6847_v42 = vsel %vm641_vm8, %v6846_v16, %v6836_v51  ;;  %v5844_v50 = vsel %vm306_vm11, %v5843_v29, %v12733_v11  ;;  %vm12737_vm11 = vmmov %vm12685_vm0 }
 0xa61   :  { %v4734_v35 = vpop.permute.xlu1 %4733 }
 0xa62   :  { %v4745_v13 = vsel %vm641_vm8, %v4744_v7, %v4734_v35  ;;  %v12736_v35 = vld [vmem:[#allocation68_spill] sm:$0xff] }
 0xa63   :  { %v4738_v57 = vpop.permute.xlu0 %4737  ;;  %v5845_v43 = vsel %vm12737_vm11, %v5844_v50, %v12736_v35 }
 0xa64   :  { %v4746_v46 = vsel %vm643_vm9, %v4745_v13, %v4738_v57  ;;  %v12738_v13 = vld [vmem:[#allocation71_spill] sm:$0xff] }
 0xa65   :  { %v6633_v15 = vpop.permute.xlu1 %6632  ;;  %7752 = vmatpush3.msra.mxu0 %v4746_v46  ;;  %v3746_v57 = vsel %vm641_vm8, %v3745_v56, %v12738_v13 }
 0xa66   :  { %7753 = vmatprep.subr.mxu0 %v12690_v5  ;;  %v6650_v8 = vsel %vm637_vm6, %v6649_v54, %v6633_v15 }
 0xa67   :  { %v6840_v52 = vpop.permute.xlu0 %6839 }
 0xa68   :  { %v6848_v53 = vsel %vm643_vm9, %v6847_v42, %v6840_v52 }
 0xa69   :  { %v4535_v10 = vpop.permute.xlu1 %4534  ;;  %7773 = vmatpush3.msra.mxu1 %v6848_v53 }
 0xa6a   :  { %7774 = vmatprep.subr.mxu1 %v12690_v5  ;;  %v4549_v28 = vsel %vm639_vm7, %v4548_v6, %v4535_v10 }
 0xa6b   :  { %v6641_v0 = vpop.permute.xlu0 %6640 }
 0xa6d   :  { %v6637_v4 = vpop.permute.xlu1 %6636 }
 0xa6e   :  { %v6651_v60 = vsel %vm639_vm7, %v6650_v8, %v6637_v4 }
 0xa6f   :  { %v4543_v44 = vpop.permute.xlu0 %4542  ;;  %v6652_v36 = vsel %vm641_vm8, %v6651_v60, %v6641_v0 }
 0xa71   :  { %v4539_v59 = vpop.permute.xlu1 %4538 }
 0xa72   :  { %v4550_v3 = vsel %vm641_vm8, %v4549_v28, %v4539_v59 }
 0xa73   :  { %v4551_v62 = vsel %vm643_vm9, %v4550_v3, %v4543_v44  ;;  %v6645_v31 = vpop.permute.xlu0 %6644 }
 0xa74   :  { %7754 = vmatpush3.msra.mxu0 %v4551_v62  ;;  %v6653_v51 = vsel %vm643_vm9, %v6652_v36, %v6645_v31 }
 0xa75   :  { %7755 = vmatprep.subr.mxu0 %v12690_v5  ;;  %v3942_v14 = vpop.permute.xlu1 %3941  ;;  %7775 = vmatpush3.msra.mxu1 %v6653_v51 }
 0xa76   :  { %7756 = vmatpush3.msra.mxu0 %v11562_v18  ;;  %7776 = vmatprep.subr.mxu1 %v12690_v5  ;;  %v3950_v19 = vsel %vm643_vm9, %v11765_v33, %v3942_v14  ;;  %v12740_v33 = vld [vmem:[#allocation83_spill] sm:$0xff] }
 0xa77   :  { %7757 = vmatprep.subr.mxu0 %v12690_v5  ;;  %v5833_v7 = vpop.permute.xlu0 %5832  ;;  %7777 = vmatpush3.msra.mxu1 %v11577_v49  ;;  %v12739_v49 = vld [vmem:[#allocation66_spill] sm:$0xff]  ;;  %v5846_v46 = vsel %vm637_vm6, %v5845_v43, %v12740_v33 }
 0xa78   :  { %7758 = vmatpush3.msra.mxu0 %v11749_v23  ;;  %7778 = vmatprep.subr.mxu1 %v12690_v5  ;;  %v5340_v23 = vld [vmem:[%s11990_s5] sm:$0xff]  ;;  %v3747_v41 = vsel %vm643_vm9, %v3746_v57, %v12739_v49 }
 0xa79   :  { %7759 = vmatprep.subr.mxu0 %v12690_v5  ;;  %v6044_v18 = vpop.permute.xlu1 %6043  ;;  %7779 = vmatpush3.msra.mxu1 %v11768_v25  ;;  %v5847_v25 = vsel %vm639_vm7, %v5846_v46, %v5833_v7 }
 0xa7a   :  { %7760 = vmatpush3.msra.mxu0 %v3950_v19  ;;  %v6052_v15 = vsel %vm643_vm9, %v11756_v26, %v6044_v18  ;;  %7780 = vmatprep.subr.mxu1 %v12690_v5 }
 0xa7b   :  { %7761 = vmatprep.subr.mxu0 %v12690_v5  ;;  %v5837_v30 = vpop.permute.xlu0 %5836  ;;  %7781 = vmatpush3.msra.mxu1 %v6052_v15 }
 0xa7c   :  { %7762 = vmatpush3.msra.mxu0 %v3747_v41  ;;  %v5848_v16 = vsel %vm641_vm8, %v5847_v25, %v5837_v30  ;;  %7782 = vmatprep.subr.mxu1 %v12690_v5 }
 0xa7d   :  { %7764 = vmatmul.mubr.msk.f32.vlgmr.msra.gmra.mxu0 %vm5347_vm4, %v5340_v23  ;;  %v5841_v42 = vpop.permute.xlu1 %5840 }
 0xa7e   :  { %v5849_v52 = vsel %vm643_vm9, %v5848_v16, %v5841_v42 }
 0xa7f   :  { %7783 = vmatpush3.msra.mxu1 %v5849_v52 }
 0xa80   :  { %7785 = vmatmul.mubr.msk.f32.vlgmr.msra.gmra.mxu1 %vm5347_vm4, %v5340_v23 }
 0xa88   :  { %v5345_v26 = vpop.permute.xlu0 %5344 }
 0xb3d   :  { %v5417_v53 = vpop.f32.mrf.mxu0 }
 0xb3e   :  { %v5418_v10 = vadd.f32 %v5417_v53, %v5345_v26 }
 0xb3f   :  { %v7765_v0 = vpop.f32.mrf.mxu0 }
 0xb40   :  { %v5421_v32 = vsel %vm1684_vm2, %v5418_v10, 0.0  ;;  %v7508_v38 = vpop.f32.mrf.mxu1  ;;  %v5425_v22 = vmul.f32 %v5418_v10, %v5418_v10 }
 0xb41   :  { %5422 = vadd.xlane.f32.xlu1 %v5421_v32  ;;  %v7509_v27 = vadd.f32 %v7508_v38, %v5345_v26 }
 0xb42   :  { %v7786_v63 = vpop.f32.mrf.mxu1  ;;  %v5426_v55 = vsel %vm1684_vm2, %v5425_v22, 0.0 }
 0xb43   :  { %v7512_v4 = vsel %vm1684_vm2, %v7509_v27, 0.0  ;;  %v7516_v34 = vmul.f32 %v7509_v27, %v7509_v27 }
 0xb44   :  { %7513 = vadd.xlane.f32.xlu0 %v7512_v4 }
 0xb45   :  { %v7517_v5 = vsel %vm1684_vm2, %v7516_v34, 0.0 }
 0xb46   :  { %7518 = vadd.xlane.f32.xlu1 %v7517_v5 }
 0xb48   :  { %5427 = vadd.xlane.f32.xlu0 %v5426_v55 }
 0xbca   :  { %v5423_v45 = vpop.xlane.xlu1 %5422 }
 0xbcd   :  { %v7514_v40 = vpop.xlane.xlu0 %7513 }
 0xbce   :  { %v7515_v61 = vadd.f32 %v7514_v40, %v5423_v45 }
 0xbcf   :  { %v7519_v37 = vpop.xlane.xlu1 %7518 }
 0xbd0   :  { %v7521_v12 = vmul.f32 0.0078125, %v7515_v61 }
 0xbd1   :  { %v5428_v54 = vpop.xlane.xlu0 %5427 }
 0xbd2   :  { %v7520_v6 = vadd.f32 %v7519_v37, %v5428_v54  ;;  %v7523_v8 = vmul.f32 %v7521_v12, %v7521_v12 }
 0xbd4   :  { %v7522_v44 = vmul.f32 0.0078125, %v7520_v6 }
 0xbd6   :  { %v7524_v28 = vsub.f32 %v7522_v44, %v7523_v8 }
 0xbd8   :  { %v7525_v60 = vmax.f32 %v7524_v28, 0.0 }
 0xbda   :  { %v7527_v59 = vadd.f32 1e-05, %v7525_v60 }
 0xbdc   :  { %7814 = vrsqrt.f32 %v7527_v59 }
 0xbe9   :  { %v7815_v48 = vpop.eup %7814 }
 0xbea   :  { %v7529_v3 = vmul.f32 %v7815_v48, %v7526_v21 }
 0xbec   :  { %7535 = vperm.xlu0 %7810, %v7529_v3   ;;  %v7531_v20 = vmul.f32 %v7529_v3, %v7521_v12 }
 0xbee   :  { %v7532_v62 = vsub.f32 %v7530_v47, %v7531_v20 }
 0xbf0   :  { %7541 = vperm.xlu1 %7811, %v7532_v62  }
 0xc67   :  { %v7536_v24 = vpop.permute.xlu0 %7535 }
 0xc68   :  { %v7538_v39 = vmul.f32 %v7536_v24, %v5418_v10  ;;  %v7547_v1 = vmul.f32 %v7536_v24, %v7509_v27 }
 0xc6b   :  { %v7542_v9 = vpop.permute.xlu1 %7541 }
 0xc6c   :  { %v7544_v29 = vadd.f32 %v7542_v9, %v7538_v39  ;;  %v7548_v31 = vadd.f32 %v7547_v1, %v7542_v9 }
 0xc6e   :  { %v7545_v36 = vmax.f32 %v7544_v29, 0.0  ;;  %v7549_v11 = vmax.f32 %v7548_v31, 0.0 }
 0xc70   :  { %7546 = vst.msk [vmem:[%s11993_s9] sm:$0xff] %vm1684_vm2, %v7545_v36  ;;  %7622 = vst.msk [vmem:[%s11993_s9 + $0x8] sm:$0xff] %vm1684_vm2, %v7549_v11 }

</bundles_post_ra>
